<compile_context>
chip_gen: v5e
topology: v5e:2x2
jax: 0.10.0
libtpu: 0.0.40
codegen_flags: <defaults>
</compile_context>

<pallas_src>
import functools

import jax
import jax.numpy as jnp
import numpy as np
from jax.experimental import pallas as pl
from jax.experimental.pallas import tpu as pltpu

# Production default: bf16 weights/gi (f32 accumulation + f32 hidden state).
DEFAULT_COMPUTE_DTYPE = jnp.bfloat16

# Set by enable_single_buffered_invariants(); None/False -> default double buffering.
_SINGLE_BUFFER_INVARIANTS = None


def _round_up(x, m):
    return (x + m - 1) // m * m


def _pad_gate_cols(a, H, Hp):
    """(..., 3H) with gates [r|z|n] -> (..., 3Hp), each gate zero-padded to Hp cols."""
    if H == Hp:
        return a
    pad = [(0, 0)] * (a.ndim - 1) + [(0, Hp - H)]
    r, z, n = a[..., :H], a[..., H:2 * H], a[..., 2 * H:]
    return jnp.concatenate([jnp.pad(r, pad), jnp.pad(z, pad), jnp.pad(n, pad)],
                           axis=-1)


def _vmem_capacity_bytes():
    """Physical per-core VMEM; conservative 64 MiB (v7x) fallback."""
    try:
        return int(pltpu.get_tpu_info().vmem_capacity_bytes)
    except Exception:
        return 64 << 20


def _use_single_buffering():
    return bool(_SINGLE_BUFFER_INVARIANTS)


def enable_single_buffered_invariants():
    """Probe whether BlockSpec(pipeline_mode=pl.Buffered(1)) works on this jax/TPU.

    Runs a tiny kernel with a grid-invariant, single-buffered input and checks the
    result; sets a module flag used by gru_layer_pallas.  Any failure -> fall back
    to default double buffering (correct either way).
    """
    global _SINGLE_BUFFER_INVARIANTS
    try:
        def _probe_kernel(a_ref, b_ref, o_ref):
            o_ref[...] = a_ref[...] + b_ref[...]

        a = jnp.arange(16 * 128, dtype=jnp.float32).reshape(16, 128)
        b = jnp.ones((8, 128), jnp.float32)
        out = pl.pallas_call(
            _probe_kernel,
            out_shape=jax.ShapeDtypeStruct((16, 128), jnp.float32),
            grid_spec=pltpu.PrefetchScalarGridSpec(
                num_scalar_prefetch=0,
                grid=(2,),
                in_specs=[
                    pl.BlockSpec((8, 128), lambda i: (i, 0)),
                    pl.BlockSpec((8, 128), lambda i: (0, 0),
                                 pipeline_mode=pl.Buffered(buffer_count=1)),
                ],
                out_specs=pl.BlockSpec((8, 128), lambda i: (i, 0)),
            ),
        )(a, b)
        out = np.asarray(jax.block_until_ready(out))
        _SINGLE_BUFFER_INVARIANTS = bool(
            np.allclose(out, np.asarray(a) + 1.0, atol=1e-6))
    except Exception:
        _SINGLE_BUFFER_INVARIANTS = False
    return _SINGLE_BUFFER_INVARIANTS


def _invariant_spec(block_shape, index_map):
    """BlockSpec for a grid-invariant input; single-buffered when supported."""
    if _use_single_buffering():
        return pl.BlockSpec(block_shape, index_map,
                            pipeline_mode=pl.Buffered(buffer_count=1))
    return pl.BlockSpec(block_shape, index_map)


def _auto_time_chunk(T, Bblk, Hp, gi_item, y_item, fixed_bytes, budget):
    """Largest Tc (<=32, for unrolled-body vreg pressure) whose double-buffered
    gi/y chunks fit the per-chip VMEM budget."""
    cands = sorted({c for c in (32, 16, 8, 4, 2, 1, T) if 1 <= c <= min(T, 32)},
                   reverse=True)
    for tc in cands:
        per = 2 * tc * Bblk * 3 * Hp * gi_item + 2 * tc * Bblk * Hp * y_item
        if fixed_bytes + per <= budget:
            return tc
    return 1


# --------------------------------------------------------------------------
# Pallas kernel: GRU recurrence only.
#   grid = (batch_blocks [parallel], time_chunks [arbitrary/sequential])
#   One time-chunk per grid step, unrolled fori_loop over Tc timesteps inside.
# --------------------------------------------------------------------------
def _gru_recurrence_kernel(gi_ref, whh_ref, bhn_ref, h0_ref,
                           y_ref, hT_ref, h_scratch, *, Hp, Tc, T):
    c = pl.program_id(1)

    @pl.when(c == 0)
    def _():
        h_scratch[...] = h0_ref[...]

    # Hoist the (1,Hp)->(Bblk,Hp) broadcast out of the unrolled loop (no CSE in JAX).
    bhn = jnp.broadcast_to(bhn_ref[...], h_scratch.shape)

    def step(i, h):
        gi = gi_ref[i]                                   # (Bblk, 3Hp): b_ih + b_hh(r,z) folded in
        gh = jnp.dot(h.astype(whh_ref.dtype), whh_ref[...],
                     preferred_element_type=jnp.float32)  # (Bblk, 3Hp) f32 accumulation
        rz = jax.nn.sigmoid(gi[:, :2 * Hp].astype(jnp.float32) + gh[:, :2 * Hp])
        r = rz[:, :Hp]
        z = rz[:, Hp:]
        n = jnp.tanh(gi[:, 2 * Hp:].astype(jnp.float32) + r * (gh[:, 2 * Hp:] + bhn))
        h_new = n + z * (h - n)                           # == (1-z)*n + z*h
        if T % Tc != 0:                                   # static check; mask padded steps
            h_new = jnp.where(c * Tc + i < T, h_new, h)
        y_ref[i] = h_new.astype(y_ref.dtype)              # lane-dense (Bblk, Hp) store
        return h_new

    h = jax.lax.fori_loop(0, Tc, step, h_scratch[...], unroll=True)
    h_scratch[...] = h

    @pl.when(c == pl.num_programs(1) - 1)                 # single final-state write
    def _():
        hT_ref[...] = h.astype(hT_ref.dtype)


def gru_layer_pallas(x, w_ih_t, w_hh_t, b_ih, b_hh, h0, *,
                     time_chunk=None,
                     weight_dtype=DEFAULT_COMPUTE_DTYPE,
                     y_dtype=jnp.float32):
    """x: (T,B,E), w_ih_t: (E,3H), w_hh_t: (H,3H), b_*: (1,3H) f32, h0: (B,H) f32.

    Returns y: (T,B,H) in y_dtype, hT: (B,H) f32 — matching one torch.nn.GRU layer.
    """
    T, B, E = x.shape
    H = w_hh_t.shape[0]
    Hp = _round_up(H, 128)                 # lane-aligned gate width
    Bp = _round_up(max(B, 8), 8)           # sublane-aligned batch

    # Batch blocking: >=2 sublane-aligned blocks when possible so the leading
    # "parallel" grid axis can be sharded across v7x's two TensorCores.
    if Bp >= 16:
        n_bb = 2
        Bblk = _round_up((Bp + n_bb - 1) // n_bb, 8)
    else:
        n_bb, Bblk = 1, Bp
    Bp2 = n_bb * Bblk

    gi_dtype = weight_dtype
    gi_item = jnp.dtype(gi_dtype).itemsize
    y_item = jnp.dtype(y_dtype).itemsize
    w_item = jnp.dtype(weight_dtype).itemsize

    capacity = _vmem_capacity_bytes()
    n_w_buf = 1 if _use_single_buffering() else 2
    fixed_bytes = (n_w_buf * (Hp * 3 * Hp * w_item          # w_hh^T (resident)
                              + Hp * 4)                     # b_hn   (resident)
                   + 2 * Bblk * Hp * 4                      # h0 (default buffering)
                   + Bblk * Hp * 4                          # h scratch
                   + 2 * Bblk * Hp * 4)                     # hT output buffers

    if time_chunk is None:
        Tc = _auto_time_chunk(T, Bblk, Hp, gi_item, y_item,
                              fixed_bytes, int(0.7 * capacity))
    else:
        Tc = max(1, min(time_chunk, T))
    T_pad = _round_up(T, Tc)
    n_chunks = T_pad // Tc

    # ---- hoisted input projection: one big time-parallel matmul outside the kernel.
    # fold b_ih (all gates) + b_hh (r,z gates) into it; n-gate hidden bias stays inside.
    b_fused = b_ih + jnp.concatenate(
        [b_hh[:, :2 * H], jnp.zeros((1, H), b_hh.dtype)], axis=-1)
    w_ih_p = _pad_gate_cols(w_ih_t, H, Hp).astype(weight_dtype)
    b_fused_p = _pad_gate_cols(b_fused, H, Hp).astype(jnp.float32)
    gi = jnp.einsum('tbe,eg->tbg', x.astype(weight_dtype), w_ih_p,
                    preferred_element_type=jnp.float32) + b_fused_p
    gi = gi.astype(gi_dtype)                                         # bf16 stream (default)
    gi = jnp.pad(gi, ((0, T_pad - T), (0, Bp2 - B), (0, 0)))         # (T_pad, Bp2, 3Hp)

    # ---- padded recurrent weights / state ----
    w_hh_p = jnp.pad(_pad_gate_cols(w_hh_t, H, Hp),
                     ((0, Hp - H), (0, 0))).astype(weight_dtype)      # (Hp, 3Hp)
    b_hn_p = jnp.pad(b_hh[:, 2 * H:], ((0, 0), (0, Hp - H))).astype(jnp.float32)
    h0_p = jnp.pad(h0.astype(jnp.float32), ((0, Bp2 - B), (0, Hp - H)))

    kernel = functools.partial(_gru_recurrence_kernel, Hp=Hp, Tc=Tc, T=T)

    per_chunk_bytes = (2 * Tc * Bblk * 3 * Hp * gi_item
                       + 2 * Tc * Bblk * Hp * y_item)
    vmem_limit = int(min(capacity,
                         max(int(1.25 * (fixed_bytes + per_chunk_bytes)), 16 << 20)))

    cost = pl.CostEstimate(
        flops=2 * T_pad * Bp2 * Hp * 3 * Hp,
        transcendentals=T_pad * Bp2 * 3 * Hp,
        bytes_accessed=int(gi.size * gi_item + w_hh_p.size * w_item
                           + T_pad * Bp2 * Hp * y_item + 2 * Bp2 * Hp * 4))

    y, hT = pl.pallas_call(
        kernel,
        out_shape=(jax.ShapeDtypeStruct((T_pad, Bp2, Hp), y_dtype),
                   jax.ShapeDtypeStruct((Bp2, Hp), jnp.float32)),
        grid_spec=pltpu.PrefetchScalarGridSpec(
            num_scalar_prefetch=0,
            grid=(n_bb, n_chunks),
            in_specs=[
                pl.BlockSpec((Tc, Bblk, 3 * Hp), lambda b, c: (c, b, 0)),  # gi chunk
                _invariant_spec((Hp, 3 * Hp), lambda b, c: (0, 0)),        # w_hh^T (resident)
                _invariant_spec((1, Hp), lambda b, c: (0, 0)),             # b_hn   (resident)
                pl.BlockSpec((Bblk, Hp), lambda b, c: (b, 0)),             # h0 block
            ],
            out_specs=[
                pl.BlockSpec((Tc, Bblk, Hp), lambda b, c: (c, b, 0)),      # y chunk
                pl.BlockSpec((Bblk, Hp), lambda b, c: (b, 0)),             # h_T (last chunk only)
            ],
            scratch_shapes=[pltpu.VMEM((Bblk, Hp), jnp.float32)],
        ),
        compiler_params=pltpu.CompilerParams(
            dimension_semantics=("parallel", "arbitrary"),  # batch-parallel, time-sequential
            vmem_limit_bytes=vmem_limit),
        cost_estimate=cost,
    )(gi, w_hh_p, b_hn_p, h0_p)

    # Padded batch rows / lanes drift to junk values over time; they are sliced off
    # here and padded hT is never fed back as state.
    return y[:T, :B, :H], hT[:B, :H]


# --------------------------------------------------------------------------
# Encoder (embedding + stacked GRU), plain-JAX glue around the kernel
# --------------------------------------------------------------------------
def init_encoder_params(key, vocab_size, embed_size, num_hiddens, num_layers):
    keys = jax.random.split(key, 1 + 4 * num_layers)
    params = {
        "embedding": jax.random.normal(keys[0], (vocab_size, embed_size),
                                       jnp.float32)
    }
    bound = 1.0 / np.sqrt(num_hiddens)
    layers = []
    for l in range(num_layers):
        in_dim = embed_size if l == 0 else num_hiddens
        k0, k1, k2, k3 = keys[1 + 4 * l: 5 + 4 * l]
        layers.append({
            # stored transposed: (in_dim, 3H), gate order [r|z|n]
            "w_ih_t": jax.random.uniform(k0, (in_dim, 3 * num_hiddens),
                                         jnp.float32, -bound, bound),
            "w_hh_t": jax.random.uniform(k1, (num_hiddens, 3 * num_hiddens),
                                         jnp.float32, -bound, bound),
            "b_ih": jax.random.uniform(k2, (1, 3 * num_hiddens),
                                       jnp.float32, -bound, bound),
            "b_hh": jax.random.uniform(k3, (1, 3 * num_hiddens),
                                       jnp.float32, -bound, bound),
        })
    params["layers"] = layers
    return params


def encoder_forward(params, inputs, state=None, *, time_chunk=None,
                    compute_dtype=DEFAULT_COMPUTE_DTYPE):
    """inputs: (batch, seq) int ids; state: None or (num_layers, batch, H).

    Returns (output, state) matching torch.nn.GRU:
      output: (seq, batch, num_hiddens) f32, state: (num_layers, batch, num_hiddens) f32.
    """
    ids = inputs.astype(jnp.int32)
    # Gather embedding directly in time-major order (= permute(1,0,2) of (B,T,E)).
    x = jnp.take(params["embedding"], ids.T, axis=0).astype(jnp.float32)  # (T,B,E)
    B = x.shape[1]
    num_layers = len(params["layers"])
    H = params["layers"][0]["w_hh_t"].shape[0]
    if state is None:  # begin_state() -> None -> zeros (PyTorch GRU default)
        state = jnp.zeros((num_layers, B, H), jnp.float32)

    finals = []
    for l, lp in enumerate(params["layers"]):
        last = l == num_layers - 1
        # Interior layers emit y in the next layer's compute dtype (halves inter-layer
        # HBM traffic); the final layer emits f32.
        x, hT = gru_layer_pallas(x, lp["w_ih_t"], lp["w_hh_t"],
                                 lp["b_ih"], lp["b_hh"], state[l],
                                 time_chunk=time_chunk,
                                 weight_dtype=compute_dtype,
                                 y_dtype=jnp.float32 if last else compute_dtype)
        finals.append(hT)
    return x, jnp.stack(finals, axis=0)


# --------------------------------------------------------------------------
# Pure-JAX reference (PyTorch GRU semantics, f32) for a correctness check
# --------------------------------------------------------------------------
def _gru_layer_ref(x, w_ih_t, w_hh_t, b_ih, b_hh, h0):
    H = h0.shape[-1]

    def step(h, xt):
        gi = xt @ w_ih_t + b_ih
        gh = h @ w_hh_t + b_hh
        r = jax.nn.sigmoid(gi[:, :H] + gh[:, :H])
        z = jax.nn.sigmoid(gi[:, H:2 * H] + gh[:, H:2 * H])
        n = jnp.tanh(gi[:, 2 * H:] + r * gh[:, 2 * H:])
        h_new = (1.0 - z) * n + z * h
        return h_new, h_new

    hT, ys = jax.lax.scan(step, h0, x)
    return ys, hT


def encoder_forward_ref(params, inputs, state=None):
    emb = jnp.take(params["embedding"], inputs, axis=0)
    x = jnp.transpose(emb, (1, 0, 2)).astype(jnp.float32)
    B = x.shape[1]
    num_layers = len(params["layers"])
    H = params["layers"][0]["w_hh_t"].shape[0]
    if state is None:
        state = jnp.zeros((num_layers, B, H), jnp.float32)
    finals = []
    for l, lp in enumerate(params["layers"]):
        x, hT = _gru_layer_ref(x, lp["w_ih_t"], lp["w_hh_t"],
                               lp["b_ih"], lp["b_hh"], state[l])
        finals.append(hT)
    return x, jnp.stack(finals, axis=0)


# --------------------------------------------------------------------------
if __name__ == "__main__":
    vocab_size, embed_size, num_hiddens, num_layers = 20, 16, 32, 2
    batch, seq_len = 4, 8

    key = jax.random.PRNGKey(0)
    pkey, ikey = jax.random.split(key)
    params = init_encoder_params(pkey, vocab_size, embed_size,
                                 num_hiddens, num_layers)
    inputs = jax.random.randint(ikey, (batch, seq_len), 0, vocab_size,
                                dtype=jnp.int32)

    # Probe (once, eagerly) whether single-buffered invariant inputs are supported.
    enable_single_buffered_invariants()

    out_ref, state_ref = encoder_forward_ref(params, inputs, state=None)

    # --- bf16 compute (production config): relaxed tolerance vs the f32 reference ---
    fwd_bf16 = jax.jit(functools.partial(encoder_forward,
                                         compute_dtype=jnp.bfloat16))
    out, state = jax.block_until_ready(fwd_bf16(params, inputs))
    assert out.shape == (seq_len, batch, num_hiddens)
    assert state.shape == (num_layers, batch, num_hiddens)
    np.testing.assert_allclose(np.asarray(out, np.float32), np.asarray(out_ref),
                               atol=5e-2, rtol=5e-2)
    np.testing.assert_allclose(np.asarray(state, np.float32), np.asarray(state_ref),
                               atol=5e-2, rtol=5e-2)

    # --- f32 compute: tight check against the PyTorch-semantics reference ---
    fwd_f32 = jax.jit(functools.partial(encoder_forward,
                                        compute_dtype=jnp.float32))
    out32, state32 = jax.block_until_ready(fwd_f32(params, inputs))
    np.testing.assert_allclose(np.asarray(out32), np.asarray(out_ref),
                               atol=1e-5, rtol=1e-5)
    np.testing.assert_allclose(np.asarray(state32), np.asarray(state_ref),
                               atol=1e-5, rtol=1e-5)

    print("KERNEL_OK")
</pallas_src>

<mosaic_0001>
module attributes {stable_mosaic.version = 11 : i64} {
  func.func @_probe_kernel(%arg0: i32, %arg1: memref<8x128xf32, #tpu.memory_space<vmem>>, %arg2: memref<8x128xf32, #tpu.memory_space<vmem>>, %arg3: memref<8x128xf32, #tpu.memory_space<vmem>>) attributes {dimension_semantics = [#tpu.dimension_semantics<arbitrary>], iteration_bounds = array<i64: 2>, scalar_prefetch = 0 : i64, scratch_operands = 0 : i64, tpu.core_type = #tpu.core_type<tc>, window_params = [{transform_indices = @transform_0, window_bounds = array<i64: 8, 128>}, {pipeline_mode = #tpu.pipeline_mode<synchronous>, transform_indices = @transform_1, window_bounds = array<i64: 8, 128>}, {transform_indices = @transform_2, window_bounds = array<i64: 8, 128>}]} {
    %c0 = arith.constant 0 : index
    %c0_0 = arith.constant 0 : index
    %0 = vector.load %arg1[%c0, %c0_0] : memref<8x128xf32, #tpu.memory_space<vmem>>, vector<8x128xf32>
    %c0_1 = arith.constant 0 : index
    %c0_2 = arith.constant 0 : index
    %1 = vector.load %arg2[%c0_1, %c0_2] : memref<8x128xf32, #tpu.memory_space<vmem>>, vector<8x128xf32>
    %2 = arith.addf %0, %1 : vector<8x128xf32>
    %c0_3 = arith.constant 0 : index
    %c0_4 = arith.constant 0 : index
    %3 = vector.load %arg3[%c0_3, %c0_4] : memref<8x128xf32, #tpu.memory_space<vmem>>, vector<8x128xf32>
    tpu.vector_store %arg3[%c0_3, %c0_4], %2 {strides = array<i32>} : memref<8x128xf32, #tpu.memory_space<vmem>>, vector<8x128xf32>,
    return
  }
  func.func @transform_0(%arg0: i32) -> (i32, i32) {
    %c0_i32 = arith.constant 0 : i32
    %c0_i32_0 = arith.constant 0 : i32
    return %arg0, %c0_i32 : i32, i32
  }
  func.func @transform_1(%arg0: i32) -> (i32, i32) {
    %c0_i32 = arith.constant 0 : i32
    %c0_i32_0 = arith.constant 0 : i32
    %c0_i32_1 = arith.constant 0 : i32
    return %c0_i32, %c0_i32_0 : i32, i32
  }
  func.func @transform_2(%arg0: i32) -> (i32, i32) {
    %c0_i32 = arith.constant 0 : i32
    %c0_i32_0 = arith.constant 0 : i32
    return %arg0, %c0_i32 : i32, i32
  }
}

module attributes {stable_mosaic.version = 11 : i64} {
  func.func @_gru_recurrence_kernel(%arg0: i32, %arg1: i32, %arg2: memref<8x8x384xbf16, #tpu.memory_space<vmem>>, %arg3: memref<128x384xbf16, #tpu.memory_space<vmem>>, %arg4: memref<1x128xf32, #tpu.memory_space<vmem>>, %arg5: memref<8x128xf32, #tpu.memory_space<vmem>>, %arg6: memref<8x8x128xf32, #tpu.memory_space<vmem>>, %arg7: memref<8x128xf32, #tpu.memory_space<vmem>>, %arg8: memref<8x128xf32, #tpu.memory_space<vmem>>) attributes {dimension_semantics = [#tpu.dimension_semantics<parallel>, #tpu.dimension_semantics<arbitrary>], iteration_bounds = array<i64: 1, 1>, scalar_prefetch = 0 : i64, scratch_operands = 1 : i64, tpu.core_type = #tpu.core_type<tc>, window_params = [{transform_indices = @transform_0, window_bounds = array<i64: 8, 8, 384>}, {pipeline_mode = #tpu.pipeline_mode<synchronous>, transform_indices = @transform_1, window_bounds = array<i64: 128, 384>}, {pipeline_mode = #tpu.pipeline_mode<synchronous>, transform_indices = @transform_2, window_bounds = array<i64: 1, 128>}, {transform_indices = @transform_3, window_bounds = array<i64: 8, 128>}, {transform_indices = @transform_4, window_bounds = array<i64: 8, 8, 128>}, {transform_indices = @transform_5, window_bounds = array<i64: 8, 128>}]} {
    %c0_i32 = arith.constant 0 : i32
    %0 = arith.cmpi eq, %arg1, %c0_i32 : i32
    %1 = arith.extui %0 : i1 to i32
    %c0_i32_0 = arith.constant 0 : i32
    %2 = arith.cmpi ne, %1, %c0_i32_0 : i32
    scf.if %2 {
      %c0_72 = arith.constant 0 : index
      %c0_73 = arith.constant 0 : index
      %259 = vector.load %arg5[%c0_72, %c0_73] : memref<8x128xf32, #tpu.memory_space<vmem>>, vector<8x128xf32>
      %c0_74 = arith.constant 0 : index
      %c0_75 = arith.constant 0 : index
      %260 = vector.load %arg8[%c0_74, %c0_75] : memref<8x128xf32, #tpu.memory_space<vmem>>, vector<8x128xf32>
      tpu.vector_store %arg8[%c0_74, %c0_75], %259 {strides = array<i32>} : memref<8x128xf32, #tpu.memory_space<vmem>>, vector<8x128xf32>,
    } else {
    }
    %c0 = arith.constant 0 : index
    %c0_1 = arith.constant 0 : index
    %3 = vector.load %arg4[%c0, %c0_1] : memref<1x128xf32, #tpu.memory_space<vmem>>, vector<1x128xf32>
    %4 = vector.shape_cast %3 : vector<1x128xf32> to vector<1x128xf32>
    %5 = vector.broadcast %4 : vector<1x128xf32> to vector<8x128xf32>
    %c0_2 = arith.constant 0 : index
    %c0_3 = arith.constant 0 : index
    %6 = vector.load %arg8[%c0_2, %c0_3] : memref<8x128xf32, #tpu.memory_space<vmem>>, vector<8x128xf32>
    %c0_i32_4 = arith.constant 0 : i32
    %7 = arith.index_cast %c0_i32_4 : i32 to index
    %c0_5 = arith.constant 0 : index
    %c0_6 = arith.constant 0 : index
    %8 = vector.load %arg2[%7, %c0_5, %c0_6] : memref<8x8x384xbf16, #tpu.memory_space<vmem>>, vector<1x8x384xbf16>
    %9 = vector.shape_cast %8 : vector<1x8x384xbf16> to vector<8x384xbf16>
    %10 = arith.truncf %6 : vector<8x128xf32> to vector<8x128xbf16>
    %c0_7 = arith.constant 0 : index
    %c0_8 = arith.constant 0 : index
    %11 = vector.load %arg3[%c0_7, %c0_8] : memref<128x384xbf16, #tpu.memory_space<vmem>>, vector<128x384xbf16>
    %cst = arith.constant dense<0.000000e+00> : vector<8x384xf32>
    %12 = tpu.matmul %10, %11, %cst {dimension_numbers = #tpu.dot_dimension_numbers<[1], [0], [0], [1], [0, 0, 1, 1], [], []>} : vector<8x128xbf16>, vector<128x384xbf16>, vector<8x384xf32> -> vector<8x384xf32>
    %13 = vector.extract_strided_slice %9 {offsets = [0, 0], sizes = [8, 256], strides = [1, 1]} : vector<8x384xbf16> to vector<8x256xbf16>
    %14 = arith.extf %13 : vector<8x256xbf16> to vector<8x256xf32>
    %15 = vector.extract_strided_slice %12 {offsets = [0, 0], sizes = [8, 256], strides = [1, 1]} : vector<8x384xf32> to vector<8x256xf32>
    %16 = arith.addf %14, %15 : vector<8x256xf32>
    %17 = arith.negf %16 : vector<8x256xf32>
    %18 = math.exp %17 : vector<8x256xf32>
    %cst_9 = arith.constant 1.000000e+00 : f32
    %19 = vector.broadcast %cst_9 : f32 to vector<8x256xf32>
    %20 = arith.addf %19, %18 : vector<8x256xf32>
    %21 = arith.divf %19, %20 : vector<8x256xf32>
    %22 = vector.extract_strided_slice %21 {offsets = [0, 0], sizes = [8, 128], strides = [1, 1]} : vector<8x256xf32> to vector<8x128xf32>
    %23 = vector.extract_strided_slice %21 {offsets = [0, 128], sizes = [8, 128], strides = [1, 1]} : vector<8x256xf32> to vector<8x128xf32>
    %24 = vector.extract_strided_slice %9 {offsets = [0, 256], sizes = [8, 128], strides = [1, 1]} : vector<8x384xbf16> to vector<8x128xbf16>
    %25 = arith.extf %24 : vector<8x128xbf16> to vector<8x128xf32>
    %26 = vector.extract_strided_slice %12 {offsets = [0, 256], sizes = [8, 128], strides = [1, 1]} : vector<8x384xf32> to vector<8x128xf32>
    %27 = arith.addf %26, %5 : vector<8x128xf32>
    %28 = arith.mulf %22, %27 : vector<8x128xf32>
    %29 = arith.addf %25, %28 : vector<8x128xf32>
    %30 = math.tanh %29 : vector<8x128xf32>
    %31 = arith.subf %6, %30 : vector<8x128xf32>
    %32 = arith.mulf %23, %31 : vector<8x128xf32>
    %33 = arith.addf %30, %32 : vector<8x128xf32>
    %34 = arith.index_cast %c0_i32_4 : i32 to index
    %c0_10 = arith.constant 0 : index
    %c0_11 = arith.constant 0 : index
    %35 = vector.load %arg6[%34, %c0_10, %c0_11] : memref<8x8x128xf32, #tpu.memory_space<vmem>>, vector<1x8x128xf32>
    %36 = vector.shape_cast %35 : vector<1x8x128xf32> to vector<8x128xf32>
    %37 = vector.shape_cast %33 : vector<8x128xf32> to vector<1x8x128xf32>
    tpu.vector_store %arg6[%34, %c0_10, %c0_11], %37 {strides = array<i32>} : memref<8x8x128xf32, #tpu.memory_space<vmem>>, vector<1x8x128xf32>,
    %c1_i32 = arith.constant 1 : i32
    %38 = arith.index_cast %c1_i32 : i32 to index
    %c0_12 = arith.constant 0 : index
    %c0_13 = arith.constant 0 : index
    %39 = vector.load %arg2[%38, %c0_12, %c0_13] : memref<8x8x384xbf16, #tpu.memory_space<vmem>>, vector<1x8x384xbf16>
    %40 = vector.shape_cast %39 : vector<1x8x384xbf16> to vector<8x384xbf16>
    %41 = arith.truncf %33 : vector<8x128xf32> to vector<8x128xbf16>
    %c0_14 = arith.constant 0 : index
    %c0_15 = arith.constant 0 : index
    %42 = vector.load %arg3[%c0_14, %c0_15] : memref<128x384xbf16, #tpu.memory_space<vmem>>, vector<128x384xbf16>
    %cst_16 = arith.constant dense<0.000000e+00> : vector<8x384xf32>
    %43 = tpu.matmul %41, %42, %cst_16 {dimension_numbers = #tpu.dot_dimension_numbers<[1], [0], [0], [1], [0, 0, 1, 1], [], []>} : vector<8x128xbf16>, vector<128x384xbf16>, vector<8x384xf32> -> vector<8x384xf32>
    %44 = vector.extract_strided_slice %40 {offsets = [0, 0], sizes = [8, 256], strides = [1, 1]} : vector<8x384xbf16> to vector<8x256xbf16>
    %45 = arith.extf %44 : vector<8x256xbf16> to vector<8x256xf32>
    %46 = vector.extract_strided_slice %43 {offsets = [0, 0], sizes = [8, 256], strides = [1, 1]} : vector<8x384xf32> to vector<8x256xf32>
    %47 = arith.addf %45, %46 : vector<8x256xf32>
    %48 = arith.negf %47 : vector<8x256xf32>
    %49 = math.exp %48 : vector<8x256xf32>
    %cst_17 = arith.constant 1.000000e+00 : f32
    %50 = vector.broadcast %cst_17 : f32 to vector<8x256xf32>
    %51 = arith.addf %50, %49 : vector<8x256xf32>
    %52 = arith.divf %50, %51 : vector<8x256xf32>
    %53 = vector.extract_strided_slice %52 {offsets = [0, 0], sizes = [8, 128], strides = [1, 1]} : vector<8x256xf32> to vector<8x128xf32>
    %54 = vector.extract_strided_slice %52 {offsets = [0, 128], sizes = [8, 128], strides = [1, 1]} : vector<8x256xf32> to vector<8x128xf32>
    %55 = vector.extract_strided_slice %40 {offsets = [0, 256], sizes = [8, 128], strides = [1, 1]} : vector<8x384xbf16> to vector<8x128xbf16>
    %56 = arith.extf %55 : vector<8x128xbf16> to vector<8x128xf32>
    %57 = vector.extract_strided_slice %43 {offsets = [0, 256], sizes = [8, 128], strides = [1, 1]} : vector<8x384xf32> to vector<8x128xf32>
    %58 = arith.addf %57, %5 : vector<8x128xf32>
    %59 = arith.mulf %53, %58 : vector<8x128xf32>
    %60 = arith.addf %56, %59 : vector<8x128xf32>
    %61 = math.tanh %60 : vector<8x128xf32>
    %62 = arith.subf %33, %61 : vector<8x128xf32>
    %63 = arith.mulf %54, %62 : vector<8x128xf32>
    %64 = arith.addf %61, %63 : vector<8x128xf32>
    %65 = arith.index_cast %c1_i32 : i32 to index
    %c0_18 = arith.constant 0 : index
    %c0_19 = arith.constant 0 : index
    %66 = vector.load %arg6[%65, %c0_18, %c0_19] : memref<8x8x128xf32, #tpu.memory_space<vmem>>, vector<1x8x128xf32>
    %67 = vector.shape_cast %66 : vector<1x8x128xf32> to vector<8x128xf32>
    %68 = vector.shape_cast %64 : vector<8x128xf32> to vector<1x8x128xf32>
    tpu.vector_store %arg6[%65, %c0_18, %c0_19], %68 {strides = array<i32>} : memref<8x8x128xf32, #tpu.memory_space<vmem>>, vector<1x8x128xf32>,
    %c2_i32 = arith.constant 2 : i32
    %69 = arith.index_cast %c2_i32 : i32 to index
    %c0_20 = arith.constant 0 : index
    %c0_21 = arith.constant 0 : index
    %70 = vector.load %arg2[%69, %c0_20, %c0_21] : memref<8x8x384xbf16, #tpu.memory_space<vmem>>, vector<1x8x384xbf16>
    %71 = vector.shape_cast %70 : vector<1x8x384xbf16> to vector<8x384xbf16>
    %72 = arith.truncf %64 : vector<8x128xf32> to vector<8x128xbf16>
    %c0_22 = arith.constant 0 : index
    %c0_23 = arith.constant 0 : index
    %73 = vector.load %arg3[%c0_22, %c0_23] : memref<128x384xbf16, #tpu.memory_space<vmem>>, vector<128x384xbf16>
    %cst_24 = arith.constant dense<0.000000e+00> : vector<8x384xf32>
    %74 = tpu.matmul %72, %73, %cst_24 {dimension_numbers = #tpu.dot_dimension_numbers<[1], [0], [0], [1], [0, 0, 1, 1], [], []>} : vector<8x128xbf16>, vector<128x384xbf16>, vector<8x384xf32> -> vector<8x384xf32>
    %75 = vector.extract_strided_slice %71 {offsets = [0, 0], sizes = [8, 256], strides = [1, 1]} : vector<8x384xbf16> to vector<8x256xbf16>
    %76 = arith.extf %75 : vector<8x256xbf16> to vector<8x256xf32>
    %77 = vector.extract_strided_slice %74 {offsets = [0, 0], sizes = [8, 256], strides = [1, 1]} : vector<8x384xf32> to vector<8x256xf32>
    %78 = arith.addf %76, %77 : vector<8x256xf32>
    %79 = arith.negf %78 : vector<8x256xf32>
    %80 = math.exp %79 : vector<8x256xf32>
    %cst_25 = arith.constant 1.000000e+00 : f32
    %81 = vector.broadcast %cst_25 : f32 to vector<8x256xf32>
    %82 = arith.addf %81, %80 : vector<8x256xf32>
    %83 = arith.divf %81, %82 : vector<8x256xf32>
    %84 = vector.extract_strided_slice %83 {offsets = [0, 0], sizes = [8, 128], strides = [1, 1]} : vector<8x256xf32> to vector<8x128xf32>
    %85 = vector.extract_strided_slice %83 {offsets = [0, 128], sizes = [8, 128], strides = [1, 1]} : vector<8x256xf32> to vector<8x128xf32>
    %86 = vector.extract_strided_slice %71 {offsets = [0, 256], sizes = [8, 128], strides = [1, 1]} : vector<8x384xbf16> to vector<8x128xbf16>
    %87 = arith.extf %86 : vector<8x128xbf16> to vector<8x128xf32>
    %88 = vector.extract_strided_slice %74 {offsets = [0, 256], sizes = [8, 128], strides = [1, 1]} : vector<8x384xf32> to vector<8x128xf32>
    %89 = arith.addf %88, %5 : vector<8x128xf32>
    %90 = arith.mulf %84, %89 : vector<8x128xf32>
    %91 = arith.addf %87, %90 : vector<8x128xf32>
    %92 = math.tanh %91 : vector<8x128xf32>
    %93 = arith.subf %64, %92 : vector<8x128xf32>
    %94 = arith.mulf %85, %93 : vector<8x128xf32>
    %95 = arith.addf %92, %94 : vector<8x128xf32>
    %96 = arith.index_cast %c2_i32 : i32 to index
    %c0_26 = arith.constant 0 : index
    %c0_27 = arith.constant 0 : index
    %97 = vector.load %arg6[%96, %c0_26, %c0_27] : memref<8x8x128xf32, #tpu.memory_space<vmem>>, vector<1x8x128xf32>
    %98 = vector.shape_cast %97 : vector<1x8x128xf32> to vector<8x128xf32>
    %99 = vector.shape_cast %95 : vector<8x128xf32> to vector<1x8x128xf32>
    tpu.vector_store %arg6[%96, %c0_26, %c0_27], %99 {strides = array<i32>} : memref<8x8x128xf32, #tpu.memory_space<vmem>>, vector<1x8x128xf32>,
    %c3_i32 = arith.constant 3 : i32
    %100 = arith.index_cast %c3_i32 : i32 to index
    %c0_28 = arith.constant 0 : index
    %c0_29 = arith.constant 0 : index
    %101 = vector.load %arg2[%100, %c0_28, %c0_29] : memref<8x8x384xbf16, #tpu.memory_space<vmem>>, vector<1x8x384xbf16>
    %102 = vector.shape_cast %101 : vector<1x8x384xbf16> to vector<8x384xbf16>
    %103 = arith.truncf %95 : vector<8x128xf32> to vector<8x128xbf16>
    %c0_30 = arith.constant 0 : index
    %c0_31 = arith.constant 0 : index
    %104 = vector.load %arg3[%c0_30, %c0_31] : memref<128x384xbf16, #tpu.memory_space<vmem>>, vector<128x384xbf16>
    %cst_32 = arith.constant dense<0.000000e+00> : vector<8x384xf32>
    %105 = tpu.matmul %103, %104, %cst_32 {dimension_numbers = #tpu.dot_dimension_numbers<[1], [0], [0], [1], [0, 0, 1, 1], [], []>} : vector<8x128xbf16>, vector<128x384xbf16>, vector<8x384xf32> -> vector<8x384xf32>
    %106 = vector.extract_strided_slice %102 {offsets = [0, 0], sizes = [8, 256], strides = [1, 1]} : vector<8x384xbf16> to vector<8x256xbf16>
    %107 = arith.extf %106 : vector<8x256xbf16> to vector<8x256xf32>
    %108 = vector.extract_strided_slice %105 {offsets = [0, 0], sizes = [8, 256], strides = [1, 1]} : vector<8x384xf32> to vector<8x256xf32>
    %109 = arith.addf %107, %108 : vector<8x256xf32>
    %110 = arith.negf %109 : vector<8x256xf32>
    %111 = math.exp %110 : vector<8x256xf32>
    %cst_33 = arith.constant 1.000000e+00 : f32
    %112 = vector.broadcast %cst_33 : f32 to vector<8x256xf32>
    %113 = arith.addf %112, %111 : vector<8x256xf32>
    %114 = arith.divf %112, %113 : vector<8x256xf32>
    %115 = vector.extract_strided_slice %114 {offsets = [0, 0], sizes = [8, 128], strides = [1, 1]} : vector<8x256xf32> to vector<8x128xf32>
    %116 = vector.extract_strided_slice %114 {offsets = [0, 128], sizes = [8, 128], strides = [1, 1]} : vector<8x256xf32> to vector<8x128xf32>
    %117 = vector.extract_strided_slice %102 {offsets = [0, 256], sizes = [8, 128], strides = [1, 1]} : vector<8x384xbf16> to vector<8x128xbf16>
    %118 = arith.extf %117 : vector<8x128xbf16> to vector<8x128xf32>
    %119 = vector.extract_strided_slice %105 {offsets = [0, 256], sizes = [8, 128], strides = [1, 1]} : vector<8x384xf32> to vector<8x128xf32>
    %120 = arith.addf %119, %5 : vector<8x128xf32>
    %121 = arith.mulf %115, %120 : vector<8x128xf32>
    %122 = arith.addf %118, %121 : vector<8x128xf32>
    %123 = math.tanh %122 : vector<8x128xf32>
    %124 = arith.subf %95, %123 : vector<8x128xf32>
    %125 = arith.mulf %116, %124 : vector<8x128xf32>
    %126 = arith.addf %123, %125 : vector<8x128xf32>
    %127 = arith.index_cast %c3_i32 : i32 to index
    %c0_34 = arith.constant 0 : index
    %c0_35 = arith.constant 0 : index
    %128 = vector.load %arg6[%127, %c0_34, %c0_35] : memref<8x8x128xf32, #tpu.memory_space<vmem>>, vector<1x8x128xf32>
    %129 = vector.shape_cast %128 : vector<1x8x128xf32> to vector<8x128xf32>
    %130 = vector.shape_cast %126 : vector<8x128xf32> to vector<1x8x128xf32>
    tpu.vector_store %arg6[%127, %c0_34, %c0_35], %130 {strides = array<i32>} : memref<8x8x128xf32, #tpu.memory_space<vmem>>, vector<1x8x128xf32>,
    %c4_i32 = arith.constant 4 : i32
    %131 = arith.index_cast %c4_i32 : i32 to index
    %c0_36 = arith.constant 0 : index
    %c0_37 = arith.constant 0 : index
    %132 = vector.load %arg2[%131, %c0_36, %c0_37] : memref<8x8x384xbf16, #tpu.memory_space<vmem>>, vector<1x8x384xbf16>
    %133 = vector.shape_cast %132 : vector<1x8x384xbf16> to vector<8x384xbf16>
    %134 = arith.truncf %126 : vector<8x128xf32> to vector<8x128xbf16>
    %c0_38 = arith.constant 0 : index
    %c0_39 = arith.constant 0 : index
    %135 = vector.load %arg3[%c0_38, %c0_39] : memref<128x384xbf16, #tpu.memory_space<vmem>>, vector<128x384xbf16>
    %cst_40 = arith.constant dense<0.000000e+00> : vector<8x384xf32>
    %136 = tpu.matmul %134, %135, %cst_40 {dimension_numbers = #tpu.dot_dimension_numbers<[1], [0], [0], [1], [0, 0, 1, 1], [], []>} : vector<8x128xbf16>, vector<128x384xbf16>, vector<8x384xf32> -> vector<8x384xf32>
    %137 = vector.extract_strided_slice %133 {offsets = [0, 0], sizes = [8, 256], strides = [1, 1]} : vector<8x384xbf16> to vector<8x256xbf16>
    %138 = arith.extf %137 : vector<8x256xbf16> to vector<8x256xf32>
    %139 = vector.extract_strided_slice %136 {offsets = [0, 0], sizes = [8, 256], strides = [1, 1]} : vector<8x384xf32> to vector<8x256xf32>
    %140 = arith.addf %138, %139 : vector<8x256xf32>
    %141 = arith.negf %140 : vector<8x256xf32>
    %142 = math.exp %141 : vector<8x256xf32>
    %cst_41 = arith.constant 1.000000e+00 : f32
    %143 = vector.broadcast %cst_41 : f32 to vector<8x256xf32>
    %144 = arith.addf %143, %142 : vector<8x256xf32>
    %145 = arith.divf %143, %144 : vector<8x256xf32>
    %146 = vector.extract_strided_slice %145 {offsets = [0, 0], sizes = [8, 128], strides = [1, 1]} : vector<8x256xf32> to vector<8x128xf32>
    %147 = vector.extract_strided_slice %145 {offsets = [0, 128], sizes = [8, 128], strides = [1, 1]} : vector<8x256xf32> to vector<8x128xf32>
    %148 = vector.extract_strided_slice %133 {offsets = [0, 256], sizes = [8, 128], strides = [1, 1]} : vector<8x384xbf16> to vector<8x128xbf16>
    %149 = arith.extf %148 : vector<8x128xbf16> to vector<8x128xf32>
    %150 = vector.extract_strided_slice %136 {offsets = [0, 256], sizes = [8, 128], strides = [1, 1]} : vector<8x384xf32> to vector<8x128xf32>
    %151 = arith.addf %150, %5 : vector<8x128xf32>
    %152 = arith.mulf %146, %151 : vector<8x128xf32>
    %153 = arith.addf %149, %152 : vector<8x128xf32>
    %154 = math.tanh %153 : vector<8x128xf32>
    %155 = arith.subf %126, %154 : vector<8x128xf32>
    %156 = arith.mulf %147, %155 : vector<8x128xf32>
    %157 = arith.addf %154, %156 : vector<8x128xf32>
    %158 = arith.index_cast %c4_i32 : i32 to index
    %c0_42 = arith.constant 0 : index
    %c0_43 = arith.constant 0 : index
    %159 = vector.load %arg6[%158, %c0_42, %c0_43] : memref<8x8x128xf32, #tpu.memory_space<vmem>>, vector<1x8x128xf32>
    %160 = vector.shape_cast %159 : vector<1x8x128xf32> to vector<8x128xf32>
    %161 = vector.shape_cast %157 : vector<8x128xf32> to vector<1x8x128xf32>
    tpu.vector_store %arg6[%158, %c0_42, %c0_43], %161 {strides = array<i32>} : memref<8x8x128xf32, #tpu.memory_space<vmem>>, vector<1x8x128xf32>,
    %c5_i32 = arith.constant 5 : i32
    %162 = arith.index_cast %c5_i32 : i32 to index
    %c0_44 = arith.constant 0 : index
    %c0_45 = arith.constant 0 : index
    %163 = vector.load %arg2[%162, %c0_44, %c0_45] : memref<8x8x384xbf16, #tpu.memory_space<vmem>>, vector<1x8x384xbf16>
    %164 = vector.shape_cast %163 : vector<1x8x384xbf16> to vector<8x384xbf16>
    %165 = arith.truncf %157 : vector<8x128xf32> to vector<8x128xbf16>
    %c0_46 = arith.constant 0 : index
    %c0_47 = arith.constant 0 : index
    %166 = vector.load %arg3[%c0_46, %c0_47] : memref<128x384xbf16, #tpu.memory_space<vmem>>, vector<128x384xbf16>
    %cst_48 = arith.constant dense<0.000000e+00> : vector<8x384xf32>
    %167 = tpu.matmul %165, %166, %cst_48 {dimension_numbers = #tpu.dot_dimension_numbers<[1], [0], [0], [1], [0, 0, 1, 1], [], []>} : vector<8x128xbf16>, vector<128x384xbf16>, vector<8x384xf32> -> vector<8x384xf32>
    %168 = vector.extract_strided_slice %164 {offsets = [0, 0], sizes = [8, 256], strides = [1, 1]} : vector<8x384xbf16> to vector<8x256xbf16>
    %169 = arith.extf %168 : vector<8x256xbf16> to vector<8x256xf32>
    %170 = vector.extract_strided_slice %167 {offsets = [0, 0], sizes = [8, 256], strides = [1, 1]} : vector<8x384xf32> to vector<8x256xf32>
    %171 = arith.addf %169, %170 : vector<8x256xf32>
    %172 = arith.negf %171 : vector<8x256xf32>
    %173 = math.exp %172 : vector<8x256xf32>
    %cst_49 = arith.constant 1.000000e+00 : f32
    %174 = vector.broadcast %cst_49 : f32 to vector<8x256xf32>
    %175 = arith.addf %174, %173 : vector<8x256xf32>
    %176 = arith.divf %174, %175 : vector<8x256xf32>
    %177 = vector.extract_strided_slice %176 {offsets = [0, 0], sizes = [8, 128], strides = [1, 1]} : vector<8x256xf32> to vector<8x128xf32>
    %178 = vector.extract_strided_slice %176 {offsets = [0, 128], sizes = [8, 128], strides = [1, 1]} : vector<8x256xf32> to vector<8x128xf32>
    %179 = vector.extract_strided_slice %164 {offsets = [0, 256], sizes = [8, 128], strides = [1, 1]} : vector<8x384xbf16> to vector<8x128xbf16>
    %180 = arith.extf %179 : vector<8x128xbf16> to vector<8x128xf32>
    %181 = vector.extract_strided_slice %167 {offsets = [0, 256], sizes = [8, 128], strides = [1, 1]} : vector<8x384xf32> to vector<8x128xf32>
    %182 = arith.addf %181, %5 : vector<8x128xf32>
    %183 = arith.mulf %177, %182 : vector<8x128xf32>
    %184 = arith.addf %180, %183 : vector<8x128xf32>
    %185 = math.tanh %184 : vector<8x128xf32>
    %186 = arith.subf %157, %185 : vector<8x128xf32>
    %187 = arith.mulf %178, %186 : vector<8x128xf32>
    %188 = arith.addf %185, %187 : vector<8x128xf32>
    %189 = arith.index_cast %c5_i32 : i32 to index
    %c0_50 = arith.constant 0 : index
    %c0_51 = arith.constant 0 : index
    %190 = vector.load %arg6[%189, %c0_50, %c0_51] : memref<8x8x128xf32, #tpu.memory_space<vmem>>, vector<1x8x128xf32>
    %191 = vector.shape_cast %190 : vector<1x8x128xf32> to vector<8x128xf32>
    %192 = vector.shape_cast %188 : vector<8x128xf32> to vector<1x8x128xf32>
    tpu.vector_store %arg6[%189, %c0_50, %c0_51], %192 {strides = array<i32>} : memref<8x8x128xf32, #tpu.memory_space<vmem>>, vector<1x8x128xf32>,
    %c6_i32 = arith.constant 6 : i32
    %193 = arith.index_cast %c6_i32 : i32 to index
    %c0_52 = arith.constant 0 : index
    %c0_53 = arith.constant 0 : index
    %194 = vector.load %arg2[%193, %c0_52, %c0_53] : memref<8x8x384xbf16, #tpu.memory_space<vmem>>, vector<1x8x384xbf16>
    %195 = vector.shape_cast %194 : vector<1x8x384xbf16> to vector<8x384xbf16>
    %196 = arith.truncf %188 : vector<8x128xf32> to vector<8x128xbf16>
    %c0_54 = arith.constant 0 : index
    %c0_55 = arith.constant 0 : index
    %197 = vector.load %arg3[%c0_54, %c0_55] : memref<128x384xbf16, #tpu.memory_space<vmem>>, vector<128x384xbf16>
    %cst_56 = arith.constant dense<0.000000e+00> : vector<8x384xf32>
    %198 = tpu.matmul %196, %197, %cst_56 {dimension_numbers = #tpu.dot_dimension_numbers<[1], [0], [0], [1], [0, 0, 1, 1], [], []>} : vector<8x128xbf16>, vector<128x384xbf16>, vector<8x384xf32> -> vector<8x384xf32>
    %199 = vector.extract_strided_slice %195 {offsets = [0, 0], sizes = [8, 256], strides = [1, 1]} : vector<8x384xbf16> to vector<8x256xbf16>
    %200 = arith.extf %199 : vector<8x256xbf16> to vector<8x256xf32>
    %201 = vector.extract_strided_slice %198 {offsets = [0, 0], sizes = [8, 256], strides = [1, 1]} : vector<8x384xf32> to vector<8x256xf32>
    %202 = arith.addf %200, %201 : vector<8x256xf32>
    %203 = arith.negf %202 : vector<8x256xf32>
    %204 = math.exp %203 : vector<8x256xf32>
    %cst_57 = arith.constant 1.000000e+00 : f32
    %205 = vector.broadcast %cst_57 : f32 to vector<8x256xf32>
    %206 = arith.addf %205, %204 : vector<8x256xf32>
    %207 = arith.divf %205, %206 : vector<8x256xf32>
    %208 = vector.extract_strided_slice %207 {offsets = [0, 0], sizes = [8, 128], strides = [1, 1]} : vector<8x256xf32> to vector<8x128xf32>
    %209 = vector.extract_strided_slice %207 {offsets = [0, 128], sizes = [8, 128], strides = [1, 1]} : vector<8x256xf32> to vector<8x128xf32>
    %210 = vector.extract_strided_slice %195 {offsets = [0, 256], sizes = [8, 128], strides = [1, 1]} : vector<8x384xbf16> to vector<8x128xbf16>
    %211 = arith.extf %210 : vector<8x128xbf16> to vector<8x128xf32>
    %212 = vector.extract_strided_slice %198 {offsets = [0, 256], sizes = [8, 128], strides = [1, 1]} : vector<8x384xf32> to vector<8x128xf32>
    %213 = arith.addf %212, %5 : vector<8x128xf32>
    %214 = arith.mulf %208, %213 : vector<8x128xf32>
    %215 = arith.addf %211, %214 : vector<8x128xf32>
    %216 = math.tanh %215 : vector<8x128xf32>
    %217 = arith.subf %188, %216 : vector<8x128xf32>
    %218 = arith.mulf %209, %217 : vector<8x128xf32>
    %219 = arith.addf %216, %218 : vector<8x128xf32>
    %220 = arith.index_cast %c6_i32 : i32 to index
    %c0_58 = arith.constant 0 : index
    %c0_59 = arith.constant 0 : index
    %221 = vector.load %arg6[%220, %c0_58, %c0_59] : memref<8x8x128xf32, #tpu.memory_space<vmem>>, vector<1x8x128xf32>
    %222 = vector.shape_cast %221 : vector<1x8x128xf32> to vector<8x128xf32>
    %223 = vector.shape_cast %219 : vector<8x128xf32> to vector<1x8x128xf32>
    tpu.vector_store %arg6[%220, %c0_58, %c0_59], %223 {strides = array<i32>} : memref<8x8x128xf32, #tpu.memory_space<vmem>>, vector<1x8x128xf32>,
    %c7_i32 = arith.constant 7 : i32
    %224 = arith.index_cast %c7_i32 : i32 to index
    %c0_60 = arith.constant 0 : index
    %c0_61 = arith.constant 0 : index
    %225 = vector.load %arg2[%224, %c0_60, %c0_61] : memref<8x8x384xbf16, #tpu.memory_space<vmem>>, vector<1x8x384xbf16>
    %226 = vector.shape_cast %225 : vector<1x8x384xbf16> to vector<8x384xbf16>
    %227 = arith.truncf %219 : vector<8x128xf32> to vector<8x128xbf16>
    %c0_62 = arith.constant 0 : index
    %c0_63 = arith.constant 0 : index
    %228 = vector.load %arg3[%c0_62, %c0_63] : memref<128x384xbf16, #tpu.memory_space<vmem>>, vector<128x384xbf16>
    %cst_64 = arith.constant dense<0.000000e+00> : vector<8x384xf32>
    %229 = tpu.matmul %227, %228, %cst_64 {dimension_numbers = #tpu.dot_dimension_numbers<[1], [0], [0], [1], [0, 0, 1, 1], [], []>} : vector<8x128xbf16>, vector<128x384xbf16>, vector<8x384xf32> -> vector<8x384xf32>
    %230 = vector.extract_strided_slice %226 {offsets = [0, 0], sizes = [8, 256], strides = [1, 1]} : vector<8x384xbf16> to vector<8x256xbf16>
    %231 = arith.extf %230 : vector<8x256xbf16> to vector<8x256xf32>
    %232 = vector.extract_strided_slice %229 {offsets = [0, 0], sizes = [8, 256], strides = [1, 1]} : vector<8x384xf32> to vector<8x256xf32>
    %233 = arith.addf %231, %232 : vector<8x256xf32>
    %234 = arith.negf %233 : vector<8x256xf32>
    %235 = math.exp %234 : vector<8x256xf32>
    %cst_65 = arith.constant 1.000000e+00 : f32
    %236 = vector.broadcast %cst_65 : f32 to vector<8x256xf32>
    %237 = arith.addf %236, %235 : vector<8x256xf32>
    %238 = arith.divf %236, %237 : vector<8x256xf32>
    %239 = vector.extract_strided_slice %238 {offsets = [0, 0], sizes = [8, 128], strides = [1, 1]} : vector<8x256xf32> to vector<8x128xf32>
    %240 = vector.extract_strided_slice %238 {offsets = [0, 128], sizes = [8, 128], strides = [1, 1]} : vector<8x256xf32> to vector<8x128xf32>
    %241 = vector.extract_strided_slice %226 {offsets = [0, 256], sizes = [8, 128], strides = [1, 1]} : vector<8x384xbf16> to vector<8x128xbf16>
    %242 = arith.extf %241 : vector<8x128xbf16> to vector<8x128xf32>
    %243 = vector.extract_strided_slice %229 {offsets = [0, 256], sizes = [8, 128], strides = [1, 1]} : vector<8x384xf32> to vector<8x128xf32>
    %244 = arith.addf %243, %5 : vector<8x128xf32>
    %245 = arith.mulf %239, %244 : vector<8x128xf32>
    %246 = arith.addf %242, %245 : vector<8x128xf32>
    %247 = math.tanh %246 : vector<8x128xf32>
    %248 = arith.subf %219, %247 : vector<8x128xf32>
    %249 = arith.mulf %240, %248 : vector<8x128xf32>
    %250 = arith.addf %247, %249 : vector<8x128xf32>
    %251 = arith.index_cast %c7_i32 : i32 to index
    %c0_66 = arith.constant 0 : index
    %c0_67 = arith.constant 0 : index
    %252 = vector.load %arg6[%251, %c0_66, %c0_67] : memref<8x8x128xf32, #tpu.memory_space<vmem>>, vector<1x8x128xf32>
    %253 = vector.shape_cast %252 : vector<1x8x128xf32> to vector<8x128xf32>
    %254 = vector.shape_cast %250 : vector<8x128xf32> to vector<1x8x128xf32>
    tpu.vector_store %arg6[%251, %c0_66, %c0_67], %254 {strides = array<i32>} : memref<8x8x128xf32, #tpu.memory_space<vmem>>, vector<1x8x128xf32>,
    %c8_i32 = arith.constant 8 : i32
    %c0_68 = arith.constant 0 : index
    %c0_69 = arith.constant 0 : index
    %255 = vector.load %arg8[%c0_68, %c0_69] : memref<8x128xf32, #tpu.memory_space<vmem>>, vector<8x128xf32>
    tpu.vector_store %arg8[%c0_68, %c0_69], %250 {strides = array<i32>} : memref<8x128xf32, #tpu.memory_space<vmem>>, vector<8x128xf32>,
    %c0_i32_70 = arith.constant 0 : i32
    %256 = arith.cmpi eq, %arg1, %c0_i32_70 : i32
    %257 = arith.extui %256 : i1 to i32
    %c0_i32_71 = arith.constant 0 : i32
    %258 = arith.cmpi ne, %257, %c0_i32_71 : i32
    scf.if %258 {
      %c0_72 = arith.constant 0 : index
      %c0_73 = arith.constant 0 : index
      %259 = vector.load %arg7[%c0_72, %c0_73] : memref<8x128xf32, #tpu.memory_space<vmem>>, vector<8x128xf32>
      tpu.vector_store %arg7[%c0_72, %c0_73], %250 {strides = array<i32>} : memref<8x128xf32, #tpu.memory_space<vmem>>, vector<8x128xf32>,
    } else {
    }
    return
  }
  func.func @transform_0(%arg0: i32, %arg1: i32) -> (i32, i32, i32) {
    %c0_i32 = arith.constant 0 : i32
    %c0_i32_0 = arith.constant 0 : i32
    return %arg1, %arg0, %c0_i32 : i32, i32, i32
  }
  func.func @transform_1(%arg0: i32, %arg1: i32) -> (i32, i32) {
    %c0_i32 = arith.constant 0 : i32
    %c0_i32_0 = arith.constant 0 : i32
    %c0_i32_1 = arith.constant 0 : i32
    return %c0_i32, %c0_i32_0 : i32, i32
  }
  func.func @transform_2(%arg0: i32, %arg1: i32) -> (i32, i32) {
    %c0_i32 = arith.constant 0 : i32
    %c0_i32_0 = arith.constant 0 : i32
    %c0_i32_1 = arith.constant 0 : i32
    return %c0_i32, %c0_i32_0 : i32, i32
  }
  func.func @transform_3(%arg0: i32, %arg1: i32) -> (i32, i32) {
    %c0_i32 = arith.constant 0 : i32
    %c0_i32_0 = arith.constant 0 : i32
    return %arg0, %c0_i32 : i32, i32
  }
  func.func @transform_4(%arg0: i32, %arg1: i32) -> (i32, i32, i32) {
    %c0_i32 = arith.constant 0 : i32
    %c0_i32_0 = arith.constant 0 : i32
    return %arg1, %arg0, %c0_i32 : i32, i32, i32
  }
  func.func @transform_5(%arg0: i32, %arg1: i32) -> (i32, i32) {
    %c0_i32 = arith.constant 0 : i32
    %c0_i32_0 = arith.constant 0 : i32
    return %arg0, %c0_i32 : i32, i32
  }
}

module attributes {stable_mosaic.version = 11 : i64} {
  func.func @_gru_recurrence_kernel(%arg0: i32, %arg1: i32, %arg2: memref<8x8x384xbf16, #tpu.memory_space<vmem>>, %arg3: memref<128x384xbf16, #tpu.memory_space<vmem>>, %arg4: memref<1x128xf32, #tpu.memory_space<vmem>>, %arg5: memref<8x128xf32, #tpu.memory_space<vmem>>, %arg6: memref<8x8x128xbf16, #tpu.memory_space<vmem>>, %arg7: memref<8x128xf32, #tpu.memory_space<vmem>>, %arg8: memref<8x128xf32, #tpu.memory_space<vmem>>) attributes {dimension_semantics = [#tpu.dimension_semantics<parallel>, #tpu.dimension_semantics<arbitrary>], iteration_bounds = array<i64: 1, 1>, scalar_prefetch = 0 : i64, scratch_operands = 1 : i64, tpu.core_type = #tpu.core_type<tc>, window_params = [{transform_indices = @transform_0, window_bounds = array<i64: 8, 8, 384>}, {pipeline_mode = #tpu.pipeline_mode<synchronous>, transform_indices = @transform_1, window_bounds = array<i64: 128, 384>}, {pipeline_mode = #tpu.pipeline_mode<synchronous>, transform_indices = @transform_2, window_bounds = array<i64: 1, 128>}, {transform_indices = @transform_3, window_bounds = array<i64: 8, 128>}, {transform_indices = @transform_4, window_bounds = array<i64: 8, 8, 128>}, {transform_indices = @transform_5, window_bounds = array<i64: 8, 128>}]} {
    %c0_i32 = arith.constant 0 : i32
    %0 = arith.cmpi eq, %arg1, %c0_i32 : i32
    %1 = arith.extui %0 : i1 to i32
    %c0_i32_0 = arith.constant 0 : i32
    %2 = arith.cmpi ne, %1, %c0_i32_0 : i32
    scf.if %2 {
      %c0_72 = arith.constant 0 : index
      %c0_73 = arith.constant 0 : index
      %267 = vector.load %arg5[%c0_72, %c0_73] : memref<8x128xf32, #tpu.memory_space<vmem>>, vector<8x128xf32>
      %c0_74 = arith.constant 0 : index
      %c0_75 = arith.constant 0 : index
      %268 = vector.load %arg8[%c0_74, %c0_75] : memref<8x128xf32, #tpu.memory_space<vmem>>, vector<8x128xf32>
      tpu.vector_store %arg8[%c0_74, %c0_75], %267 {strides = array<i32>} : memref<8x128xf32, #tpu.memory_space<vmem>>, vector<8x128xf32>,
    } else {
    }
    %c0 = arith.constant 0 : index
    %c0_1 = arith.constant 0 : index
    %3 = vector.load %arg4[%c0, %c0_1] : memref<1x128xf32, #tpu.memory_space<vmem>>, vector<1x128xf32>
    %4 = vector.shape_cast %3 : vector<1x128xf32> to vector<1x128xf32>
    %5 = vector.broadcast %4 : vector<1x128xf32> to vector<8x128xf32>
    %c0_2 = arith.constant 0 : index
    %c0_3 = arith.constant 0 : index
    %6 = vector.load %arg8[%c0_2, %c0_3] : memref<8x128xf32, #tpu.memory_space<vmem>>, vector<8x128xf32>
    %c0_i32_4 = arith.constant 0 : i32
    %7 = arith.index_cast %c0_i32_4 : i32 to index
    %c0_5 = arith.constant 0 : index
    %c0_6 = arith.constant 0 : index
    %8 = vector.load %arg2[%7, %c0_5, %c0_6] : memref<8x8x384xbf16, #tpu.memory_space<vmem>>, vector<1x8x384xbf16>
    %9 = vector.shape_cast %8 : vector<1x8x384xbf16> to vector<8x384xbf16>
    %10 = arith.truncf %6 : vector<8x128xf32> to vector<8x128xbf16>
    %c0_7 = arith.constant 0 : index
    %c0_8 = arith.constant 0 : index
    %11 = vector.load %arg3[%c0_7, %c0_8] : memref<128x384xbf16, #tpu.memory_space<vmem>>, vector<128x384xbf16>
    %cst = arith.constant dense<0.000000e+00> : vector<8x384xf32>
    %12 = tpu.matmul %10, %11, %cst {dimension_numbers = #tpu.dot_dimension_numbers<[1], [0], [0], [1], [0, 0, 1, 1], [], []>} : vector<8x128xbf16>, vector<128x384xbf16>, vector<8x384xf32> -> vector<8x384xf32>
    %13 = vector.extract_strided_slice %9 {offsets = [0, 0], sizes = [8, 256], strides = [1, 1]} : vector<8x384xbf16> to vector<8x256xbf16>
    %14 = arith.extf %13 : vector<8x256xbf16> to vector<8x256xf32>
    %15 = vector.extract_strided_slice %12 {offsets = [0, 0], sizes = [8, 256], strides = [1, 1]} : vector<8x384xf32> to vector<8x256xf32>
    %16 = arith.addf %14, %15 : vector<8x256xf32>
    %17 = arith.negf %16 : vector<8x256xf32>
    %18 = math.exp %17 : vector<8x256xf32>
    %cst_9 = arith.constant 1.000000e+00 : f32
    %19 = vector.broadcast %cst_9 : f32 to vector<8x256xf32>
    %20 = arith.addf %19, %18 : vector<8x256xf32>
    %21 = arith.divf %19, %20 : vector<8x256xf32>
    %22 = vector.extract_strided_slice %21 {offsets = [0, 0], sizes = [8, 128], strides = [1, 1]} : vector<8x256xf32> to vector<8x128xf32>
    %23 = vector.extract_strided_slice %21 {offsets = [0, 128], sizes = [8, 128], strides = [1, 1]} : vector<8x256xf32> to vector<8x128xf32>
    %24 = vector.extract_strided_slice %9 {offsets = [0, 256], sizes = [8, 128], strides = [1, 1]} : vector<8x384xbf16> to vector<8x128xbf16>
    %25 = arith.extf %24 : vector<8x128xbf16> to vector<8x128xf32>
    %26 = vector.extract_strided_slice %12 {offsets = [0, 256], sizes = [8, 128], strides = [1, 1]} : vector<8x384xf32> to vector<8x128xf32>
    %27 = arith.addf %26, %5 : vector<8x128xf32>
    %28 = arith.mulf %22, %27 : vector<8x128xf32>
    %29 = arith.addf %25, %28 : vector<8x128xf32>
    %30 = math.tanh %29 : vector<8x128xf32>
    %31 = arith.subf %6, %30 : vector<8x128xf32>
    %32 = arith.mulf %23, %31 : vector<8x128xf32>
    %33 = arith.addf %30, %32 : vector<8x128xf32>
    %34 = arith.truncf %33 : vector<8x128xf32> to vector<8x128xbf16>
    %35 = arith.index_cast %c0_i32_4 : i32 to index
    %c0_10 = arith.constant 0 : index
    %c0_11 = arith.constant 0 : index
    %36 = vector.load %arg6[%35, %c0_10, %c0_11] : memref<8x8x128xbf16, #tpu.memory_space<vmem>>, vector<1x8x128xbf16>
    %37 = vector.shape_cast %36 : vector<1x8x128xbf16> to vector<8x128xbf16>
    %38 = vector.shape_cast %34 : vector<8x128xbf16> to vector<1x8x128xbf16>
    tpu.vector_store %arg6[%35, %c0_10, %c0_11], %38 {strides = array<i32>} : memref<8x8x128xbf16, #tpu.memory_space<vmem>>, vector<1x8x128xbf16>,
    %c1_i32 = arith.constant 1 : i32
    %39 = arith.index_cast %c1_i32 : i32 to index
    %c0_12 = arith.constant 0 : index
    %c0_13 = arith.constant 0 : index
    %40 = vector.load %arg2[%39, %c0_12, %c0_13] : memref<8x8x384xbf16, #tpu.memory_space<vmem>>, vector<1x8x384xbf16>
    %41 = vector.shape_cast %40 : vector<1x8x384xbf16> to vector<8x384xbf16>
    %42 = arith.truncf %33 : vector<8x128xf32> to vector<8x128xbf16>
    %c0_14 = arith.constant 0 : index
    %c0_15 = arith.constant 0 : index
    %43 = vector.load %arg3[%c0_14, %c0_15] : memref<128x384xbf16, #tpu.memory_space<vmem>>, vector<128x384xbf16>
    %cst_16 = arith.constant dense<0.000000e+00> : vector<8x384xf32>
    %44 = tpu.matmul %42, %43, %cst_16 {dimension_numbers = #tpu.dot_dimension_numbers<[1], [0], [0], [1], [0, 0, 1, 1], [], []>} : vector<8x128xbf16>, vector<128x384xbf16>, vector<8x384xf32> -> vector<8x384xf32>
    %45 = vector.extract_strided_slice %41 {offsets = [0, 0], sizes = [8, 256], strides = [1, 1]} : vector<8x384xbf16> to vector<8x256xbf16>
    %46 = arith.extf %45 : vector<8x256xbf16> to vector<8x256xf32>
    %47 = vector.extract_strided_slice %44 {offsets = [0, 0], sizes = [8, 256], strides = [1, 1]} : vector<8x384xf32> to vector<8x256xf32>
    %48 = arith.addf %46, %47 : vector<8x256xf32>
    %49 = arith.negf %48 : vector<8x256xf32>
    %50 = math.exp %49 : vector<8x256xf32>
    %cst_17 = arith.constant 1.000000e+00 : f32
    %51 = vector.broadcast %cst_17 : f32 to vector<8x256xf32>
    %52 = arith.addf %51, %50 : vector<8x256xf32>
    %53 = arith.divf %51, %52 : vector<8x256xf32>
    %54 = vector.extract_strided_slice %53 {offsets = [0, 0], sizes = [8, 128], strides = [1, 1]} : vector<8x256xf32> to vector<8x128xf32>
    %55 = vector.extract_strided_slice %53 {offsets = [0, 128], sizes = [8, 128], strides = [1, 1]} : vector<8x256xf32> to vector<8x128xf32>
    %56 = vector.extract_strided_slice %41 {offsets = [0, 256], sizes = [8, 128], strides = [1, 1]} : vector<8x384xbf16> to vector<8x128xbf16>
    %57 = arith.extf %56 : vector<8x128xbf16> to vector<8x128xf32>
    %58 = vector.extract_strided_slice %44 {offsets = [0, 256], sizes = [8, 128], strides = [1, 1]} : vector<8x384xf32> to vector<8x128xf32>
    %59 = arith.addf %58, %5 : vector<8x128xf32>
    %60 = arith.mulf %54, %59 : vector<8x128xf32>
    %61 = arith.addf %57, %60 : vector<8x128xf32>
    %62 = math.tanh %61 : vector<8x128xf32>
    %63 = arith.subf %33, %62 : vector<8x128xf32>
    %64 = arith.mulf %55, %63 : vector<8x128xf32>
    %65 = arith.addf %62, %64 : vector<8x128xf32>
    %66 = arith.truncf %65 : vector<8x128xf32> to vector<8x128xbf16>
    %67 = arith.index_cast %c1_i32 : i32 to index
    %c0_18 = arith.constant 0 : index
    %c0_19 = arith.constant 0 : index
    %68 = vector.load %arg6[%67, %c0_18, %c0_19] : memref<8x8x128xbf16, #tpu.memory_space<vmem>>, vector<1x8x128xbf16>
    %69 = vector.shape_cast %68 : vector<1x8x128xbf16> to vector<8x128xbf16>
    %70 = vector.shape_cast %66 : vector<8x128xbf16> to vector<1x8x128xbf16>
    tpu.vector_store %arg6[%67, %c0_18, %c0_19], %70 {strides = array<i32>} : memref<8x8x128xbf16, #tpu.memory_space<vmem>>, vector<1x8x128xbf16>,
    %c2_i32 = arith.constant 2 : i32
    %71 = arith.index_cast %c2_i32 : i32 to index
    %c0_20 = arith.constant 0 : index
    %c0_21 = arith.constant 0 : index
    %72 = vector.load %arg2[%71, %c0_20, %c0_21] : memref<8x8x384xbf16, #tpu.memory_space<vmem>>, vector<1x8x384xbf16>
    %73 = vector.shape_cast %72 : vector<1x8x384xbf16> to vector<8x384xbf16>
    %74 = arith.truncf %65 : vector<8x128xf32> to vector<8x128xbf16>
    %c0_22 = arith.constant 0 : index
    %c0_23 = arith.constant 0 : index
    %75 = vector.load %arg3[%c0_22, %c0_23] : memref<128x384xbf16, #tpu.memory_space<vmem>>, vector<128x384xbf16>
    %cst_24 = arith.constant dense<0.000000e+00> : vector<8x384xf32>
    %76 = tpu.matmul %74, %75, %cst_24 {dimension_numbers = #tpu.dot_dimension_numbers<[1], [0], [0], [1], [0, 0, 1, 1], [], []>} : vector<8x128xbf16>, vector<128x384xbf16>, vector<8x384xf32> -> vector<8x384xf32>
    %77 = vector.extract_strided_slice %73 {offsets = [0, 0], sizes = [8, 256], strides = [1, 1]} : vector<8x384xbf16> to vector<8x256xbf16>
    %78 = arith.extf %77 : vector<8x256xbf16> to vector<8x256xf32>
    %79 = vector.extract_strided_slice %76 {offsets = [0, 0], sizes = [8, 256], strides = [1, 1]} : vector<8x384xf32> to vector<8x256xf32>
    %80 = arith.addf %78, %79 : vector<8x256xf32>
    %81 = arith.negf %80 : vector<8x256xf32>
    %82 = math.exp %81 : vector<8x256xf32>
    %cst_25 = arith.constant 1.000000e+00 : f32
    %83 = vector.broadcast %cst_25 : f32 to vector<8x256xf32>
    %84 = arith.addf %83, %82 : vector<8x256xf32>
    %85 = arith.divf %83, %84 : vector<8x256xf32>
    %86 = vector.extract_strided_slice %85 {offsets = [0, 0], sizes = [8, 128], strides = [1, 1]} : vector<8x256xf32> to vector<8x128xf32>
    %87 = vector.extract_strided_slice %85 {offsets = [0, 128], sizes = [8, 128], strides = [1, 1]} : vector<8x256xf32> to vector<8x128xf32>
    %88 = vector.extract_strided_slice %73 {offsets = [0, 256], sizes = [8, 128], strides = [1, 1]} : vector<8x384xbf16> to vector<8x128xbf16>
    %89 = arith.extf %88 : vector<8x128xbf16> to vector<8x128xf32>
    %90 = vector.extract_strided_slice %76 {offsets = [0, 256], sizes = [8, 128], strides = [1, 1]} : vector<8x384xf32> to vector<8x128xf32>
    %91 = arith.addf %90, %5 : vector<8x128xf32>
    %92 = arith.mulf %86, %91 : vector<8x128xf32>
    %93 = arith.addf %89, %92 : vector<8x128xf32>
    %94 = math.tanh %93 : vector<8x128xf32>
    %95 = arith.subf %65, %94 : vector<8x128xf32>
    %96 = arith.mulf %87, %95 : vector<8x128xf32>
    %97 = arith.addf %94, %96 : vector<8x128xf32>
    %98 = arith.truncf %97 : vector<8x128xf32> to vector<8x128xbf16>
    %99 = arith.index_cast %c2_i32 : i32 to index
    %c0_26 = arith.constant 0 : index
    %c0_27 = arith.constant 0 : index
    %100 = vector.load %arg6[%99, %c0_26, %c0_27] : memref<8x8x128xbf16, #tpu.memory_space<vmem>>, vector<1x8x128xbf16>
    %101 = vector.shape_cast %100 : vector<1x8x128xbf16> to vector<8x128xbf16>
    %102 = vector.shape_cast %98 : vector<8x128xbf16> to vector<1x8x128xbf16>
    tpu.vector_store %arg6[%99, %c0_26, %c0_27], %102 {strides = array<i32>} : memref<8x8x128xbf16, #tpu.memory_space<vmem>>, vector<1x8x128xbf16>,
    %c3_i32 = arith.constant 3 : i32
    %103 = arith.index_cast %c3_i32 : i32 to index
    %c0_28 = arith.constant 0 : index
    %c0_29 = arith.constant 0 : index
    %104 = vector.load %arg2[%103, %c0_28, %c0_29] : memref<8x8x384xbf16, #tpu.memory_space<vmem>>, vector<1x8x384xbf16>
    %105 = vector.shape_cast %104 : vector<1x8x384xbf16> to vector<8x384xbf16>
    %106 = arith.truncf %97 : vector<8x128xf32> to vector<8x128xbf16>
    %c0_30 = arith.constant 0 : index
    %c0_31 = arith.constant 0 : index
    %107 = vector.load %arg3[%c0_30, %c0_31] : memref<128x384xbf16, #tpu.memory_space<vmem>>, vector<128x384xbf16>
    %cst_32 = arith.constant dense<0.000000e+00> : vector<8x384xf32>
    %108 = tpu.matmul %106, %107, %cst_32 {dimension_numbers = #tpu.dot_dimension_numbers<[1], [0], [0], [1], [0, 0, 1, 1], [], []>} : vector<8x128xbf16>, vector<128x384xbf16>, vector<8x384xf32> -> vector<8x384xf32>
    %109 = vector.extract_strided_slice %105 {offsets = [0, 0], sizes = [8, 256], strides = [1, 1]} : vector<8x384xbf16> to vector<8x256xbf16>
    %110 = arith.extf %109 : vector<8x256xbf16> to vector<8x256xf32>
    %111 = vector.extract_strided_slice %108 {offsets = [0, 0], sizes = [8, 256], strides = [1, 1]} : vector<8x384xf32> to vector<8x256xf32>
    %112 = arith.addf %110, %111 : vector<8x256xf32>
    %113 = arith.negf %112 : vector<8x256xf32>
    %114 = math.exp %113 : vector<8x256xf32>
    %cst_33 = arith.constant 1.000000e+00 : f32
    %115 = vector.broadcast %cst_33 : f32 to vector<8x256xf32>
    %116 = arith.addf %115, %114 : vector<8x256xf32>
    %117 = arith.divf %115, %116 : vector<8x256xf32>
    %118 = vector.extract_strided_slice %117 {offsets = [0, 0], sizes = [8, 128], strides = [1, 1]} : vector<8x256xf32> to vector<8x128xf32>
    %119 = vector.extract_strided_slice %117 {offsets = [0, 128], sizes = [8, 128], strides = [1, 1]} : vector<8x256xf32> to vector<8x128xf32>
    %120 = vector.extract_strided_slice %105 {offsets = [0, 256], sizes = [8, 128], strides = [1, 1]} : vector<8x384xbf16> to vector<8x128xbf16>
    %121 = arith.extf %120 : vector<8x128xbf16> to vector<8x128xf32>
    %122 = vector.extract_strided_slice %108 {offsets = [0, 256], sizes = [8, 128], strides = [1, 1]} : vector<8x384xf32> to vector<8x128xf32>
    %123 = arith.addf %122, %5 : vector<8x128xf32>
    %124 = arith.mulf %118, %123 : vector<8x128xf32>
    %125 = arith.addf %121, %124 : vector<8x128xf32>
    %126 = math.tanh %125 : vector<8x128xf32>
    %127 = arith.subf %97, %126 : vector<8x128xf32>
    %128 = arith.mulf %119, %127 : vector<8x128xf32>
    %129 = arith.addf %126, %128 : vector<8x128xf32>
    %130 = arith.truncf %129 : vector<8x128xf32> to vector<8x128xbf16>
    %131 = arith.index_cast %c3_i32 : i32 to index
    %c0_34 = arith.constant 0 : index
    %c0_35 = arith.constant 0 : index
    %132 = vector.load %arg6[%131, %c0_34, %c0_35] : memref<8x8x128xbf16, #tpu.memory_space<vmem>>, vector<1x8x128xbf16>
    %133 = vector.shape_cast %132 : vector<1x8x128xbf16> to vector<8x128xbf16>
    %134 = vector.shape_cast %130 : vector<8x128xbf16> to vector<1x8x128xbf16>
    tpu.vector_store %arg6[%131, %c0_34, %c0_35], %134 {strides = array<i32>} : memref<8x8x128xbf16, #tpu.memory_space<vmem>>, vector<1x8x128xbf16>,
    %c4_i32 = arith.constant 4 : i32
    %135 = arith.index_cast %c4_i32 : i32 to index
    %c0_36 = arith.constant 0 : index
    %c0_37 = arith.constant 0 : index
    %136 = vector.load %arg2[%135, %c0_36, %c0_37] : memref<8x8x384xbf16, #tpu.memory_space<vmem>>, vector<1x8x384xbf16>
    %137 = vector.shape_cast %136 : vector<1x8x384xbf16> to vector<8x384xbf16>
    %138 = arith.truncf %129 : vector<8x128xf32> to vector<8x128xbf16>
    %c0_38 = arith.constant 0 : index
    %c0_39 = arith.constant 0 : index
    %139 = vector.load %arg3[%c0_38, %c0_39] : memref<128x384xbf16, #tpu.memory_space<vmem>>, vector<128x384xbf16>
    %cst_40 = arith.constant dense<0.000000e+00> : vector<8x384xf32>
    %140 = tpu.matmul %138, %139, %cst_40 {dimension_numbers = #tpu.dot_dimension_numbers<[1], [0], [0], [1], [0, 0, 1, 1], [], []>} : vector<8x128xbf16>, vector<128x384xbf16>, vector<8x384xf32> -> vector<8x384xf32>
    %141 = vector.extract_strided_slice %137 {offsets = [0, 0], sizes = [8, 256], strides = [1, 1]} : vector<8x384xbf16> to vector<8x256xbf16>
    %142 = arith.extf %141 : vector<8x256xbf16> to vector<8x256xf32>
    %143 = vector.extract_strided_slice %140 {offsets = [0, 0], sizes = [8, 256], strides = [1, 1]} : vector<8x384xf32> to vector<8x256xf32>
    %144 = arith.addf %142, %143 : vector<8x256xf32>
    %145 = arith.negf %144 : vector<8x256xf32>
    %146 = math.exp %145 : vector<8x256xf32>
    %cst_41 = arith.constant 1.000000e+00 : f32
    %147 = vector.broadcast %cst_41 : f32 to vector<8x256xf32>
    %148 = arith.addf %147, %146 : vector<8x256xf32>
    %149 = arith.divf %147, %148 : vector<8x256xf32>
    %150 = vector.extract_strided_slice %149 {offsets = [0, 0], sizes = [8, 128], strides = [1, 1]} : vector<8x256xf32> to vector<8x128xf32>
    %151 = vector.extract_strided_slice %149 {offsets = [0, 128], sizes = [8, 128], strides = [1, 1]} : vector<8x256xf32> to vector<8x128xf32>
    %152 = vector.extract_strided_slice %137 {offsets = [0, 256], sizes = [8, 128], strides = [1, 1]} : vector<8x384xbf16> to vector<8x128xbf16>
    %153 = arith.extf %152 : vector<8x128xbf16> to vector<8x128xf32>
    %154 = vector.extract_strided_slice %140 {offsets = [0, 256], sizes = [8, 128], strides = [1, 1]} : vector<8x384xf32> to vector<8x128xf32>
    %155 = arith.addf %154, %5 : vector<8x128xf32>
    %156 = arith.mulf %150, %155 : vector<8x128xf32>
    %157 = arith.addf %153, %156 : vector<8x128xf32>
    %158 = math.tanh %157 : vector<8x128xf32>
    %159 = arith.subf %129, %158 : vector<8x128xf32>
    %160 = arith.mulf %151, %159 : vector<8x128xf32>
    %161 = arith.addf %158, %160 : vector<8x128xf32>
    %162 = arith.truncf %161 : vector<8x128xf32> to vector<8x128xbf16>
    %163 = arith.index_cast %c4_i32 : i32 to index
    %c0_42 = arith.constant 0 : index
    %c0_43 = arith.constant 0 : index
    %164 = vector.load %arg6[%163, %c0_42, %c0_43] : memref<8x8x128xbf16, #tpu.memory_space<vmem>>, vector<1x8x128xbf16>
    %165 = vector.shape_cast %164 : vector<1x8x128xbf16> to vector<8x128xbf16>
    %166 = vector.shape_cast %162 : vector<8x128xbf16> to vector<1x8x128xbf16>
    tpu.vector_store %arg6[%163, %c0_42, %c0_43], %166 {strides = array<i32>} : memref<8x8x128xbf16, #tpu.memory_space<vmem>>, vector<1x8x128xbf16>,
    %c5_i32 = arith.constant 5 : i32
    %167 = arith.index_cast %c5_i32 : i32 to index
    %c0_44 = arith.constant 0 : index
    %c0_45 = arith.constant 0 : index
    %168 = vector.load %arg2[%167, %c0_44, %c0_45] : memref<8x8x384xbf16, #tpu.memory_space<vmem>>, vector<1x8x384xbf16>
    %169 = vector.shape_cast %168 : vector<1x8x384xbf16> to vector<8x384xbf16>
    %170 = arith.truncf %161 : vector<8x128xf32> to vector<8x128xbf16>
    %c0_46 = arith.constant 0 : index
    %c0_47 = arith.constant 0 : index
    %171 = vector.load %arg3[%c0_46, %c0_47] : memref<128x384xbf16, #tpu.memory_space<vmem>>, vector<128x384xbf16>
    %cst_48 = arith.constant dense<0.000000e+00> : vector<8x384xf32>
    %172 = tpu.matmul %170, %171, %cst_48 {dimension_numbers = #tpu.dot_dimension_numbers<[1], [0], [0], [1], [0, 0, 1, 1], [], []>} : vector<8x128xbf16>, vector<128x384xbf16>, vector<8x384xf32> -> vector<8x384xf32>
    %173 = vector.extract_strided_slice %169 {offsets = [0, 0], sizes = [8, 256], strides = [1, 1]} : vector<8x384xbf16> to vector<8x256xbf16>
    %174 = arith.extf %173 : vector<8x256xbf16> to vector<8x256xf32>
    %175 = vector.extract_strided_slice %172 {offsets = [0, 0], sizes = [8, 256], strides = [1, 1]} : vector<8x384xf32> to vector<8x256xf32>
    %176 = arith.addf %174, %175 : vector<8x256xf32>
    %177 = arith.negf %176 : vector<8x256xf32>
    %178 = math.exp %177 : vector<8x256xf32>
    %cst_49 = arith.constant 1.000000e+00 : f32
    %179 = vector.broadcast %cst_49 : f32 to vector<8x256xf32>
    %180 = arith.addf %179, %178 : vector<8x256xf32>
    %181 = arith.divf %179, %180 : vector<8x256xf32>
    %182 = vector.extract_strided_slice %181 {offsets = [0, 0], sizes = [8, 128], strides = [1, 1]} : vector<8x256xf32> to vector<8x128xf32>
    %183 = vector.extract_strided_slice %181 {offsets = [0, 128], sizes = [8, 128], strides = [1, 1]} : vector<8x256xf32> to vector<8x128xf32>
    %184 = vector.extract_strided_slice %169 {offsets = [0, 256], sizes = [8, 128], strides = [1, 1]} : vector<8x384xbf16> to vector<8x128xbf16>
    %185 = arith.extf %184 : vector<8x128xbf16> to vector<8x128xf32>
    %186 = vector.extract_strided_slice %172 {offsets = [0, 256], sizes = [8, 128], strides = [1, 1]} : vector<8x384xf32> to vector<8x128xf32>
    %187 = arith.addf %186, %5 : vector<8x128xf32>
    %188 = arith.mulf %182, %187 : vector<8x128xf32>
    %189 = arith.addf %185, %188 : vector<8x128xf32>
    %190 = math.tanh %189 : vector<8x128xf32>
    %191 = arith.subf %161, %190 : vector<8x128xf32>
    %192 = arith.mulf %183, %191 : vector<8x128xf32>
    %193 = arith.addf %190, %192 : vector<8x128xf32>
    %194 = arith.truncf %193 : vector<8x128xf32> to vector<8x128xbf16>
    %195 = arith.index_cast %c5_i32 : i32 to index
    %c0_50 = arith.constant 0 : index
    %c0_51 = arith.constant 0 : index
    %196 = vector.load %arg6[%195, %c0_50, %c0_51] : memref<8x8x128xbf16, #tpu.memory_space<vmem>>, vector<1x8x128xbf16>
    %197 = vector.shape_cast %196 : vector<1x8x128xbf16> to vector<8x128xbf16>
    %198 = vector.shape_cast %194 : vector<8x128xbf16> to vector<1x8x128xbf16>
    tpu.vector_store %arg6[%195, %c0_50, %c0_51], %198 {strides = array<i32>} : memref<8x8x128xbf16, #tpu.memory_space<vmem>>, vector<1x8x128xbf16>,
    %c6_i32 = arith.constant 6 : i32
    %199 = arith.index_cast %c6_i32 : i32 to index
    %c0_52 = arith.constant 0 : index
    %c0_53 = arith.constant 0 : index
    %200 = vector.load %arg2[%199, %c0_52, %c0_53] : memref<8x8x384xbf16, #tpu.memory_space<vmem>>, vector<1x8x384xbf16>
    %201 = vector.shape_cast %200 : vector<1x8x384xbf16> to vector<8x384xbf16>
    %202 = arith.truncf %193 : vector<8x128xf32> to vector<8x128xbf16>
    %c0_54 = arith.constant 0 : index
    %c0_55 = arith.constant 0 : index
    %203 = vector.load %arg3[%c0_54, %c0_55] : memref<128x384xbf16, #tpu.memory_space<vmem>>, vector<128x384xbf16>
    %cst_56 = arith.constant dense<0.000000e+00> : vector<8x384xf32>
    %204 = tpu.matmul %202, %203, %cst_56 {dimension_numbers = #tpu.dot_dimension_numbers<[1], [0], [0], [1], [0, 0, 1, 1], [], []>} : vector<8x128xbf16>, vector<128x384xbf16>, vector<8x384xf32> -> vector<8x384xf32>
    %205 = vector.extract_strided_slice %201 {offsets = [0, 0], sizes = [8, 256], strides = [1, 1]} : vector<8x384xbf16> to vector<8x256xbf16>
    %206 = arith.extf %205 : vector<8x256xbf16> to vector<8x256xf32>
    %207 = vector.extract_strided_slice %204 {offsets = [0, 0], sizes = [8, 256], strides = [1, 1]} : vector<8x384xf32> to vector<8x256xf32>
    %208 = arith.addf %206, %207 : vector<8x256xf32>
    %209 = arith.negf %208 : vector<8x256xf32>
    %210 = math.exp %209 : vector<8x256xf32>
    %cst_57 = arith.constant 1.000000e+00 : f32
    %211 = vector.broadcast %cst_57 : f32 to vector<8x256xf32>
    %212 = arith.addf %211, %210 : vector<8x256xf32>
    %213 = arith.divf %211, %212 : vector<8x256xf32>
    %214 = vector.extract_strided_slice %213 {offsets = [0, 0], sizes = [8, 128], strides = [1, 1]} : vector<8x256xf32> to vector<8x128xf32>
    %215 = vector.extract_strided_slice %213 {offsets = [0, 128], sizes = [8, 128], strides = [1, 1]} : vector<8x256xf32> to vector<8x128xf32>
    %216 = vector.extract_strided_slice %201 {offsets = [0, 256], sizes = [8, 128], strides = [1, 1]} : vector<8x384xbf16> to vector<8x128xbf16>
    %217 = arith.extf %216 : vector<8x128xbf16> to vector<8x128xf32>
    %218 = vector.extract_strided_slice %204 {offsets = [0, 256], sizes = [8, 128], strides = [1, 1]} : vector<8x384xf32> to vector<8x128xf32>
    %219 = arith.addf %218, %5 : vector<8x128xf32>
    %220 = arith.mulf %214, %219 : vector<8x128xf32>
    %221 = arith.addf %217, %220 : vector<8x128xf32>
    %222 = math.tanh %221 : vector<8x128xf32>
    %223 = arith.subf %193, %222 : vector<8x128xf32>
    %224 = arith.mulf %215, %223 : vector<8x128xf32>
    %225 = arith.addf %222, %224 : vector<8x128xf32>
    %226 = arith.truncf %225 : vector<8x128xf32> to vector<8x128xbf16>
    %227 = arith.index_cast %c6_i32 : i32 to index
    %c0_58 = arith.constant 0 : index
    %c0_59 = arith.constant 0 : index
    %228 = vector.load %arg6[%227, %c0_58, %c0_59] : memref<8x8x128xbf16, #tpu.memory_space<vmem>>, vector<1x8x128xbf16>
    %229 = vector.shape_cast %228 : vector<1x8x128xbf16> to vector<8x128xbf16>
    %230 = vector.shape_cast %226 : vector<8x128xbf16> to vector<1x8x128xbf16>
    tpu.vector_store %arg6[%227, %c0_58, %c0_59], %230 {strides = array<i32>} : memref<8x8x128xbf16, #tpu.memory_space<vmem>>, vector<1x8x128xbf16>,
    %c7_i32 = arith.constant 7 : i32
    %231 = arith.index_cast %c7_i32 : i32 to index
    %c0_60 = arith.constant 0 : index
    %c0_61 = arith.constant 0 : index
    %232 = vector.load %arg2[%231, %c0_60, %c0_61] : memref<8x8x384xbf16, #tpu.memory_space<vmem>>, vector<1x8x384xbf16>
    %233 = vector.shape_cast %232 : vector<1x8x384xbf16> to vector<8x384xbf16>
    %234 = arith.truncf %225 : vector<8x128xf32> to vector<8x128xbf16>
    %c0_62 = arith.constant 0 : index
    %c0_63 = arith.constant 0 : index
    %235 = vector.load %arg3[%c0_62, %c0_63] : memref<128x384xbf16, #tpu.memory_space<vmem>>, vector<128x384xbf16>
    %cst_64 = arith.constant dense<0.000000e+00> : vector<8x384xf32>
    %236 = tpu.matmul %234, %235, %cst_64 {dimension_numbers = #tpu.dot_dimension_numbers<[1], [0], [0], [1], [0, 0, 1, 1], [], []>} : vector<8x128xbf16>, vector<128x384xbf16>, vector<8x384xf32> -> vector<8x384xf32>
    %237 = vector.extract_strided_slice %233 {offsets = [0, 0], sizes = [8, 256], strides = [1, 1]} : vector<8x384xbf16> to vector<8x256xbf16>
    %238 = arith.extf %237 : vector<8x256xbf16> to vector<8x256xf32>
    %239 = vector.extract_strided_slice %236 {offsets = [0, 0], sizes = [8, 256], strides = [1, 1]} : vector<8x384xf32> to vector<8x256xf32>
    %240 = arith.addf %238, %239 : vector<8x256xf32>
    %241 = arith.negf %240 : vector<8x256xf32>
    %242 = math.exp %241 : vector<8x256xf32>
    %cst_65 = arith.constant 1.000000e+00 : f32
    %243 = vector.broadcast %cst_65 : f32 to vector<8x256xf32>
    %244 = arith.addf %243, %242 : vector<8x256xf32>
    %245 = arith.divf %243, %244 : vector<8x256xf32>
    %246 = vector.extract_strided_slice %245 {offsets = [0, 0], sizes = [8, 128], strides = [1, 1]} : vector<8x256xf32> to vector<8x128xf32>
    %247 = vector.extract_strided_slice %245 {offsets = [0, 128], sizes = [8, 128], strides = [1, 1]} : vector<8x256xf32> to vector<8x128xf32>
    %248 = vector.extract_strided_slice %233 {offsets = [0, 256], sizes = [8, 128], strides = [1, 1]} : vector<8x384xbf16> to vector<8x128xbf16>
    %249 = arith.extf %248 : vector<8x128xbf16> to vector<8x128xf32>
    %250 = vector.extract_strided_slice %236 {offsets = [0, 256], sizes = [8, 128], strides = [1, 1]} : vector<8x384xf32> to vector<8x128xf32>
    %251 = arith.addf %250, %5 : vector<8x128xf32>
    %252 = arith.mulf %246, %251 : vector<8x128xf32>
    %253 = arith.addf %249, %252 : vector<8x128xf32>
    %254 = math.tanh %253 : vector<8x128xf32>
    %255 = arith.subf %225, %254 : vector<8x128xf32>
    %256 = arith.mulf %247, %255 : vector<8x128xf32>
    %257 = arith.addf %254, %256 : vector<8x128xf32>
    %258 = arith.truncf %257 : vector<8x128xf32> to vector<8x128xbf16>
    %259 = arith.index_cast %c7_i32 : i32 to index
    %c0_66 = arith.constant 0 : index
    %c0_67 = arith.constant 0 : index
    %260 = vector.load %arg6[%259, %c0_66, %c0_67] : memref<8x8x128xbf16, #tpu.memory_space<vmem>>, vector<1x8x128xbf16>
    %261 = vector.shape_cast %260 : vector<1x8x128xbf16> to vector<8x128xbf16>
    %262 = vector.shape_cast %258 : vector<8x128xbf16> to vector<1x8x128xbf16>
    tpu.vector_store %arg6[%259, %c0_66, %c0_67], %262 {strides = array<i32>} : memref<8x8x128xbf16, #tpu.memory_space<vmem>>, vector<1x8x128xbf16>,
    %c8_i32 = arith.constant 8 : i32
    %c0_68 = arith.constant 0 : index
    %c0_69 = arith.constant 0 : index
    %263 = vector.load %arg8[%c0_68, %c0_69] : memref<8x128xf32, #tpu.memory_space<vmem>>, vector<8x128xf32>
    tpu.vector_store %arg8[%c0_68, %c0_69], %257 {strides = array<i32>} : memref<8x128xf32, #tpu.memory_space<vmem>>, vector<8x128xf32>,
    %c0_i32_70 = arith.constant 0 : i32
    %264 = arith.cmpi eq, %arg1, %c0_i32_70 : i32
    %265 = arith.extui %264 : i1 to i32
    %c0_i32_71 = arith.constant 0 : i32
    %266 = arith.cmpi ne, %265, %c0_i32_71 : i32
    scf.if %266 {
      %c0_72 = arith.constant 0 : index
      %c0_73 = arith.constant 0 : index
      %267 = vector.load %arg7[%c0_72, %c0_73] : memref<8x128xf32, #tpu.memory_space<vmem>>, vector<8x128xf32>
      tpu.vector_store %arg7[%c0_72, %c0_73], %257 {strides = array<i32>} : memref<8x128xf32, #tpu.memory_space<vmem>>, vector<8x128xf32>,
    } else {
    }
    return
  }
  func.func @transform_0(%arg0: i32, %arg1: i32) -> (i32, i32, i32) {
    %c0_i32 = arith.constant 0 : i32
    %c0_i32_0 = arith.constant 0 : i32
    return %arg1, %arg0, %c0_i32 : i32, i32, i32
  }
  func.func @transform_1(%arg0: i32, %arg1: i32) -> (i32, i32) {
    %c0_i32 = arith.constant 0 : i32
    %c0_i32_0 = arith.constant 0 : i32
    %c0_i32_1 = arith.constant 0 : i32
    return %c0_i32, %c0_i32_0 : i32, i32
  }
  func.func @transform_2(%arg0: i32, %arg1: i32) -> (i32, i32) {
    %c0_i32 = arith.constant 0 : i32
    %c0_i32_0 = arith.constant 0 : i32
    %c0_i32_1 = arith.constant 0 : i32
    return %c0_i32, %c0_i32_0 : i32, i32
  }
  func.func @transform_3(%arg0: i32, %arg1: i32) -> (i32, i32) {
    %c0_i32 = arith.constant 0 : i32
    %c0_i32_0 = arith.constant 0 : i32
    return %arg0, %c0_i32 : i32, i32
  }
  func.func @transform_4(%arg0: i32, %arg1: i32) -> (i32, i32, i32) {
    %c0_i32 = arith.constant 0 : i32
    %c0_i32_0 = arith.constant 0 : i32
    return %arg1, %arg0, %c0_i32 : i32, i32, i32
  }
  func.func @transform_5(%arg0: i32, %arg1: i32) -> (i32, i32) {
    %c0_i32 = arith.constant 0 : i32
    %c0_i32_0 = arith.constant 0 : i32
    return %arg0, %c0_i32 : i32, i32
  }
}

</mosaic_0001>

<bundles_post_ra>
// kernel: tpu_custom_call.1
= control target key start
LH: loop header
LB: loop body
LE: loop exit
PB: predicated region body
PF: predicated region fallthrough
CT: control target
= control target key end

     0   :  { %7 = vsyncpa [#allocation3], 0  ;;  %s633_s0 = inlined_call_operand.hbm [shape: f32[16,128], index: 0, kind: input, shape index: {}]   ;;  %s634_s1 = inlined_call_operand.hbm [shape: f32[8,128], index: 1, kind: input, shape index: {}]   ;;  %s635_s2 = inlined_call_operand.hbm [shape: f32[16,128], index: 2, kind: output, shape index: {}]  }
   0x1   :  { %9 = vsyncpa [#allocation3 + $0x1], 0 }
   0x2   :  { %10 = vsyncpa [#allocation6], 0 }
   0x3   :  { %11 = vsyncpa [#allocation4], 0 }
   0x4   :  { %13 = vsyncpa [#allocation4 + $0x1], 0  ;;  %s495_s9 = smov 0   ;;  %s497_s10 = smov 0  }
   0x5   :  { %s499_s11 = smov 0   ;;  %s501_s12 = smov 0  }
   0x6 LB: > { %s516_s13 = sadd.s32 4294967295, %s477_s12   ;;  %s276_s14 = sadd.s32 4294967294, %s477_s12   ;;  %s477_s12 = sphi %s501_s12, %s645_s12   ;;  %s473_s11 = sphi %s499_s11, %s644_s11   ;;  %s469_s10 = sphi %s497_s10, %s643_s10   ;;  %s465_s9 = sphi %s495_s9, %s642_s9  }
   0x7   : > { %p39_p0 = scmp.ne.s32.totalorder %s469_s10, %s465_s9  ;;  %p40_p1 = scmp.eq.s32.totalorder %s516_s13, 0 }
   0x8   : > { %p84_p2 = scmp.eq.s32.totalorder %s516_s13, 1  ;;  %p90_p3 = scmp.eq.s32.totalorder %s276_s14, 1 }
   0x9   : > { %p525_p4 = por %p40_p1, %p39_p0  ;;  %p277_p5 = scmp.ge.s32.totalorder %s477_s12, 1 }
   0xa   : > { %p530_p6 = por %p90_p3, %p39_p0  ;;  %p97_p7 = scmp.lt.s32.totalorder %s477_s12, 3 }
   0xb   : > { %s109_s19 = sshll.u32 %s634_s1, 4  ;;  %s479_s21 = smov [#allocation5]   ;;  %s110_s19 = int_to_ptr.hbm [resolvable:$true] %s109_s19 }
   0xc   : > { %p538_p8 = pnand %p277_p5, %p97_p7  ;;  %s111_s22 = sshll.u32 %s479_s21, 4  ;;  %s112_s22 = int_to_ptr.vmem [resolvable:$true] %s111_s22 }
   0xd   : > { %s548_s23 = sadd.s32 1, %s477_s12   ;;  %s26_s24 = sadd.s32 1, %s473_s11 }
   0xe   : > { %p298_p10 = pneg %p538_p8  ;;  %s23_s25 = ssub.s32 %s477_s12, %s548_s23 }
   0xf   : > { %p24_p12 = scmp.eq.s32.totalorder %s23_s25, 0  ;;  %p33_p13 = scmp.ne.s32.totalorder %s473_s11, %s469_s10 }
  0x10   : > { %p299_p11 = pnand %p298_p10, %p40_p1  ;;  %p34_p0 = scmp.eq.s32.totalorder %s477_s12, 0 }
  0x11   : > { %s557_s26 = scalar_select %p24_p12, %s473_s11, %s26_s24  }
  0x12   : > { %301 = dma.hbm_to_vmem [thread:$0]  (!%p299_p11), %s110_s19, 128, %s112_s22, [#allocation6]  }
  0x13   : > { %p561_p3 = por %p84_p2, %p33_p13  ;;  %p311_p5 = scmp.lt.s32.totalorder %s477_s12, 2 }
  0x14   : > { %s122_s28 = sand.u32 1, %s473_s11   ;;  %s281_s29 = sshll.u32 %s477_s12, 3 }
  0x15   : > { %p35_p7 = por %p34_p0, %p33_p13  ;;  %s280_s30 = sshll.u32 %s122_s28, 3 }
  0x16   : > { %s130_s5 = scalar_lea.hbm %s633_s0, %s281_s29  ;;  %s126_s7 = scalar_lea.vmem [#allocation2], %s280_s30 }
  0x17   : > { %s132_s6 = sshll.u32 %s130_s5, 4  ;;  %s134_s8 = sshll.u32 %s126_s7, 4  ;;  %s133_s6 = int_to_ptr.hbm [resolvable:$true] %s132_s6  ;;  %s135_s8 = int_to_ptr.vmem [resolvable:$true] %s134_s8 }
  0x18   : > { %p571_p10 = pnand %p311_p5, %p35_p7  ;;  %s123_s17 = scalar_lea.sflag [#allocation3], %s122_s28 }
  0x19   : > { %s377_s18 = sshra.s32 %s133_s6, 4  ;;  %s384_s24 = scalar_lea.hbm %s633_s0, 16  ;;  %s378_s18 = int_to_ptr.hbm [resolvable:$true] %s377_s18 }
  0x1a   : > { %s379_s19 = scalar_lea.hbm %s378_s18, 8  ;;  %p381_p11 = pneg %p571_p10 }
  0x1b   : > { %p380_p2 = scmp.ne.s32.totalorder %s378_s18, %s379_s19  ;;  %p385_p0 = scmp.lt.s32.totalorder %s378_s18, %s633_s0 }
  0x1c   : > { %p386_p5 = scmp.lt.s32.totalorder %s384_s24, %s379_s19 }
  0x1d   : > { %p382_p12 = pnand %p381_p11, %p380_p2 }
  0x1e   : > { %p387_p7 = por %p386_p5, %p385_p0 }
  0x1f   : > { %p383_p13 = pneg %p382_p12 }
  0x21   : > { %p388_p9 = pnand %p387_p7, %p383_p13 }
  0x23   : > { %391 = shalt.err (!%p388_p9)
}
  0x24   : > { %305 = dma.hbm_to_vmem [thread:$0]  (!%p571_p10), %s133_s6, 128, %s135_s8, %s123_s17  }
  0x25   : > { %143 = sbr.rel (%p538_p8) target bundleno = 60 (0x3c), region = 28  ;;  %s588_s28 = sand.u32 (!%p538_p8), 1, %s469_s10  }
  0x26   : > { %s283_s30 = sshll.u32 (!%p538_p8), %s588_s28, 3  ;;  %s146_s3 = scalar_lea.sflag (!%p538_p8), [#allocation3], %s588_s28 }
  0x27   : > { %s149_s4 = scalar_lea.vmem (!%p538_p8), [#allocation2], %s283_s30 }
  0x2a   : > { %452 = dma.done.wait (%p525_p4), %s146_s3, 128  }
  0x2b   : > { %454 = vsyncadd (%p525_p4), %s146_s3, 4294967168 }
  0x2c   : > { %456 = dma.done.wait (%p40_p1), [#allocation6], 128  }
  0x2d   : > { %458 = vsyncadd (%p40_p1), [#allocation6], 4294967168  ;;  %s287_s20 = sshll.u32 %s516_s13, 3  ;;  %s175_s8 = scalar_lea.vmem [#allocation7], %s283_s30  ;;  %v176_v0 = vld [vmem:[%s149_s4] sm:$0xff]  ;;  %v177_v1 = vld [vmem:[#allocation5] sm:$0xff] }
  0x2e   : > { %s191_s7 = scalar_lea.hbm %s635_s2, %s287_s20  ;;  %s193_s14 = sshll.u32 %s175_s8, 4  ;;  %v178_v2 = vadd.f32 %v177_v1, %v176_v0  ;;  %s194_s14 = int_to_ptr.vmem [resolvable:$true] %s193_s14 }
  0x2f   : > { %s195_s17 = sshll.u32 %s191_s7, 4  ;;  %s181_s15 = scalar_lea.sflag [#allocation4], %s588_s28  ;;  %s196_s17 = int_to_ptr.hbm [resolvable:$true] %s195_s17 }
  0x30   : > { %179 = vst [vmem:[%s175_s8] sm:$0xff] %v178_v2  ;;  %s421_s18 = sshra.s32 %s196_s17, 4  ;;  %s427_s22 = scalar_lea.hbm %s635_s2, 16  ;;  %s422_s18 = int_to_ptr.hbm [resolvable:$true] %s421_s18 }
  0x31   : > { %s423_s19 = scalar_lea.hbm %s422_s18, 8  ;;  %p428_p9 = scmp.lt.s32.totalorder %s422_s18, %s635_s2 }
  0x32   : > { %p424_p1 = scmp.ne.s32.totalorder %s422_s18, %s423_s19  ;;  %p429_p10 = scmp.lt.s32.totalorder %s427_s22, %s423_s19 }
  0x34   : > { %p425_p4 = pnand %p424_p1, %p561_p3  ;;  %p430_p2 = por %p429_p10, %p428_p9 }
  0x36   : > { %p426_p8 = pneg %p425_p4 }
  0x38   : > { %p431_p11 = pnand %p430_p2, %p426_p8 }
  0x3a   : > { %434 = shalt.err (!%p431_p11)
}
  0x3b   : > { %296 = dma.vmem_to_hbm [thread:$0]  (%p561_p3), %s194_s14, 128, %s196_s17, %s181_s15  }
  0x3c PF: > { %s207_s29 = sand.u32 1, %s465_s9   ;;  %p641_p12 = scmp.ge.s32.totalorder %s477_s12, 2 }
  0x3d   : > { %s208_s28 = scalar_lea.sflag [#allocation4], %s207_s29 }
  0x3e   : > { %p307_p13 = pnand %p641_p12, %p530_p6 }
  0x40   : > { %p308_p0 = pneg %p307_p13 }
  0x42   : > { %460 = dma.done.wait (%p308_p0), %s208_s28, 128  }
  0x43   : > { %462 = vsyncadd (%p308_p0), %s208_s28, 4294967168  ;;  %p16_p5 = scmp.ge.s32.totalorder %s548_s23, 4   ;;  %s642_s9 = smov %s469_s10 }
  0x44   : > { %s643_s10 = smov %s473_s11  ;;  %s644_s11 = smov %s557_s26 }
  0x45   : > { %s645_s12 = smov %s548_s23  ;;  %18 = sbr.rel (!%p16_p5) target bundleno = 6 (0x6), region = 77 }
  0x4a   :  { %214 = vsyncpa [#allocation3], 1 }
  0x4b   :  { %216 = vsyncpa [#allocation3 + $0x1], 1 }
  0x4c   :  { %217 = vsyncpa [#allocation6], 1 }
  0x4d   :  { %218 = vsyncpa [#allocation4], 1 }
  0x4e   :  { %220 = vsyncpa [#allocation4 + $0x1], 1 }

// kernel: encoder_forward.3
= control target key start
LH: loop header
LB: loop body
LE: loop exit
PB: predicated region body
PF: predicated region fallthrough
CT: control target
= control target key end

     0   :  { %s4497_s1 = inlined_call_operand.vmem [shape: bf16[128,384], index: 1, kind: input, shape index: {}]   ;;  %s4498_s3 = inlined_call_operand.vmem [shape: f32[8,128], index: 3, kind: input, shape index: {}]   ;;  %s4499_s2 = inlined_call_operand.vmem [shape: f32[1,128], index: 2, kind: input, shape index: {}]   ;;  %s4500_s0 = inlined_call_operand.vmem [shape: bf16[8,8,384], index: 0, kind: input, shape index: {}]   ;;  %s4501_s4 = inlined_call_operand.vmem [shape: f32[8,8,128], index: 4, kind: output, shape index: {0}]   ;;  %s4502_s5 = inlined_call_operand.vmem [shape: f32[8,128], index: 5, kind: output, shape index: {1}]  }
   0x1   :  { %v2167_v0 = vld [vmem:[%s4497_s1 + $0xa8] sm:$0xf]  ;;  %v2908_v1 = vld [vmem:[%s4497_s1 + $0xb0] sm:$0xf0]  ;;  %v2907_v2 = vld [vmem:[%s4497_s1 + $0xac] sm:$0xf] }
   0x2   :  { %v2168_v3 = vor.u32 %v2908_v1, %v2167_v0  ;;  %v2169_v4 = vld [vmem:[%s4497_s1 + $0xb4] sm:$0xf0]  ;;  %v2155_v5 = vld [vmem:[%s4497_s1 + $0x90] sm:$0xf]  ;;  %v2905_v6 = vld [vmem:[%s4497_s1 + $0x98] sm:$0xf0] }
   0x3   :  { %v2172_v7 = vor.u32 %v2907_v2, %v2169_v4  ;;  %v2904_v8 = vld [vmem:[%s4497_s1 + $0x94] sm:$0xf]  ;;  %v2157_v9 = vld [vmem:[%s4497_s1 + $0x9c] sm:$0xf0]  ;;  %v2156_v10 = vor.u32 %v2905_v6, %v2155_v5  ;;  %v2143_v12 = vld [vmem:[%s4497_s1 + $0x78] sm:$0xf] }
   0x4   :  { %193 = vmatpush.bf16.msra.mxu0 %v2168_v3  ;;  %v2160_v11 = vor.u32 %v2904_v8, %v2157_v9  ;;  %v2902_v13 = vld [vmem:[%s4497_s1 + $0x80] sm:$0xf0]  ;;  %v2901_v14 = vld [vmem:[%s4497_s1 + $0x7c] sm:$0xf]  ;;  %v2145_v15 = vld [vmem:[%s4497_s1 + $0x84] sm:$0xf0] }
   0x5   :  { %206 = vmatpush.bf16.msra.mxu1 %v2172_v7  ;;  %v2175_v16 = vld [vmem:[%s4497_s1 + $0xb0] sm:$0xf]  ;;  %v2909_v17 = vld [vmem:[%s4497_s1 + $0xb8] sm:$0xf0]  ;;  %v2144_v19 = vor.u32 %v2902_v13, %v2143_v12  ;;  %v2163_v20 = vld [vmem:[%s4497_s1 + $0x98] sm:$0xf]  ;;  %v2148_v22 = vor.u32 %v2901_v14, %v2145_v15 }
   0x6   :  { %v2176_v18 = vor.u32 %v2909_v17, %v2175_v16  ;;  %v2906_v21 = vld [vmem:[%s4497_s1 + $0xa0] sm:$0xf0]  ;;  %v2131_v23 = vld [vmem:[%s4497_s1 + $0x60] sm:$0xf]  ;;  %v2899_v24 = vld [vmem:[%s4497_s1 + $0x68] sm:$0xf0] }
   0x7   :  { %v2898_v25 = vld [vmem:[%s4497_s1 + $0x64] sm:$0xf]  ;;  %v2164_v26 = vor.u32 %v2906_v21, %v2163_v20  ;;  %v2133_v27 = vld [vmem:[%s4497_s1 + $0x6c] sm:$0xf0]  ;;  %v2151_v28 = vld [vmem:[%s4497_s1 + $0x80] sm:$0xf]  ;;  %v2132_v30 = vor.u32 %v2899_v24, %v2131_v23 }
   0x8   :  { %194 = vmatpush.bf16.msra.mxu0 %v2156_v10  ;;  %219 = vmatpush.bf16.msra.mxu2 %v2176_v18  ;;  %v2903_v29 = vld [vmem:[%s4497_s1 + $0x88] sm:$0xf0]  ;;  %v2136_v31 = vor.u32 %v2898_v25, %v2133_v27  ;;  %v2119_v32 = vld [vmem:[%s4497_s1 + $0x48] sm:$0xf]  ;;  %v2896_v33 = vld [vmem:[%s4497_s1 + $0x50] sm:$0xf0] }
   0x9   :  { %207 = vmatpush.bf16.msra.mxu1 %v2160_v11  ;;  %v2895_v34 = vld [vmem:[%s4497_s1 + $0x4c] sm:$0xf]  ;;  %v2152_v35 = vor.u32 %v2903_v29, %v2151_v28  ;;  %v2121_v36 = vld [vmem:[%s4497_s1 + $0x54] sm:$0xf0]  ;;  %v2139_v37 = vld [vmem:[%s4497_s1 + $0x68] sm:$0xf]  ;;  %v2120_v39 = vor.u32 %v2896_v33, %v2119_v32 }
   0xa   :  { %v2900_v38 = vld [vmem:[%s4497_s1 + $0x70] sm:$0xf0]  ;;  %v2124_v40 = vor.u32 %v2895_v34, %v2121_v36  ;;  %v2107_v41 = vld [vmem:[%s4497_s1 + $0x30] sm:$0xf]  ;;  %v2893_v42 = vld [vmem:[%s4497_s1 + $0x38] sm:$0xf0] }
   0xb   :  { %v2892_v43 = vld [vmem:[%s4497_s1 + $0x34] sm:$0xf]  ;;  %v2140_v44 = vor.u32 %v2900_v38, %v2139_v37  ;;  %v2109_v45 = vld [vmem:[%s4497_s1 + $0x3c] sm:$0xf0]  ;;  %v2127_v46 = vld [vmem:[%s4497_s1 + $0x50] sm:$0xf]  ;;  %v2108_v48 = vor.u32 %v2893_v42, %v2107_v41 }
   0xc   :  { %195 = vmatpush.bf16.msra.mxu0 %v2144_v19  ;;  %220 = vmatpush.bf16.msra.mxu2 %v2164_v26  ;;  %v2897_v47 = vld [vmem:[%s4497_s1 + $0x58] sm:$0xf0]  ;;  %v2112_v49 = vor.u32 %v2892_v43, %v2109_v45  ;;  %v2095_v50 = vld [vmem:[%s4497_s1 + $0x18] sm:$0xf]  ;;  %v2890_v51 = vld [vmem:[%s4497_s1 + $0x20] sm:$0xf0] }
   0xd   :  { %208 = vmatpush.bf16.msra.mxu1 %v2148_v22  ;;  %v2889_v52 = vld [vmem:[%s4497_s1 + $0x1c] sm:$0xf]  ;;  %v2128_v53 = vor.u32 %v2897_v47, %v2127_v46  ;;  %v2097_v54 = vld [vmem:[%s4497_s1 + $0x24] sm:$0xf0]  ;;  %v2115_v55 = vld [vmem:[%s4497_s1 + $0x38] sm:$0xf]  ;;  %v2096_v57 = vor.u32 %v2890_v51, %v2095_v50 }
   0xe   :  { %v2894_v56 = vld [vmem:[%s4497_s1 + $0x40] sm:$0xf0]  ;;  %v2100_v58 = vor.u32 %v2889_v52, %v2097_v54  ;;  %v2083_v59 = vld [vmem:[%s4497_s1] sm:$0xf]  ;;  %v2887_v60 = vld [vmem:[%s4497_s1 + $0x8] sm:$0xf0] }
   0xf   :  { %v2886_v61 = vld [vmem:[%s4497_s1 + $0x4] sm:$0xf]  ;;  %v2116_v62 = vor.u32 %v2894_v56, %v2115_v55  ;;  %v2085_v63 = vld [vmem:[%s4497_s1 + $0xc] sm:$0xf0]  ;;  %v2103_v0 = vld [vmem:[%s4497_s1 + $0x20] sm:$0xf]  ;;  %v2084_v2 = vor.u32 %v2887_v60, %v2083_v59 }
  0x10   :  { %196 = vmatpush.bf16.msra.mxu0 %v2132_v30  ;;  %221 = vmatpush.bf16.msra.mxu2 %v2152_v35  ;;  %v2891_v1 = vld [vmem:[%s4497_s1 + $0x28] sm:$0xf0]  ;;  %v3331_v3 = vld [vmem:[%s4498_s3] sm:$0xff]  ;;  %v2088_v4 = vor.u32 %v2886_v61, %v2085_v63  ;;  %v2091_v6 = vld [vmem:[%s4497_s1 + $0x8] sm:$0xf] }
  0x11   :  { %209 = vmatpush.bf16.msra.mxu1 %v2136_v31  ;;  %v2104_v5 = vor.u32 %v2891_v1, %v2103_v0  ;;  %v2888_v7 = vld [vmem:[%s4497_s1 + $0x10] sm:$0xf0]  ;;  %v32_v8 = vpack.c.bf16 %v3331_v3, %v3331_v3  ;;  %v2267_v10 = vld [vmem:[%s4497_s1 + $0xa8] sm:$0xf]  ;;  %v2931_v12 = vld [vmem:[%s4497_s1 + $0xac] sm:$0xf] }
  0x12   :  { %v2092_v9 = vor.u32 %v2888_v7, %v2091_v6  ;;  %v2932_v11 = vld [vmem:[%s4497_s1 + $0xb0] sm:$0xf0]  ;;  %v2269_v14 = vld [vmem:[%s4497_s1 + $0xb4] sm:$0xf0]  ;;  %v2275_v15 = vld [vmem:[%s4497_s1 + $0xb0] sm:$0xf] }
  0x13   :  { %v2268_v13 = vor.u32 %v2932_v11, %v2267_v10  ;;  %v2933_v16 = vld [vmem:[%s4497_s1 + $0xb8] sm:$0xf0]  ;;  %v2272_v17 = vor.u32 %v2931_v12, %v2269_v14  ;;  %v2255_v19 = vld [vmem:[%s4497_s1 + $0x90] sm:$0xf]  ;;  %v2928_v21 = vld [vmem:[%s4497_s1 + $0x94] sm:$0xf] }
  0x14   :  { %197 = vmatpush.bf16.msra.mxu0 %v2120_v39  ;;  %222 = vmatpush.bf16.msra.mxu2 %v2140_v44  ;;  %v2276_v18 = vor.u32 %v2933_v16, %v2275_v15  ;;  %v2929_v20 = vld [vmem:[%s4497_s1 + $0x98] sm:$0xf0]  ;;  %v2257_v23 = vld [vmem:[%s4497_s1 + $0x9c] sm:$0xf0]  ;;  %v2263_v24 = vld [vmem:[%s4497_s1 + $0x98] sm:$0xf] }
  0x15   :  { %210 = vmatpush.bf16.msra.mxu1 %v2124_v40  ;;  %447 = vmatpush.bf16.msra.mxu3 %v2268_v13  ;;  %v2256_v22 = vor.u32 %v2929_v20, %v2255_v19  ;;  %v2930_v25 = vld [vmem:[%s4497_s1 + $0xa0] sm:$0xf0]  ;;  %v2260_v26 = vor.u32 %v2928_v21, %v2257_v23  ;;  %v2243_v28 = vld [vmem:[%s4497_s1 + $0x78] sm:$0xf]  ;;  %v2925_v30 = vld [vmem:[%s4497_s1 + $0x7c] sm:$0xf] }
  0x16   :  { %v2264_v27 = vor.u32 %v2930_v25, %v2263_v24  ;;  %v2926_v29 = vld [vmem:[%s4497_s1 + $0x80] sm:$0xf0]  ;;  %v2245_v33 = vld [vmem:[%s4497_s1 + $0x84] sm:$0xf0]  ;;  %v2251_v35 = vld [vmem:[%s4497_s1 + $0x80] sm:$0xf] }
  0x17   :  { %v30_v31 = vld [vmem:[%s4500_s0] sm:$0xff]  ;;  %v2244_v32 = vor.u32 %v2926_v29, %v2243_v28  ;;  %v2248_v34 = vor.u32 %v2925_v30, %v2245_v33  ;;  %v2927_v36 = vld [vmem:[%s4497_s1 + $0x88] sm:$0xf0]  ;;  %v2233_v44 = vld [vmem:[%s4497_s1 + $0x6c] sm:$0xf0] }
  0x18   :  { %198 = vmatpush.bf16.msra.mxu0 %v2108_v48  ;;  %223 = vmatpush.bf16.msra.mxu2 %v2128_v53  ;;  %v2252_v37 = vor.u32 %v2927_v36, %v2251_v35  ;;  %v232_v38 = vunpack.c.l.bf16 %v30_v31  ;;  %v2231_v39 = vld [vmem:[%s4497_s1 + $0x60] sm:$0xf]  ;;  %v2923_v40 = vld [vmem:[%s4497_s1 + $0x68] sm:$0xf0]  ;;  %v2922_v41 = vld [vmem:[%s4497_s1 + $0x64] sm:$0xf]  ;;  %v233_v42 = vunpack.c.h.bf16 %v30_v31 }
  0x19   :  { %211 = vmatpush.bf16.msra.mxu1 %v2112_v49  ;;  %448 = vmatpush.bf16.msra.mxu3 %v2256_v22  ;;  %v2232_v43 = vor.u32 %v2923_v40, %v2231_v39  ;;  %v2239_v45 = vld [vmem:[%s4497_s1 + $0x68] sm:$0xf]  ;;  %v2924_v46 = vld [vmem:[%s4497_s1 + $0x70] sm:$0xf0]  ;;  %v2236_v47 = vor.u32 %v2922_v41, %v2233_v44  ;;  %v2919_v54 = vld [vmem:[%s4497_s1 + $0x4c] sm:$0xf] }
  0x1a   :  { %v2240_v48 = vor.u32 %v2924_v46, %v2239_v45  ;;  %v2219_v52 = vld [vmem:[%s4497_s1 + $0x48] sm:$0xf]  ;;  %v2920_v53 = vld [vmem:[%s4497_s1 + $0x50] sm:$0xf0]  ;;  %v2921_v59 = vld [vmem:[%s4497_s1 + $0x58] sm:$0xf0] }
  0x1b   :  { %v2220_v56 = vor.u32 %v2920_v53, %v2219_v52  ;;  %v2207_v0 = vld [vmem:[%s4497_s1 + $0x30] sm:$0xf]  ;;  %v2917_v1 = vld [vmem:[%s4497_s1 + $0x38] sm:$0xf0]  ;;  %v2215_v6 = vld [vmem:[%s4497_s1 + $0x38] sm:$0xf] }
  0x1c   :  { %199 = vmatpush.bf16.msra.mxu0 %v2096_v57  ;;  %224 = vmatpush.bf16.msra.mxu2 %v2116_v62  ;;  %v2221_v57 = vld [vmem:[%s4497_s1 + $0x54] sm:$0xf0]  ;;  %v2918_v7 = vld [vmem:[%s4497_s1 + $0x40] sm:$0xf0]  ;;  %v2913_v14 = vld [vmem:[%s4497_s1 + $0x1c] sm:$0xf] }
  0x1d   :  { %212 = vmatpush.bf16.msra.mxu1 %v2100_v58  ;;  %449 = vmatpush.bf16.msra.mxu3 %v2244_v32  ;;  %v2227_v58 = vld [vmem:[%s4497_s1 + $0x50] sm:$0xf]  ;;  %v2224_v61 = vor.u32 %v2919_v54, %v2221_v57  ;;  %v2195_v12 = vld [vmem:[%s4497_s1 + $0x18] sm:$0xf]  ;;  %v2914_v13 = vld [vmem:[%s4497_s1 + $0x20] sm:$0xf0] }
  0x1e   :  { %v2228_v62 = vor.u32 %v2921_v59, %v2227_v58  ;;  %v2196_v15 = vor.u32 %v2914_v13, %v2195_v12  ;;  %v2197_v16 = vld [vmem:[%s4497_s1 + $0x24] sm:$0xf0]  ;;  %v2183_v23 = vld [vmem:[%s4497_s1] sm:$0xf]  ;;  %v2911_v24 = vld [vmem:[%s4497_s1 + $0x8] sm:$0xf0] }
  0x1f   :  { %v2200_v21 = vor.u32 %v2913_v14, %v2197_v16  ;;  %v2910_v25 = vld [vmem:[%s4497_s1 + $0x4] sm:$0xf]  ;;  %v2184_v28 = vor.u32 %v2911_v24, %v2183_v23  ;;  %v2185_v29 = vld [vmem:[%s4497_s1 + $0xc] sm:$0xf0]  ;;  %v2191_v30 = vld [vmem:[%s4497_s1 + $0x8] sm:$0xf] }
  0x20   :  { %200 = vmatpush.bf16.msra.mxu0 %v2084_v2  ;;  %225 = vmatpush.bf16.msra.mxu2 %v2104_v5  ;;  %v2916_v2 = vld [vmem:[%s4497_s1 + $0x34] sm:$0xf]  ;;  %v2209_v5 = vld [vmem:[%s4497_s1 + $0x3c] sm:$0xf0]  ;;  %v2188_v32 = vor.u32 %v2910_v25, %v2185_v29  ;;  %v31_v45 = vld [vmem:[%s4500_s0 + $0x8] sm:$0xf] }
  0x21   :  { %213 = vmatpush.bf16.msra.mxu1 %v2088_v4  ;;  %450 = vmatpush.bf16.msra.mxu3 %v2232_v43  ;;  %v2208_v4 = vor.u32 %v2917_v1, %v2207_v0  ;;  %v2912_v33 = vld [vmem:[%s4497_s1 + $0x10] sm:$0xf0]  ;;  %v3491_v39 = vld [vmem:[%s4499_s2] ss:$0 sm:$0xff]  ;;  %v2179_v12 = vld [vmem:[%s4500_s0 + $0xc] sm:$0xff] }
  0x22   :  { %v2356_v13 = vld [vmem:[%s4497_s1 + $0x90] sm:$0xf]  ;;  %v2953_v14 = vld [vmem:[%s4497_s1 + $0x98] sm:$0xf0]  ;;  %v2344_v23 = vld [vmem:[%s4497_s1 + $0x78] sm:$0xf] }
  0x23   :  { %201 = vmatmul.bf16.vlgmr.msra.gmra.mxu0 %v32_v8  ;;  %v2357_v16 = vor.u32 %v2953_v14, %v2356_v13  ;;  %v2950_v24 = vld [vmem:[%s4497_s1 + $0x80] sm:$0xf0]  ;;  %v2949_v25 = vld [vmem:[%s4497_s1 + $0x7c] sm:$0xf]  ;;  %v2352_v29 = vld [vmem:[%s4497_s1 + $0x80] sm:$0xf] }
  0x24   :  { %214 = vmatmul.bf16.vlgmr.msra.gmra.mxu1 %v32_v8  ;;  %226 = vmatpush.bf16.msra.mxu2 %v2092_v9  ;;  %v2216_v9 = vor.u32 %v2918_v7, %v2215_v6  ;;  %v2370_v7 = vld [vmem:[%s4497_s1 + $0xb4] sm:$0xf0] }
  0x25   :  { %460 = vmatpush.bf16.msrb.mxu0 %v2272_v17  ;;  %473 = vmatpush.bf16.msrb.mxu1 %v2276_v18  ;;  %v2203_v17 = vld [vmem:[%s4497_s1 + $0x20] sm:$0xf]  ;;  %v2915_v18 = vld [vmem:[%s4497_s1 + $0x28] sm:$0xf0] }
  0x26   :  { %451 = vmatpush.bf16.msra.mxu3 %v2220_v56  ;;  %v2204_v22 = vor.u32 %v2915_v18, %v2203_v17  ;;  %v2358_v17 = vld [vmem:[%s4497_s1 + $0x9c] sm:$0xf0]  ;;  %v2364_v18 = vld [vmem:[%s4497_s1 + $0x98] sm:$0xf] }
  0x27   :  { %227 = vmatmul.bf16.vlgmr.msra.gmra.mxu2 %v32_v8  ;;  %v2212_v8 = vor.u32 %v2916_v2, %v2209_v5  ;;  %v2955_v5 = vld [vmem:[%s4497_s1 + $0xac] sm:$0xf] }
  0x29   :  { %461 = vmatpush.bf16.msrb.mxu0 %v2260_v26  ;;  %474 = vmatpush.bf16.msrb.mxu1 %v2264_v27 }
  0x2a   :  { %452 = vmatpush.bf16.msra.mxu3 %v2208_v4  ;;  %v2368_v4 = vld [vmem:[%s4497_s1 + $0xa8] sm:$0xf] }
  0x2d   :  { %462 = vmatpush.bf16.msrb.mxu0 %v2248_v34  ;;  %475 = vmatpush.bf16.msrb.mxu1 %v2252_v37  ;;  %v2192_v34 = vor.u32 %v2912_v33, %v2191_v30  ;;  %v2951_v30 = vld [vmem:[%s4497_s1 + $0x88] sm:$0xf0] }
  0x2e   :  { %453 = vmatpush.bf16.msra.mxu3 %v2196_v15  ;;  %v2952_v15 = vld [vmem:[%s4497_s1 + $0x94] sm:$0xf] }
  0x31   :  { %463 = vmatpush.bf16.msrb.mxu0 %v2236_v47  ;;  %476 = vmatpush.bf16.msrb.mxu1 %v2240_v48 }
  0x32   :  { %454 = vmatpush.bf16.msra.mxu3 %v2184_v28  ;;  %v2346_v28 = vld [vmem:[%s4497_s1 + $0x84] sm:$0xf0] }
  0x33   :  { %v2349_v33 = vor.u32 %v2949_v25, %v2346_v28  ;;  %v2936_v25 = vld [vmem:[%s4497_s1 + $0x10] sm:$0xf0] }
  0x35   :  { %464 = vmatpush.bf16.msrb.mxu0 %v2224_v61  ;;  %477 = vmatpush.bf16.msrb.mxu1 %v2228_v62 }
  0x39   :  { %465 = vmatpush.bf16.msrb.mxu0 %v2212_v8  ;;  %478 = vmatpush.bf16.msrb.mxu1 %v2216_v9  ;;  %v2376_v8 = vld [vmem:[%s4497_s1 + $0xb0] sm:$0xf]  ;;  %v2957_v9 = vld [vmem:[%s4497_s1 + $0xb8] sm:$0xf0] }
  0x3d   :  { %466 = vmatpush.bf16.msrb.mxu0 %v2200_v21  ;;  %479 = vmatpush.bf16.msrb.mxu1 %v2204_v22  ;;  %v2361_v21 = vor.u32 %v2952_v15, %v2358_v17  ;;  %v2284_v17 = vld [vmem:[%s4497_s1] sm:$0xf] }
  0x41   :  { %467 = vmatpush.bf16.msrb.mxu0 %v2188_v32  ;;  %480 = vmatpush.bf16.msrb.mxu1 %v2192_v34  ;;  %v2353_v34 = vor.u32 %v2951_v30, %v2352_v29 }
  0xa0   :  { %v202_v49 = vpop.f32.mrf.mxu0 }
  0xa1   :  { %v234_v50 = vadd.f32 %v232_v38, %v202_v49  ;;  %v215_v51 = vpop.f32.mrf.mxu1 }
  0xa2   :  { %v235_v55 = vadd.f32 %v233_v42, %v215_v51  ;;  %v274_v51 = vunpack.c.l.bf16 %v31_v45  ;;  %v2948_v45 = vld [vmem:[%s4497_s1 + $0x70] sm:$0xf0] }
  0xa3   :  { %v2177_v60 = vmul.f32 -1.442695, %v234_v50 }
  0xa4   :  { %v2178_v63 = vmul.f32 -1.442695, %v235_v55 }
  0xa5   :  { %3079 = vpow2.f32 %v2177_v60 }
  0xa6   :  { %3081 = vpow2.f32 %v2178_v63 }
  0xa8   :  { %v204_v10 = vpop.f32.mrf.mxu0 }
  0xa9   :  { %v217_v11 = vpop.f32.mrf.mxu1  ;;  %v2373_v10 = vor.u32 %v2955_v5, %v2370_v7  ;;  %v2938_v7 = vld [vmem:[%s4497_s1 + $0x20] sm:$0xf0] }
  0xaa   :  { %v228_v20 = vpop.f32.mrf.mxu2  ;;  %v2377_v11 = vor.u32 %v2957_v9, %v2376_v8  ;;  %v2937_v9 = vld [vmem:[%s4497_s1 + $0x1c] sm:$0xf] }
  0xab   :  { %v3080_v19 = vpop.eup %3079  ;;  %v275_v47 = vadd.f32 %v3491_v39, %v228_v20  ;;  %715 = vmatpush.bf16.msrb.mxu3 %v2373_v10  ;;  %v487_v20 = vunpack.c.h.bf16 %v2179_v12  ;;  %v2298_v10 = vld [vmem:[%s4497_s1 + $0x24] sm:$0xf0] }
  0xac   :  { %v3082_v26 = vpop.eup %3081  ;;  %v242_v27 = vadd.f32 1.0, %v3080_v19  ;;  %728 = vmatpush.bf16.msra.mxu0 %v2377_v11  ;;  %v2954_v19 = vld [vmem:[%s4497_s1 + $0xa0] sm:$0xf0]  ;;  %v2304_v11 = vld [vmem:[%s4497_s1 + $0x20] sm:$0xf] }
  0xad   :  { %v243_v31 = vadd.f32 1.0, %v3082_v26  ;;  %v2365_v22 = vor.u32 %v2954_v19, %v2364_v18  ;;  %v2935_v18 = vld [vmem:[%s4497_s1 + $0x8] sm:$0xf0] }
  0xae   :  { %3083 = vrcp.f32 %v242_v27  ;;  %v255_v42 = vand.u32 2147483648, %v242_v27  ;;  %v253_v44 = vand.u32 2147483647, %v242_v27  ;;  %vm249_vm1 = vweird.f32 %v242_v27 }
  0xaf   :  { %3085 = vrcp.f32 %v243_v31  ;;  %vm264_vm4 = vweird.f32 %v243_v31  ;;  %v270_v56 = vand.u32 2147483648, %v243_v31  ;;  %v268_v58 = vand.u32 2147483647, %v243_v31  ;;  %716 = vmatpush.bf16.msrb.mxu3 %v2361_v21  ;;  %v2286_v21 = vld [vmem:[%s4497_s1 + $0xc] sm:$0xf0] }
  0xb0   :  { %v256_v49 = vor.u32 1.1754944e-38, %v255_v42  ;;  %vm254_vm3 = vcmp.eq.f32.partialorder %v253_v44, 8.507059e+37  ;;  %729 = vmatpush.bf16.msra.mxu0 %v2365_v22  ;;  %v2334_v42 = vld [vmem:[%s4497_s1 + $0x6c] sm:$0xf0] }
  0xb1   :  { %v271_v59 = vor.u32 1.1754944e-38, %v270_v56  ;;  %vm269_vm7 = vcmp.eq.f32.partialorder %v268_v58, 8.507059e+37  ;;  %v2945_v56 = vld [vmem:[%s4497_s1 + $0x58] sm:$0xf0] }
  0xb2   :  { %v230_v35 = vpop.f32.mrf.mxu2  ;;  %v2941_v58 = vld [vmem:[%s4497_s1 + $0x38] sm:$0xf0] }
  0xb3   :  { %717 = vmatpush.bf16.msrb.mxu3 %v2349_v33 }
  0xb4   :  { %v3084_v36 = vpop.eup %3083  ;;  %730 = vmatpush.bf16.msra.mxu0 %v2353_v34 }
  0xb5   :  { %v3086_v37 = vpop.eup %3085  ;;  %v245_v38 = vmul.f32 %v3084_v36, %v242_v27  ;;  %vm250_vm0 = vweird.f32 %v3084_v36  ;;  %v2345_v27 = vor.u32 %v2950_v24, %v2344_v23  ;;  %v2292_v24 = vld [vmem:[%s4497_s1 + $0x8] sm:$0xf] }
  0xb6   :  { %v260_v41 = vmul.f32 %v3086_v37, %v243_v31  ;;  %vm251_vm2 = vmor %vm249_vm1, %vm250_vm0  ;;  %vm265_vm5 = vweird.f32 %v3086_v37  ;;  %v2293_v29 = vor.u32 %v2936_v25, %v2292_v24 }
  0xb7   :  { %v246_v40 = vsub.f32 1.0, %v245_v38  ;;  %vm266_vm6 = vmor %vm264_vm4, %vm265_vm5  ;;  %v2947_v38 = vld [vmem:[%s4497_s1 + $0x68] sm:$0xf0] }
  0xb8   :  { %v261_v48 = vsub.f32 1.0, %v260_v41  ;;  %v2946_v41 = vld [vmem:[%s4497_s1 + $0x64] sm:$0xf] }
  0xb9   :  { %v247_v43 = vmul.f32 %v3084_v36, %v246_v40  ;;  %v2337_v44 = vor.u32 %v2946_v41, %v2334_v42 }
  0xba   :  { %v262_v54 = vmul.f32 %v3086_v37, %v261_v48 }
  0xbb   :  { %v248_v46 = vadd.f32 %v3084_v36, %v247_v43  ;;  %v2340_v43 = vld [vmem:[%s4497_s1 + $0x68] sm:$0xf]  ;;  %718 = vmatpush.bf16.msrb.mxu3 %v2337_v44 }
  0xbc   :  { %v263_v57 = vadd.f32 %v3086_v37, %v262_v54 }
  0xbd   :  { %v252_v50 = vsel %vm251_vm2, %v3084_v36, %v248_v46  ;;  %v486_v36 = vunpack.c.l.bf16 %v2179_v12  ;;  %v2320_v46 = vld [vmem:[%s4497_s1 + $0x48] sm:$0xf]  ;;  %v2939_v12 = vld [vmem:[%s4497_s1 + $0x28] sm:$0xf0] }
  0xbe   :  { %v257_v52 = vsel %vm254_vm3, %v256_v49, %v252_v50  ;;  %v267_v60 = vsel %vm266_vm6, %v3086_v37, %v263_v57  ;;  %v2332_v37 = vld [vmem:[%s4497_s1 + $0x60] sm:$0xf]  ;;  %v2341_v49 = vor.u32 %v2948_v45, %v2340_v43  ;;  %v2308_v57 = vld [vmem:[%s4497_s1 + $0x30] sm:$0xf]  ;;  %v2305_v19 = vor.u32 %v2939_v12, %v2304_v11  ;;  %v2465_v11 = vld [vmem:[%s4497_s1 + $0x98] sm:$0xf] }
  0xbf   :  { %v276_v53 = vmul.f32 %v275_v47, %v257_v52  ;;  %v272_v63 = vsel %vm269_vm7, %v271_v59, %v267_v60  ;;  %v2333_v40 = vor.u32 %v2947_v38, %v2332_v37  ;;  %v2944_v47 = vld [vmem:[%s4497_s1 + $0x50] sm:$0xf0]  ;;  %v2322_v52 = vld [vmem:[%s4497_s1 + $0x54] sm:$0xf0]  ;;  %v2978_v12 = vld [vmem:[%s4497_s1 + $0xa0] sm:$0xf0] }
  0xc0   :  { %v2321_v50 = vor.u32 %v2944_v47, %v2320_v46  ;;  %731 = vmatpush.bf16.msra.mxu0 %v2341_v49 }
  0xc1   :  { %v277_v55 = vadd.f32 %v276_v53, %v274_v51  ;;  %v2943_v51 = vld [vmem:[%s4497_s1 + $0x4c] sm:$0xf]  ;;  %v2328_v53 = vld [vmem:[%s4497_s1 + $0x50] sm:$0xf] }
  0xc2   :  { %v2329_v60 = vor.u32 %v2945_v56, %v2328_v53 }
  0xc3   :  { %3087 = vtanh.f32 %v277_v55  ;;  %v2325_v55 = vor.u32 %v2943_v51, %v2322_v52 }
  0xc4   :  { %732 = vmatpush.bf16.msra.mxu0 %v2329_v60 }
  0xc5   :  { %719 = vmatpush.bf16.msrb.mxu3 %v2325_v55 }
  0xc9   :  { %v3088_v61 = vpop.eup %3087 }
  0xca   :  { %v279_v62 = vsub.f32 %v3331_v3, %v3088_v61  ;;  %v2956_v3 = vld [vmem:[%s4497_s1 + $0xb0] sm:$0xf0] }
  0xcb   :  { %v2369_v6 = vor.u32 %v2956_v3, %v2368_v4  ;;  %v2942_v4 = vld [vmem:[%s4497_s1 + $0x40] sm:$0xf0]  ;;  %v2309_v3 = vor.u32 %v2941_v58, %v2308_v57 }
  0xcc   :  { %v280_v0 = vmul.f32 %v279_v62, %v272_v63  ;;  %v2310_v62 = vld [vmem:[%s4497_s1 + $0x3c] sm:$0xf0] }
  0xcd   :  { %702 = vmatpush.bf16.msrb.mxu2 %v2369_v6  ;;  %v2296_v6 = vld [vmem:[%s4497_s1 + $0x18] sm:$0xf] }
  0xce   :  { %v3498_v1 = vadd.f32 %v3088_v61, %v280_v0  ;;  %v2940_v61 = vld [vmem:[%s4497_s1 + $0x34] sm:$0xf]  ;;  %v2297_v15 = vor.u32 %v2938_v7, %v2296_v6  ;;  %v2457_v6 = vld [vmem:[%s4497_s1 + $0x90] sm:$0xf]  ;;  %v2977_v7 = vld [vmem:[%s4497_s1 + $0x98] sm:$0xf0] }
  0xcf   :  { %v2313_v5 = vor.u32 %v2940_v61, %v2310_v62  ;;  %v2469_v61 = vld [vmem:[%s4497_s1 + $0xa8] sm:$0xf]  ;;  %v2979_v62 = vld [vmem:[%s4497_s1 + $0xac] sm:$0xf] }
  0xd0   :  { %282 = vst [vmem:[%s4501_s4] sm:$0xff] %v3498_v1  ;;  %v286_v2 = vpack.c.bf16 %v3498_v1, %v3498_v1 }
  0xd1   :  { %703 = vmatpush.bf16.msrb.mxu2 %v2357_v16  ;;  %720 = vmatpush.bf16.msrb.mxu3 %v2313_v5  ;;  %v2301_v16 = vor.u32 %v2937_v9, %v2298_v10  ;;  %v2458_v9 = vor.u32 %v2977_v7, %v2457_v6  ;;  %v2459_v10 = vld [vmem:[%s4497_s1 + $0x9c] sm:$0xf0] }
  0xd2   :  { %455 = vmatmul.bf16.vlgmr.msra.gmra.mxu3 %v286_v2  ;;  %468 = vmatmul.bf16.vlgmr.msrb.gmra.mxu0 %v286_v2 }
  0xd3   :  { %481 = vmatmul.bf16.vlgmr.msrb.gmra.mxu1 %v286_v2  ;;  %v2316_v2 = vld [vmem:[%s4497_s1 + $0x38] sm:$0xf] }
  0xd4   :  { %v2317_v8 = vor.u32 %v2942_v4, %v2316_v2  ;;  %v2477_v2 = vld [vmem:[%s4497_s1 + $0xb0] sm:$0xf]  ;;  %v2981_v4 = vld [vmem:[%s4497_s1 + $0xb8] sm:$0xf0] }
  0xd5   :  { %704 = vmatpush.bf16.msrb.mxu2 %v2345_v27  ;;  %v2285_v27 = vor.u32 %v2935_v18, %v2284_v17  ;;  %721 = vmatpush.bf16.msrb.mxu3 %v2301_v16  ;;  %v2478_v5 = vor.u32 %v2981_v4, %v2477_v2  ;;  %v2445_v16 = vld [vmem:[%s4497_s1 + $0x78] sm:$0xf]  ;;  %v2974_v17 = vld [vmem:[%s4497_s1 + $0x80] sm:$0xf0]  ;;  %v2973_v18 = vld [vmem:[%s4497_s1 + $0x7c] sm:$0xf] }
  0xd6   :  { %733 = vmatpush.bf16.msra.mxu0 %v2317_v8  ;;  %v2976_v8 = vld [vmem:[%s4497_s1 + $0x94] sm:$0xf]  ;;  %v2961_v2 = vld [vmem:[%s4497_s1 + $0x1c] sm:$0xf]  ;;  %v2399_v4 = vld [vmem:[%s4497_s1 + $0x24] sm:$0xf0] }
  0xd9   :  { %705 = vmatpush.bf16.msrb.mxu2 %v2333_v40  ;;  %v2180_v40 = vld [vmem:[%s4500_s0 + $0x14] sm:$0xf] }
  0xda   :  { %734 = vmatpush.bf16.msra.mxu0 %v2305_v19  ;;  %v528_v46 = vunpack.c.l.bf16 %v2180_v40  ;;  %v2446_v19 = vor.u32 %v2974_v17, %v2445_v16  ;;  %v2968_v40 = vld [vmem:[%s4497_s1 + $0x50] sm:$0xf0] }
  0xdb   :  { %v2960_v16 = vld [vmem:[%s4497_s1 + $0x10] sm:$0xf0] }
  0xdd   :  { %706 = vmatpush.bf16.msrb.mxu2 %v2321_v50 }
  0xde   :  { %735 = vmatpush.bf16.msra.mxu0 %v2293_v29  ;;  %v2971_v29 = vld [vmem:[%s4497_s1 + $0x68] sm:$0xf0] }
  0xe1   :  { %707 = vmatpush.bf16.msrb.mxu2 %v2309_v3 }
  0xe5   :  { %708 = vmatpush.bf16.msrb.mxu2 %v2297_v15  ;;  %v2280_v15 = vld [vmem:[%s4500_s0 + $0x18] sm:$0xff] }
  0xe9   :  { %709 = vmatpush.bf16.msrb.mxu2 %v2285_v27  ;;  %v742_v27 = vunpack.c.h.bf16 %v2280_v15 }
 0x14f   :  { %v469_v26 = vpop.f32.mrf.mxu0 }
 0x150   :  { %v489_v31 = vadd.f32 %v487_v20, %v469_v26  ;;  %v3563_v32 = vpop.f32.mrf.mxu1  ;;  %v2934_v20 = vld [vmem:[%s4497_s1 + $0x4] sm:$0xf] }
 0x151   :  { %v2289_v28 = vor.u32 %v2934_v20, %v2286_v21  ;;  %v529_v44 = vadd.f32 %v3491_v39, %v3563_v32  ;;  %v2447_v20 = vld [vmem:[%s4497_s1 + $0x84] sm:$0xf0]  ;;  %v2453_v21 = vld [vmem:[%s4497_s1 + $0x80] sm:$0xf] }
 0x152   :  { %v2278_v35 = vmul.f32 -1.442695, %v489_v31  ;;  %v2450_v24 = vor.u32 %v2973_v18, %v2447_v20 }
 0x153   :  { %722 = vmatpush.bf16.msrb.mxu3 %v2289_v28  ;;  %v2433_v28 = vld [vmem:[%s4497_s1 + $0x60] sm:$0xf] }
 0x154   :  { %3089 = vpow2.f32 %v2278_v35 }
 0x155   :  { %v456_v48 = vpop.f32.mrf.mxu3 }
 0x156   :  { %v488_v54 = vadd.f32 %v486_v36, %v456_v48 }
 0x157   :  { %v471_v59 = vpop.f32.mrf.mxu0  ;;  %983 = vmatpush.bf16.msra.mxu3 %v2478_v5  ;;  %v2963_v5 = vld [vmem:[%s4497_s1 + $0x28] sm:$0xf0] }
 0x158   :  { %v2277_v63 = vmul.f32 -1.442695, %v488_v54  ;;  %v484_v0 = vpop.f32.mrf.mxu1 }
 0x159   :  { %v2471_v0 = vld [vmem:[%s4497_s1 + $0xb4] sm:$0xf0] }
 0x15a   :  { %3091 = vpow2.f32 %v2277_v63  ;;  %v3090_v13 = vpop.eup %3089  ;;  %v2474_v3 = vor.u32 %v2979_v62, %v2471_v0  ;;  %v2962_v0 = vld [vmem:[%s4497_s1 + $0x20] sm:$0xf0] }
 0x15b   :  { %v497_v23 = vadd.f32 1.0, %v3090_v13  ;;  %v2462_v13 = vor.u32 %v2976_v8, %v2459_v10 }
 0x15c   :  { %970 = vmatpush.bf16.msra.mxu2 %v2474_v3  ;;  %v2405_v3 = vld [vmem:[%s4497_s1 + $0x20] sm:$0xf] }
 0x15d   :  { %v458_v14 = vpop.f32.mrf.mxu3  ;;  %v524_v52 = vand.u32 2147483648, %v497_v23  ;;  %vm518_vm13 = vweird.f32 %v497_v23  ;;  %v522_v53 = vand.u32 2147483647, %v497_v23  ;;  %v2406_v10 = vor.u32 %v2963_v5, %v2405_v3  ;;  %v2560_v3 = vld [vmem:[%s4497_s1 + $0x9c] sm:$0xf0] }
 0x15e   :  { %v2466_v14 = vor.u32 %v2978_v12, %v2465_v11  ;;  %v2385_v11 = vld [vmem:[%s4497_s1] sm:$0xf]  ;;  %v2959_v12 = vld [vmem:[%s4497_s1 + $0x8] sm:$0xf0]  ;;  %v2566_v5 = vld [vmem:[%s4497_s1 + $0x98] sm:$0xf] }
 0x15f   :  { %v525_v56 = vor.u32 1.1754944e-38, %v524_v52  ;;  %vm523_vm15 = vcmp.eq.f32.partialorder %v522_v53, 8.507059e+37  ;;  %v2965_v52 = vld [vmem:[%s4497_s1 + $0x38] sm:$0xf0]  ;;  %v2964_v53 = vld [vmem:[%s4497_s1 + $0x34] sm:$0xf]  ;;  %v2386_v20 = vor.u32 %v2959_v12, %v2385_v11 }
 0x160   :  { %v3092_v22 = vpop.eup %3091  ;;  %971 = vmatpush.bf16.msra.mxu2 %v2462_v13  ;;  %984 = vmatpush.bf16.msra.mxu3 %v2466_v14  ;;  %v2958_v13 = vld [vmem:[%s4497_s1 + $0x4] sm:$0xf]  ;;  %v2387_v14 = vld [vmem:[%s4497_s1 + $0xc] sm:$0xf0]  ;;  %v2997_v12 = vld [vmem:[%s4497_s1 + $0x7c] sm:$0xf] }
 0x161   :  { %v496_v26 = vadd.f32 1.0, %v3092_v22  ;;  %v2975_v22 = vld [vmem:[%s4497_s1 + $0x88] sm:$0xf0]  ;;  %v2998_v11 = vld [vmem:[%s4497_s1 + $0x80] sm:$0xf0] }
 0x162   :  { %v2454_v25 = vor.u32 %v2975_v22, %v2453_v21  ;;  %v2390_v22 = vor.u32 %v2958_v13, %v2387_v14  ;;  %v2548_v14 = vld [vmem:[%s4497_s1 + $0x84] sm:$0xf0] }
 0x163   :  { %3093 = vrcp.f32 %v496_v26  ;;  %v509_v36 = vand.u32 2147483648, %v496_v26  ;;  %v507_v38 = vand.u32 2147483647, %v496_v26  ;;  %vm503_vm9 = vweird.f32 %v496_v26 }
 0x164   :  { %3095 = vrcp.f32 %v497_v23  ;;  %972 = vmatpush.bf16.msra.mxu2 %v2450_v24  ;;  %985 = vmatpush.bf16.msra.mxu3 %v2454_v25 }
 0x165   :  { %v510_v43 = vor.u32 1.1754944e-38, %v509_v36  ;;  %vm508_vm11 = vcmp.eq.f32.partialorder %v507_v38, 8.507059e+37  ;;  %v2421_v38 = vld [vmem:[%s4497_s1 + $0x48] sm:$0xf] }
 0x169   :  { %v3094_v30 = vpop.eup %3093 }
 0x16a   :  { %v3096_v31 = vpop.eup %3095  ;;  %v499_v33 = vmul.f32 %v3094_v30, %v496_v26  ;;  %vm504_vm8 = vweird.f32 %v3094_v30  ;;  %v741_v26 = vunpack.c.l.bf16 %v2280_v15  ;;  %v2393_v15 = vld [vmem:[%s4497_s1 + $0x8] sm:$0xf] }
 0x16b   :  { %v514_v35 = vmul.f32 %v3096_v31, %v497_v23  ;;  %vm505_vm10 = vmor %vm503_vm9, %vm504_vm8  ;;  %vm519_vm12 = vweird.f32 %v3096_v31  ;;  %v2394_v24 = vor.u32 %v2960_v16, %v2393_v15  ;;  %v2554_v15 = vld [vmem:[%s4497_s1 + $0x80] sm:$0xf]  ;;  %v2999_v16 = vld [vmem:[%s4497_s1 + $0x88] sm:$0xf0] }
 0x16c   :  { %v500_v34 = vsub.f32 1.0, %v499_v33  ;;  %vm520_vm14 = vmor %vm518_vm13, %vm519_vm12  ;;  %v2435_v33 = vld [vmem:[%s4497_s1 + $0x6c] sm:$0xf0] }
 0x16d   :  { %v515_v42 = vsub.f32 1.0, %v514_v35  ;;  %v2972_v35 = vld [vmem:[%s4497_s1 + $0x70] sm:$0xf0] }
 0x16e   :  { %v501_v37 = vmul.f32 %v3094_v30, %v500_v34  ;;  %v2441_v34 = vld [vmem:[%s4497_s1 + $0x68] sm:$0xf] }
 0x16f   :  { %v516_v49 = vmul.f32 %v3096_v31, %v515_v42 }
 0x170   :  { %v502_v41 = vadd.f32 %v3094_v30, %v501_v37  ;;  %v2442_v37 = vor.u32 %v2972_v35, %v2441_v34  ;;  %v2281_v34 = vld [vmem:[%s4500_s0 + $0x20] sm:$0xf] }
 0x171   :  { %v517_v51 = vadd.f32 %v3096_v31, %v516_v49 }
 0x172   :  { %v506_v45 = vsel %vm505_vm10, %v3094_v30, %v502_v41  ;;  %v2970_v30 = vld [vmem:[%s4497_s1 + $0x64] sm:$0xf]  ;;  %v2967_v41 = vld [vmem:[%s4497_s1 + $0x4c] sm:$0xf]  ;;  %986 = vmatpush.bf16.msra.mxu3 %v2442_v37 }
 0x173   :  { %v511_v47 = vsel %vm508_vm11, %v510_v43, %v506_v45  ;;  %v521_v54 = vsel %vm520_vm14, %v3096_v31, %v517_v51  ;;  %v2434_v31 = vor.u32 %v2971_v29, %v2433_v28  ;;  %v2438_v36 = vor.u32 %v2970_v30, %v2435_v33  ;;  %v2423_v45 = vld [vmem:[%s4497_s1 + $0x54] sm:$0xf0]  ;;  %v2409_v51 = vld [vmem:[%s4497_s1 + $0x30] sm:$0xf] }
 0x174   :  { %v530_v48 = vmul.f32 %v529_v44, %v511_v47  ;;  %v526_v57 = vsel %vm523_vm15, %v525_v56, %v521_v54  ;;  %v2422_v44 = vor.u32 %v2968_v40, %v2421_v38  ;;  %v2969_v47 = vld [vmem:[%s4497_s1 + $0x58] sm:$0xf0]  ;;  %v2417_v56 = vld [vmem:[%s4497_s1 + $0x38] sm:$0xf] }
 0x175   :  { %973 = vmatpush.bf16.msra.mxu2 %v2438_v36 }
 0x176   :  { %v531_v50 = vadd.f32 %v530_v48, %v528_v46  ;;  %v2429_v46 = vld [vmem:[%s4497_s1 + $0x50] sm:$0xf] }
 0x177   :  { %v2430_v54 = vor.u32 %v2969_v47, %v2429_v46 }
 0x178   :  { %3097 = vtanh.f32 %v531_v50  ;;  %v2426_v50 = vor.u32 %v2967_v41, %v2423_v45  ;;  %v783_v41 = vunpack.c.l.bf16 %v2281_v34  ;;  %v2992_v34 = vld [vmem:[%s4497_s1 + $0x50] sm:$0xf0] }
 0x179   :  { %987 = vmatpush.bf16.msra.mxu3 %v2430_v54 }
 0x17a   :  { %974 = vmatpush.bf16.msra.mxu2 %v2426_v50 }
 0x17e   :  { %v3098_v55 = vpop.eup %3097 }
 0x17f   :  { %v533_v32 = vsub.f32 %v3498_v1, %v3098_v55  ;;  %v2980_v1 = vld [vmem:[%s4497_s1 + $0xb0] sm:$0xf0] }
 0x180   :  { %v2470_v63 = vor.u32 %v2980_v1, %v2469_v61  ;;  %v2410_v61 = vor.u32 %v2965_v52, %v2409_v51 }
 0x181   :  { %v534_v58 = vmul.f32 %v533_v32, %v526_v57  ;;  %v2966_v32 = vld [vmem:[%s4497_s1 + $0x40] sm:$0xf0] }
 0x182   :  { %957 = vmatpush.bf16.msra.mxu1 %v2470_v63  ;;  %v2418_v62 = vor.u32 %v2966_v32, %v2417_v56  ;;  %v2397_v63 = vld [vmem:[%s4497_s1 + $0x18] sm:$0xf]  ;;  %v2570_v56 = vld [vmem:[%s4497_s1 + $0xa8] sm:$0xf]  ;;  %v3003_v32 = vld [vmem:[%s4497_s1 + $0xac] sm:$0xf] }
 0x183   :  { %v3661_v59 = vadd.f32 %v3098_v55, %v534_v58  ;;  %v2411_v55 = vld [vmem:[%s4497_s1 + $0x3c] sm:$0xf0]  ;;  %v2398_v8 = vor.u32 %v2962_v0, %v2397_v63  ;;  %v2558_v63 = vld [vmem:[%s4497_s1 + $0x90] sm:$0xf]  ;;  %v3001_v0 = vld [vmem:[%s4497_s1 + $0x98] sm:$0xf0] }
 0x184   :  { %v2414_v1 = vor.u32 %v2964_v53, %v2411_v55  ;;  %988 = vmatpush.bf16.msra.mxu3 %v2418_v62 }
 0x185   :  { %2279 = vst [vmem:[%s4501_s4 + $0x8] sm:$0xff] %v3661_v59  ;;  %v541_v60 = vpack.c.bf16 %v3661_v59, %v3661_v59 }
 0x186   :  { %958 = vmatpush.bf16.msra.mxu1 %v2458_v9  ;;  %975 = vmatpush.bf16.msra.mxu2 %v2414_v1  ;;  %v2402_v9 = vor.u32 %v2961_v2, %v2399_v4  ;;  %v3000_v2 = vld [vmem:[%s4497_s1 + $0x94] sm:$0xf]  ;;  %v2559_v4 = vor.u32 %v3001_v0, %v2558_v63 }
 0x187   :  { %710 = vmatmul.bf16.vlgmr.msrb.gmra.mxu2 %v541_v60  ;;  %723 = vmatmul.bf16.vlgmr.msrb.gmra.mxu3 %v541_v60 }
 0x188   :  { %736 = vmatmul.bf16.vlgmr.msra.gmra.mxu0 %v541_v60  ;;  %989 = vmatpush.bf16.msra.mxu3 %v2406_v10  ;;  %v2546_v10 = vld [vmem:[%s4497_s1 + $0x78] sm:$0xf] }
 0x189   :  { %v2547_v13 = vor.u32 %v2998_v11, %v2546_v10  ;;  %v2494_v11 = vld [vmem:[%s4497_s1 + $0x8] sm:$0xf] }
 0x18a   :  { %959 = vmatpush.bf16.msra.mxu1 %v2446_v19  ;;  %976 = vmatpush.bf16.msra.mxu2 %v2402_v9  ;;  %v2381_v9 = vld [vmem:[%s4500_s0 + $0x24] sm:$0xff] }
 0x18c   :  { %990 = vmatpush.bf16.msra.mxu3 %v2394_v24 }
 0x18e   :  { %960 = vmatpush.bf16.msra.mxu1 %v2434_v31  ;;  %977 = vmatpush.bf16.msra.mxu2 %v2390_v22  ;;  %v2994_v22 = vld [vmem:[%s4497_s1 + $0x64] sm:$0xf] }
 0x192   :  { %961 = vmatpush.bf16.msra.mxu1 %v2422_v44 }
 0x196   :  { %962 = vmatpush.bf16.msra.mxu1 %v2410_v61  ;;  %v3005_v61 = vld [vmem:[%s4497_s1 + $0xb8] sm:$0xf0] }
 0x19a   :  { %963 = vmatpush.bf16.msra.mxu1 %v2398_v8 }
 0x19e   :  { %964 = vmatpush.bf16.msra.mxu1 %v2386_v20  ;;  %v2534_v20 = vld [vmem:[%s4497_s1 + $0x60] sm:$0xf] }
 0x205   :  { %v3726_v23 = vpop.f32.mrf.mxu0 }
 0x206   :  { %v784_v38 = vadd.f32 %v3491_v39, %v3726_v23 }
 0x20a   :  { %v711_v42 = vpop.f32.mrf.mxu2  ;;  %v724_v43 = vpop.f32.mrf.mxu3 }
 0x20b   :  { %v743_v48 = vadd.f32 %v741_v26, %v711_v42  ;;  %v744_v49 = vadd.f32 %v742_v27, %v724_v43 }
 0x20d   :  { %v2378_v57 = vmul.f32 -1.442695, %v743_v48  ;;  %v2379_v58 = vmul.f32 -1.442695, %v744_v49  ;;  %v739_v60 = vpop.f32.mrf.mxu0 }
 0x20e   :  { %v2578_v60 = vld [vmem:[%s4497_s1 + $0xb0] sm:$0xf] }
 0x20f   :  { %3099 = vpow2.f32 %v2378_v57  ;;  %v2579_v62 = vor.u32 %v3005_v61, %v2578_v60  ;;  %v2985_v61 = vld [vmem:[%s4497_s1 + $0x1c] sm:$0xf] }
 0x210   :  { %3101 = vpow2.f32 %v2379_v58  ;;  %v2572_v58 = vld [vmem:[%s4497_s1 + $0xb4] sm:$0xf0] }
 0x211   :  { %v2575_v1 = vor.u32 %v3003_v32, %v2572_v58  ;;  %1238 = vmatpush.bf16.msrb.mxu2 %v2579_v62  ;;  %v2986_v58 = vld [vmem:[%s4497_s1 + $0x20] sm:$0xf0]  ;;  %v2506_v62 = vld [vmem:[%s4497_s1 + $0x20] sm:$0xf] }
 0x212   :  { %v713_v6 = vpop.f32.mrf.mxu2  ;;  %v726_v7 = vpop.f32.mrf.mxu3 }
 0x213   :  { %1225 = vmatpush.bf16.msrb.mxu1 %v2575_v1  ;;  %v3002_v6 = vld [vmem:[%s4497_s1 + $0xa0] sm:$0xf0]  ;;  %v2563_v7 = vor.u32 %v3000_v2, %v2560_v3  ;;  %v2500_v1 = vld [vmem:[%s4497_s1 + $0x24] sm:$0xf0]  ;;  %v2987_v2 = vld [vmem:[%s4497_s1 + $0x28] sm:$0xf0] }
 0x214   :  { %v2567_v8 = vor.u32 %v3002_v6, %v2566_v5  ;;  %v2503_v0 = vor.u32 %v2985_v61, %v2500_v1  ;;  %v2983_v3 = vld [vmem:[%s4497_s1 + $0x8] sm:$0xf0]  ;;  %v2507_v6 = vor.u32 %v2987_v2, %v2506_v62  ;;  %v2661_v61 = vld [vmem:[%s4497_s1 + $0x9c] sm:$0xf0]  ;;  %v2667_v1 = vld [vmem:[%s4497_s1 + $0x98] sm:$0xf] }
 0x215   :  { %v3100_v17 = vpop.eup %3099  ;;  %v3026_v62 = vld [vmem:[%s4497_s1 + $0xa0] sm:$0xf0]  ;;  %v2482_v2 = vld [vmem:[%s4500_s0 + $0x30] sm:$0xff] }
 0x216   :  { %v3102_v18 = vpop.eup %3101  ;;  %v751_v19 = vadd.f32 1.0, %v3100_v17  ;;  %1239 = vmatpush.bf16.msrb.mxu2 %v2567_v8  ;;  %v2551_v17 = vor.u32 %v2997_v12, %v2548_v14  ;;  %v2982_v8 = vld [vmem:[%s4497_s1 + $0x4] sm:$0xf]  ;;  %v2984_v12 = vld [vmem:[%s4497_s1 + $0x10] sm:$0xf0] }
 0x217   :  { %v752_v21 = vadd.f32 1.0, %v3102_v18  ;;  %1226 = vmatpush.bf16.msrb.mxu1 %v2563_v7  ;;  %v2555_v18 = vor.u32 %v2999_v16, %v2554_v15  ;;  %v2495_v15 = vor.u32 %v2984_v12, %v2494_v11  ;;  %v1251_v12 = vunpack.c.l.bf16 %v2482_v2 }
 0x218   :  { %3103 = vrcp.f32 %v751_v19  ;;  %v764_v29 = vand.u32 2147483648, %v751_v19  ;;  %v762_v33 = vand.u32 2147483647, %v751_v19  ;;  %vm758_vm1 = vweird.f32 %v751_v19 }
 0x219   :  { %3105 = vrcp.f32 %v752_v21  ;;  %v779_v47 = vand.u32 2147483648, %v752_v21  ;;  %vm773_vm5 = vweird.f32 %v752_v21  ;;  %v777_v48 = vand.u32 2147483647, %v752_v21 }
 0x21a   :  { %v765_v36 = vor.u32 1.1754944e-38, %v764_v29  ;;  %vm763_vm3 = vcmp.eq.f32.partialorder %v762_v33, 8.507059e+37  ;;  %1240 = vmatpush.bf16.msrb.mxu2 %v2555_v18  ;;  %v2522_v33 = vld [vmem:[%s4497_s1 + $0x48] sm:$0xf] }
 0x21b   :  { %v780_v51 = vor.u32 1.1754944e-38, %v779_v47  ;;  %vm778_vm7 = vcmp.eq.f32.partialorder %v777_v48, 8.507059e+37  ;;  %1227 = vmatpush.bf16.msrb.mxu1 %v2551_v17  ;;  %v2988_v47 = vld [vmem:[%s4497_s1 + $0x34] sm:$0xf] }
 0x21e   :  { %v3104_v25 = vpop.eup %3103 }
 0x21f   :  { %v3106_v26 = vpop.eup %3105  ;;  %v754_v27 = vmul.f32 %v3104_v25, %v751_v19  ;;  %vm759_vm0 = vweird.f32 %v3104_v25  ;;  %v996_v19 = vunpack.c.l.bf16 %v2381_v9 }
 0x220   :  { %v769_v30 = vmul.f32 %v3106_v26, %v752_v21  ;;  %vm760_vm2 = vmor %vm758_vm1, %vm759_vm0  ;;  %vm774_vm4 = vweird.f32 %v3106_v26  ;;  %v2995_v21 = vld [vmem:[%s4497_s1 + $0x68] sm:$0xf0] }
 0x221   :  { %v755_v28 = vsub.f32 1.0, %v754_v27  ;;  %vm775_vm6 = vmor %vm773_vm5, %vm774_vm4  ;;  %v2535_v24 = vor.u32 %v2995_v21, %v2534_v20  ;;  %v2996_v27 = vld [vmem:[%s4497_s1 + $0x70] sm:$0xf0] }
 0x222   :  { %v770_v37 = vsub.f32 1.0, %v769_v30 }
 0x223   :  { %v756_v31 = vmul.f32 %v3104_v25, %v755_v28 }
 0x224   :  { %v771_v44 = vmul.f32 %v3106_v26, %v770_v37  ;;  %v2524_v37 = vld [vmem:[%s4497_s1 + $0x54] sm:$0xf0] }
 0x225   :  { %v757_v35 = vadd.f32 %v3104_v25, %v756_v31 }
 0x226   :  { %v772_v46 = vadd.f32 %v3106_v26, %v771_v44 }
 0x227   :  { %v761_v40 = vsel %vm760_vm2, %v3104_v25, %v757_v35  ;;  %v2536_v25 = vld [vmem:[%s4497_s1 + $0x6c] sm:$0xf0]  ;;  %v2991_v35 = vld [vmem:[%s4497_s1 + $0x4c] sm:$0xf] }
 0x228   :  { %v766_v42 = vsel %vm763_vm3, %v765_v36, %v761_v40  ;;  %v776_v49 = vsel %vm775_vm6, %v3106_v26, %v772_v46  ;;  %v2542_v26 = vld [vmem:[%s4497_s1 + $0x68] sm:$0xf]  ;;  %v2539_v28 = vor.u32 %v2994_v22, %v2536_v25  ;;  %v2523_v36 = vor.u32 %v2992_v34, %v2522_v33  ;;  %v2993_v40 = vld [vmem:[%s4497_s1 + $0x58] sm:$0xf0]  ;;  %v2382_v22 = vld [vmem:[%s4500_s0 + $0x2c] sm:$0xf] }
 0x229   :  { %v785_v43 = vmul.f32 %v784_v38, %v766_v42  ;;  %v781_v52 = vsel %vm778_vm7, %v780_v51, %v776_v49  ;;  %v2543_v29 = vor.u32 %v2996_v27, %v2542_v26  ;;  %v2530_v38 = vld [vmem:[%s4497_s1 + $0x50] sm:$0xf]  ;;  %v997_v42 = vunpack.c.h.bf16 %v2381_v9  ;;  %v2989_v46 = vld [vmem:[%s4497_s1 + $0x38] sm:$0xf0]  ;;  %v2518_v51 = vld [vmem:[%s4497_s1 + $0x38] sm:$0xf] }
 0x22a   :  { %1228 = vmatpush.bf16.msrb.mxu1 %v2539_v28  ;;  %v2531_v44 = vor.u32 %v2993_v40, %v2530_v38  ;;  %v2488_v9 = vld [vmem:[%s4497_s1 + $0xc] sm:$0xf0] }
 0x22b   :  { %v786_v45 = vadd.f32 %v785_v43, %v783_v41  ;;  %1241 = vmatpush.bf16.msrb.mxu2 %v2543_v29  ;;  %v2527_v43 = vor.u32 %v2991_v35, %v2524_v37  ;;  %v2491_v10 = vor.u32 %v2982_v8, %v2488_v9  ;;  %v2655_v8 = vld [vmem:[%s4497_s1 + $0x80] sm:$0xf]  ;;  %v3023_v9 = vld [vmem:[%s4497_s1 + $0x88] sm:$0xf0] }
 0x22c   :  { %v2656_v11 = vor.u32 %v3023_v9, %v2655_v8 }
 0x22d   :  { %3107 = vtanh.f32 %v786_v45  ;;  %v2510_v45 = vld [vmem:[%s4497_s1 + $0x30] sm:$0xf] }
 0x22e   :  { %1229 = vmatpush.bf16.msrb.mxu1 %v2527_v43  ;;  %v2511_v49 = vor.u32 %v2989_v46, %v2510_v45 }
 0x22f   :  { %1242 = vmatpush.bf16.msrb.mxu2 %v2531_v44 }
 0x233   :  { %v3108_v50 = vpop.eup %3107 }
 0x234   :  { %v788_v23 = vsub.f32 %v3661_v59, %v3108_v50  ;;  %v3004_v59 = vld [vmem:[%s4497_s1 + $0xb0] sm:$0xf0] }
 0x235   :  { %v2571_v57 = vor.u32 %v3004_v59, %v2570_v56 }
 0x236   :  { %v789_v53 = vmul.f32 %v788_v23, %v781_v52  ;;  %v2990_v23 = vld [vmem:[%s4497_s1 + $0x40] sm:$0xf0] }
 0x237   :  { %1212 = vmatpush.bf16.msrb.mxu0 %v2571_v57  ;;  %v2519_v56 = vor.u32 %v2990_v23, %v2518_v51  ;;  %v2498_v57 = vld [vmem:[%s4497_s1 + $0x18] sm:$0xf]  ;;  %v3027_v51 = vld [vmem:[%s4497_s1 + $0xac] sm:$0xf] }
 0x238   :  { %v3824_v54 = vadd.f32 %v3108_v50, %v789_v53  ;;  %v2512_v50 = vld [vmem:[%s4497_s1 + $0x3c] sm:$0xf0]  ;;  %v2499_v60 = vor.u32 %v2986_v58, %v2498_v57  ;;  %v3025_v57 = vld [vmem:[%s4497_s1 + $0x98] sm:$0xf0]  ;;  %v3024_v58 = vld [vmem:[%s4497_s1 + $0x94] sm:$0xf] }
 0x239   :  { %1243 = vmatpush.bf16.msrb.mxu2 %v2519_v56 }
 0x23a   :  { %2380 = vst [vmem:[%s4501_s4 + $0x10] sm:$0xff] %v3824_v54  ;;  %v796_v55 = vpack.c.bf16 %v3824_v54, %v3824_v54 }
 0x23b   :  { %1213 = vmatpush.bf16.msrb.mxu0 %v2559_v4  ;;  %v2486_v4 = vld [vmem:[%s4497_s1] sm:$0xf] }
 0x23c   :  { %965 = vmatmul.bf16.vlgmr.msra.gmra.mxu1 %v796_v55  ;;  %978 = vmatmul.bf16.vlgmr.msra.gmra.mxu2 %v796_v55  ;;  %v2487_v7 = vor.u32 %v2983_v3, %v2486_v4  ;;  %v2647_v4 = vld [vmem:[%s4497_s1 + $0x78] sm:$0xf]  ;;  %v3022_v3 = vld [vmem:[%s4497_s1 + $0x80] sm:$0xf0] }
 0x23d   :  { %991 = vmatmul.bf16.vlgmr.msra.gmra.mxu3 %v796_v55  ;;  %v2515_v55 = vor.u32 %v2988_v47, %v2512_v50  ;;  %1244 = vmatpush.bf16.msrb.mxu2 %v2507_v6  ;;  %v2671_v50 = vld [vmem:[%s4497_s1 + $0xa8] sm:$0xf]  ;;  %v2648_v6 = vor.u32 %v3022_v3, %v2647_v4  ;;  %v2589_v4 = vld [vmem:[%s4497_s1 + $0xc] sm:$0xf0] }
 0x23f   :  { %1214 = vmatpush.bf16.msrb.mxu0 %v2547_v13  ;;  %1230 = vmatpush.bf16.msrb.mxu1 %v2515_v55  ;;  %v3029_v55 = vld [vmem:[%s4497_s1 + $0xb8] sm:$0xf0] }
 0x241   :  { %1245 = vmatpush.bf16.msrb.mxu2 %v2495_v15  ;;  %v3019_v15 = vld [vmem:[%s4497_s1 + $0x68] sm:$0xf0] }
 0x243   :  { %1215 = vmatpush.bf16.msrb.mxu0 %v2535_v24  ;;  %1231 = vmatpush.bf16.msrb.mxu1 %v2503_v0  ;;  %v2668_v0 = vor.u32 %v3026_v62, %v2667_v1  ;;  %v3007_v1 = vld [vmem:[%s4497_s1 + $0x8] sm:$0xf0]  ;;  %v3006_v62 = vld [vmem:[%s4497_s1 + $0x4] sm:$0xf] }
 0x247   :  { %1216 = vmatpush.bf16.msrb.mxu0 %v2523_v36  ;;  %1232 = vmatpush.bf16.msrb.mxu1 %v2491_v10 }
 0x24b   :  { %1217 = vmatpush.bf16.msrb.mxu0 %v2511_v49 }
 0x24f   :  { %1218 = vmatpush.bf16.msrb.mxu0 %v2499_v60 }
 0x253   :  { %1219 = vmatpush.bf16.msrb.mxu0 %v2487_v7  ;;  %v2649_v7 = vld [vmem:[%s4497_s1 + $0x84] sm:$0xf0] }
 0x2b9   :  { %v966_v30 = vpop.f32.mrf.mxu1 }
 0x2ba   :  { %v998_v31 = vadd.f32 %v996_v19, %v966_v30  ;;  %v1038_v30 = vunpack.c.l.bf16 %v2382_v22 }
 0x2bc   :  { %v2479_v41 = vmul.f32 -1.442695, %v998_v31 }
 0x2be   :  { %3109 = vpow2.f32 %v2479_v41 }
 0x2bf   :  { %v979_v48 = vpop.f32.mrf.mxu2 }
 0x2c0   :  { %v999_v52 = vadd.f32 %v997_v42, %v979_v48  ;;  %v992_v53 = vpop.f32.mrf.mxu3 }
 0x2c1   :  { %v968_v59 = vpop.f32.mrf.mxu1  ;;  %v1039_v34 = vadd.f32 %v3491_v39, %v992_v53  ;;  %v2679_v53 = vld [vmem:[%s4497_s1 + $0xb0] sm:$0xf] }
 0x2c2   :  { %v2480_v32 = vmul.f32 -1.442695, %v999_v52  ;;  %v2673_v52 = vld [vmem:[%s4497_s1 + $0xb4] sm:$0xf0]  ;;  %v2680_v59 = vor.u32 %v3029_v55, %v2679_v53  ;;  %v3009_v53 = vld [vmem:[%s4497_s1 + $0x1c] sm:$0xf] }
 0x2c3   :  { %v2676_v56 = vor.u32 %v3027_v51, %v2673_v52  ;;  %v3010_v52 = vld [vmem:[%s4497_s1 + $0x20] sm:$0xf0] }
 0x2c4   :  { %v3110_v63 = vpop.eup %3109  ;;  %3111 = vpow2.f32 %v2480_v32  ;;  %1493 = vmatpush.bf16.msra.mxu1 %v2680_v59  ;;  %v2659_v32 = vld [vmem:[%s4497_s1 + $0x90] sm:$0xf]  ;;  %v2607_v59 = vld [vmem:[%s4497_s1 + $0x20] sm:$0xf] }
 0x2c5   :  { %v1006_v5 = vadd.f32 1.0, %v3110_v63  ;;  %1480 = vmatpush.bf16.msra.mxu0 %v2676_v56  ;;  %v2660_v60 = vor.u32 %v3025_v57, %v2659_v32  ;;  %v2664_v63 = vor.u32 %v3024_v58, %v2661_v61  ;;  %v2601_v56 = vld [vmem:[%s4497_s1 + $0x24] sm:$0xf0]  ;;  %v3011_v32 = vld [vmem:[%s4497_s1 + $0x28] sm:$0xf0] }
 0x2c6   :  { %v2604_v58 = vor.u32 %v3009_v53, %v2601_v56  ;;  %v2587_v61 = vld [vmem:[%s4497_s1] sm:$0xf]  ;;  %v3048_v53 = vld [vmem:[%s4497_s1 + $0x94] sm:$0xf] }
 0x2c7   :  { %3113 = vrcp.f32 %v1006_v5  ;;  %v981_v13 = vpop.f32.mrf.mxu2  ;;  %v1019_v21 = vand.u32 2147483648, %v1006_v5  ;;  %v1017_v25 = vand.u32 2147483647, %v1006_v5  ;;  %vm1013_vm9 = vweird.f32 %v1006_v5  ;;  %v2762_v56 = vld [vmem:[%s4497_s1 + $0x9c] sm:$0xf0] }
 0x2c8   :  { %v994_v14 = vpop.f32.mrf.mxu3  ;;  %1494 = vmatpush.bf16.msra.mxu1 %v2668_v0  ;;  %v1252_v13 = vunpack.c.h.bf16 %v2482_v2  ;;  %v2588_v2 = vor.u32 %v3007_v1, %v2587_v61  ;;  %v2748_v61 = vld [vmem:[%s4497_s1 + $0x78] sm:$0xf]  ;;  %v3046_v1 = vld [vmem:[%s4497_s1 + $0x80] sm:$0xf0] }
 0x2c9   :  { %v1020_v29 = vor.u32 1.1754944e-38, %v1019_v21  ;;  %vm1018_vm11 = vcmp.eq.f32.partialorder %v1017_v25, 8.507059e+37  ;;  %1481 = vmatpush.bf16.msra.mxu0 %v2664_v63  ;;  %v2635_v14 = vld [vmem:[%s4497_s1 + $0x60] sm:$0xf] }
 0x2ca   :  { %v3112_v16 = vpop.eup %3111 }
 0x2cb   :  { %v1007_v17 = vadd.f32 1.0, %v3112_v16  ;;  %v3018_v16 = vld [vmem:[%s4497_s1 + $0x64] sm:$0xf] }
 0x2cc   :  { %1495 = vmatpush.bf16.msra.mxu1 %v2656_v11 }
 0x2cd   :  { %v3114_v18 = vpop.eup %3113  ;;  %3115 = vrcp.f32 %v1007_v17  ;;  %v1034_v41 = vand.u32 2147483648, %v1007_v17  ;;  %vm1028_vm13 = vweird.f32 %v1007_v17  ;;  %v1032_v42 = vand.u32 2147483647, %v1007_v17 }
 0x2ce   :  { %v1009_v19 = vmul.f32 %v3114_v18, %v1006_v5  ;;  %vm1014_vm8 = vweird.f32 %v3114_v18  ;;  %v3021_v5 = vld [vmem:[%s4497_s1 + $0x7c] sm:$0xf] }
 0x2cf   :  { %vm1015_vm10 = vmor %vm1013_vm9, %vm1014_vm8  ;;  %v1035_v45 = vor.u32 1.1754944e-38, %v1034_v41  ;;  %vm1033_vm15 = vcmp.eq.f32.partialorder %v1032_v42, 8.507059e+37  ;;  %v2652_v10 = vor.u32 %v3021_v5, %v2649_v7  ;;  %v2611_v41 = vld [vmem:[%s4497_s1 + $0x30] sm:$0xf]  ;;  %v3013_v42 = vld [vmem:[%s4497_s1 + $0x38] sm:$0xf0]  ;;  %v2592_v5 = vor.u32 %v3006_v62, %v2589_v4 }
 0x2d0   :  { %v1010_v20 = vsub.f32 1.0, %v1009_v19  ;;  %v2643_v19 = vld [vmem:[%s4497_s1 + $0x68] sm:$0xf]  ;;  %v3008_v7 = vld [vmem:[%s4497_s1 + $0x10] sm:$0xf0] }
 0x2d1   :  { %1482 = vmatpush.bf16.msra.mxu0 %v2652_v10  ;;  %v3045_v62 = vld [vmem:[%s4497_s1 + $0x7c] sm:$0xf]  ;;  %v2756_v4 = vld [vmem:[%s4497_s1 + $0x80] sm:$0xf] }
 0x2d2   :  { %v1011_v24 = vmul.f32 %v3114_v18, %v1010_v20  ;;  %v3020_v20 = vld [vmem:[%s4497_s1 + $0x70] sm:$0xf0] }
 0x2d3   :  { %v3116_v26 = vpop.eup %3115  ;;  %v2644_v22 = vor.u32 %v3020_v20, %v2643_v19 }
 0x2d4   :  { %v1024_v27 = vmul.f32 %v3116_v26, %v1007_v17  ;;  %v1012_v28 = vadd.f32 %v3114_v18, %v1011_v24  ;;  %vm1029_vm12 = vweird.f32 %v3116_v26  ;;  %v2636_v17 = vor.u32 %v3019_v15, %v2635_v14 }
 0x2d5   :  { %vm1030_vm14 = vmor %vm1028_vm13, %vm1029_vm12  ;;  %1496 = vmatpush.bf16.msra.mxu1 %v2644_v22 }
 0x2d6   :  { %v1025_v31 = vsub.f32 1.0, %v1024_v27  ;;  %v1016_v33 = vsel %vm1015_vm10, %v3114_v18, %v1012_v28  ;;  %v2637_v18 = vld [vmem:[%s4497_s1 + $0x6c] sm:$0xf0]  ;;  %v2623_v28 = vld [vmem:[%s4497_s1 + $0x48] sm:$0xf] }
 0x2d7   :  { %v1021_v35 = vsel %vm1018_vm11, %v1020_v29, %v1016_v33  ;;  %v2640_v21 = vor.u32 %v3018_v16, %v2637_v18  ;;  %v3016_v29 = vld [vmem:[%s4497_s1 + $0x50] sm:$0xf0]  ;;  %v2625_v33 = vld [vmem:[%s4497_s1 + $0x54] sm:$0xf0] }
 0x2d8   :  { %v1040_v36 = vmul.f32 %v1039_v34, %v1021_v35  ;;  %v1026_v37 = vmul.f32 %v3116_v26, %v1025_v31  ;;  %v2624_v31 = vor.u32 %v3016_v29, %v2623_v28  ;;  %v2631_v34 = vld [vmem:[%s4497_s1 + $0x50] sm:$0xf]  ;;  %v3017_v35 = vld [vmem:[%s4497_s1 + $0x58] sm:$0xf0]  ;;  %v2483_v18 = vld [vmem:[%s4500_s0 + $0x38] sm:$0xf] }
 0x2d9   :  { %1483 = vmatpush.bf16.msra.mxu0 %v2640_v21 }
 0x2da   :  { %v1041_v38 = vadd.f32 %v1040_v36, %v1038_v30  ;;  %v1027_v40 = vadd.f32 %v3116_v26, %v1026_v37  ;;  %v3015_v30 = vld [vmem:[%s4497_s1 + $0x4c] sm:$0xf] }
 0x2dc   :  { %3117 = vtanh.f32 %v1041_v38  ;;  %v1031_v43 = vsel %vm1030_vm14, %v3116_v26, %v1027_v40  ;;  %v2628_v38 = vor.u32 %v3015_v30, %v2625_v33  ;;  %v2632_v40 = vor.u32 %v3017_v35, %v2631_v34 }
 0x2dd   :  { %v1036_v47 = vsel %vm1033_vm15, %v1035_v45, %v1031_v43  ;;  %v3012_v43 = vld [vmem:[%s4497_s1 + $0x34] sm:$0xf]  ;;  %v2613_v45 = vld [vmem:[%s4497_s1 + $0x3c] sm:$0xf0] }
 0x2de   :  { %1484 = vmatpush.bf16.msra.mxu0 %v2628_v38  ;;  %1497 = vmatpush.bf16.msra.mxu1 %v2632_v40 }
 0x2e2   :  { %v3118_v44 = vpop.eup %3117 }
 0x2e3   :  { %v1043_v46 = vsub.f32 %v3824_v54, %v3118_v44  ;;  %v3028_v54 = vld [vmem:[%s4497_s1 + $0xb0] sm:$0xf0] }
 0x2e4   :  { %v2672_v23 = vor.u32 %v3028_v54, %v2671_v50 }
 0x2e5   :  { %v1044_v48 = vmul.f32 %v1043_v46, %v1036_v47  ;;  %v2619_v46 = vld [vmem:[%s4497_s1 + $0x38] sm:$0xf]  ;;  %v3014_v47 = vld [vmem:[%s4497_s1 + $0x40] sm:$0xf0] }
 0x2e6   :  { %1467 = vmatpush.bf16.msrb.mxu3 %v2672_v23  ;;  %v2620_v50 = vor.u32 %v3014_v47, %v2619_v46  ;;  %v2599_v23 = vld [vmem:[%s4497_s1 + $0x18] sm:$0xf] }
 0x2e7   :  { %v3984_v39 = vadd.f32 %v3118_v44, %v1044_v48  ;;  %v2612_v44 = vor.u32 %v3013_v42, %v2611_v41  ;;  %v2600_v55 = vor.u32 %v3010_v52, %v2599_v23  ;;  %v2774_v47 = vld [vmem:[%s4497_s1 + $0xb4] sm:$0xf0]  ;;  %v2760_v23 = vld [vmem:[%s4497_s1 + $0x90] sm:$0xf]  ;;  %v3049_v52 = vld [vmem:[%s4497_s1 + $0x98] sm:$0xf0] }
 0x2e8   :  { %1498 = vmatpush.bf16.msra.mxu1 %v2620_v50 }
 0x2e9   :  { %2481 = vst [vmem:[%s4501_s4 + $0x18] sm:$0xff] %v3984_v39  ;;  %v1051_v49 = vpack.c.bf16 %v3984_v39, %v3984_v39 }
 0x2ea   :  { %1468 = vmatpush.bf16.msrb.mxu3 %v2660_v60  ;;  %v2608_v60 = vor.u32 %v3011_v32, %v2607_v59  ;;  %v2768_v59 = vld [vmem:[%s4497_s1 + $0x98] sm:$0xf]  ;;  %v3050_v32 = vld [vmem:[%s4497_s1 + $0xa0] sm:$0xf0] }
 0x2eb   :  { %1220 = vmatmul.bf16.vlgmr.msrb.gmra.mxu0 %v1051_v49  ;;  %1233 = vmatmul.bf16.vlgmr.msrb.gmra.mxu1 %v1051_v49 }
 0x2ec   :  { %1246 = vmatmul.bf16.vlgmr.msrb.gmra.mxu2 %v1051_v49  ;;  %v2616_v49 = vor.u32 %v3012_v43, %v2613_v45  ;;  %1499 = vmatpush.bf16.msra.mxu1 %v2608_v60  ;;  %v3051_v45 = vld [vmem:[%s4497_s1 + $0xac] sm:$0xf]  ;;  %v2769_v60 = vor.u32 %v3050_v32, %v2768_v59 }
 0x2ed   :  { %v2777_v50 = vor.u32 %v3051_v45, %v2774_v47  ;;  %v3034_v47 = vld [vmem:[%s4497_s1 + $0x20] sm:$0xf0]  ;;  %v3031_v59 = vld [vmem:[%s4497_s1 + $0x8] sm:$0xf0] }
 0x2ee   :  { %1469 = vmatpush.bf16.msrb.mxu3 %v2648_v6  ;;  %1485 = vmatpush.bf16.msra.mxu0 %v2616_v49  ;;  %v2595_v6 = vld [vmem:[%s4497_s1 + $0x8] sm:$0xf]  ;;  %v3053_v49 = vld [vmem:[%s4497_s1 + $0xb8] sm:$0xf0] }
 0x2ef   :  { %v2596_v9 = vor.u32 %v3008_v7, %v2595_v6 }
 0x2f1   :  { %1500 = vmatpush.bf16.msra.mxu1 %v2596_v9 }
 0x2f2   :  { %1470 = vmatpush.bf16.msrb.mxu3 %v2636_v17  ;;  %1486 = vmatpush.bf16.msra.mxu0 %v2604_v58  ;;  %v2765_v58 = vor.u32 %v3048_v53, %v2762_v56  ;;  %v2688_v56 = vld [vmem:[%s4497_s1] sm:$0xf] }
 0x2f6   :  { %1471 = vmatpush.bf16.msrb.mxu3 %v2624_v31  ;;  %1487 = vmatpush.bf16.msra.mxu0 %v2592_v5 }
 0x2fa   :  { %1472 = vmatpush.bf16.msrb.mxu3 %v2612_v44  ;;  %v2772_v44 = vld [vmem:[%s4497_s1 + $0xa8] sm:$0xf] }
 0x2fe   :  { %1473 = vmatpush.bf16.msrb.mxu3 %v2600_v55  ;;  %v2761_v55 = vor.u32 %v3049_v52, %v2760_v23 }
 0x302   :  { %1474 = vmatpush.bf16.msrb.mxu3 %v2588_v2  ;;  %v2750_v2 = vld [vmem:[%s4497_s1 + $0x84] sm:$0xf0] }
 0x303   :  { %v2753_v7 = vor.u32 %v3045_v62, %v2750_v2  ;;  %v3032_v62 = vld [vmem:[%s4497_s1 + $0x10] sm:$0xf0] }
 0x306   :  { %1735 = vmatpush.bf16.msra.mxu3 %v2777_v50  ;;  %v2702_v50 = vld [vmem:[%s4497_s1 + $0x24] sm:$0xf0] }
 0x30a   :  { %1736 = vmatpush.bf16.msra.mxu3 %v2765_v58  ;;  %v2690_v58 = vld [vmem:[%s4497_s1 + $0xc] sm:$0xf0] }
 0x30e   :  { %1737 = vmatpush.bf16.msra.mxu3 %v2753_v7 }
 0x368   :  { %v1221_v24 = vpop.f32.mrf.mxu0  ;;  %v1234_v25 = vpop.f32.mrf.mxu1 }
 0x369   :  { %v1253_v26 = vadd.f32 %v1251_v12, %v1221_v24  ;;  %v1254_v27 = vadd.f32 %v1252_v13, %v1234_v25  ;;  %v1293_v24 = vunpack.c.l.bf16 %v2483_v18  ;;  %v4145_v25 = vld [vmem:[%s4499_s2] ss:$0 sm:$0xff]  ;;  %v3044_v18 = vld [vmem:[%s4497_s1 + $0x70] sm:$0xf0] }
 0x36b   :  { %v2580_v36 = vmul.f32 -1.442695, %v1253_v26  ;;  %v2581_v37 = vmul.f32 -1.442695, %v1254_v27 }
 0x36d   :  { %3119 = vpow2.f32 %v2580_v36 }
 0x36e   :  { %3121 = vpow2.f32 %v2581_v37 }
 0x36f   :  { %v1247_v48 = vpop.f32.mrf.mxu2 }
 0x370   :  { %v1223_v54 = vpop.f32.mrf.mxu0  ;;  %v1236_v51 = vpop.f32.mrf.mxu1  ;;  %v1294_v26 = vadd.f32 %v4145_v25, %v1247_v48  ;;  %v2780_v48 = vld [vmem:[%s4497_s1 + $0xb0] sm:$0xf] }
 0x371   :  { %v2781_v54 = vor.u32 %v3053_v49, %v2780_v48  ;;  %v2583_v51 = vld [vmem:[%s4500_s0 + $0x3c] sm:$0xff] }
 0x372   :  { %v3033_v49 = vld [vmem:[%s4497_s1 + $0x1c] sm:$0xf] }
 0x373   :  { %v3120_v57 = vpop.eup %3119  ;;  %1748 = vmatpush.bf16.msrb.mxu0 %v2781_v54  ;;  %v2708_v54 = vld [vmem:[%s4497_s1 + $0x20] sm:$0xf] }
 0x374   :  { %v3122_v63 = vpop.eup %3121  ;;  %v1261_v0 = vadd.f32 1.0, %v3120_v57  ;;  %v1507_v57 = vunpack.c.h.bf16 %v2583_v51 }
 0x375   :  { %v1262_v3 = vadd.f32 1.0, %v3122_v63 }
 0x376   :  { %3123 = vrcp.f32 %v1261_v0  ;;  %v1274_v15 = vand.u32 2147483648, %v1261_v0  ;;  %v1272_v17 = vand.u32 2147483647, %v1261_v0  ;;  %vm1268_vm1 = vweird.f32 %v1261_v0 }
 0x377   :  { %3125 = vrcp.f32 %v1262_v3  ;;  %v1249_v8 = vpop.f32.mrf.mxu2  ;;  %v1289_v33 = vand.u32 2147483648, %v1262_v3  ;;  %vm1283_vm5 = vweird.f32 %v1262_v3  ;;  %v1287_v34 = vand.u32 2147483647, %v1262_v3  ;;  %1749 = vmatpush.bf16.msrb.mxu0 %v2769_v60 }
 0x378   :  { %v1275_v21 = vor.u32 1.1754944e-38, %v1274_v15  ;;  %vm1273_vm3 = vcmp.eq.f32.partialorder %v1272_v17, 8.507059e+37  ;;  %v2738_v15 = vld [vmem:[%s4497_s1 + $0x6c] sm:$0xf0] }
 0x379   :  { %v1290_v37 = vor.u32 1.1754944e-38, %v1289_v33  ;;  %vm1288_vm7 = vcmp.eq.f32.partialorder %v1287_v34, 8.507059e+37  ;;  %v2712_v33 = vld [vmem:[%s4497_s1 + $0x30] sm:$0xf]  ;;  %v3037_v34 = vld [vmem:[%s4497_s1 + $0x38] sm:$0xf0] }
 0x37c   :  { %v3124_v10 = vpop.eup %3123 }
 0x37d   :  { %v3126_v11 = vpop.eup %3125  ;;  %v1264_v12 = vmul.f32 %v3124_v10, %v1261_v0  ;;  %vm1269_vm0 = vweird.f32 %v3124_v10  ;;  %v2749_v0 = vor.u32 %v3046_v1, %v2748_v61  ;;  %v2696_v1 = vld [vmem:[%s4497_s1 + $0x8] sm:$0xf] }
 0x37e   :  { %v1279_v14 = vmul.f32 %v3126_v11, %v1262_v3  ;;  %vm1270_vm2 = vmor %vm1268_vm1, %vm1269_vm0  ;;  %vm1284_vm4 = vweird.f32 %v3126_v11  ;;  %v3047_v3 = vld [vmem:[%s4497_s1 + $0x88] sm:$0xf0] }
 0x37f   :  { %v1265_v13 = vsub.f32 1.0, %v1264_v12  ;;  %vm1285_vm6 = vmor %vm1283_vm5, %vm1284_vm4  ;;  %v2757_v8 = vor.u32 %v3047_v3, %v2756_v4  ;;  %v3043_v12 = vld [vmem:[%s4497_s1 + $0x68] sm:$0xf0]  ;;  %v2697_v4 = vor.u32 %v3032_v62, %v2696_v1 }
 0x380   :  { %v1280_v20 = vsub.f32 1.0, %v1279_v14  ;;  %v3042_v14 = vld [vmem:[%s4497_s1 + $0x64] sm:$0xf] }
 0x381   :  { %v1266_v16 = vmul.f32 %v3124_v10, %v1265_v13  ;;  %1750 = vmatpush.bf16.msrb.mxu0 %v2757_v8  ;;  %v2741_v17 = vor.u32 %v3042_v14, %v2738_v15 }
 0x382   :  { %v1281_v29 = vmul.f32 %v3126_v11, %v1280_v20  ;;  %v3040_v20 = vld [vmem:[%s4497_s1 + $0x50] sm:$0xf0] }
 0x383   :  { %v1267_v19 = vadd.f32 %v3124_v10, %v1266_v16  ;;  %v2744_v16 = vld [vmem:[%s4497_s1 + $0x68] sm:$0xf]  ;;  %1738 = vmatpush.bf16.msra.mxu3 %v2741_v17 }
 0x384   :  { %v1282_v31 = vadd.f32 %v3126_v11, %v1281_v29 }
 0x385   :  { %v1271_v22 = vsel %vm1270_vm2, %v3124_v10, %v1267_v19  ;;  %v1506_v10 = vunpack.c.l.bf16 %v2583_v51  ;;  %v2724_v19 = vld [vmem:[%s4497_s1 + $0x48] sm:$0xf]  ;;  %v3035_v51 = vld [vmem:[%s4497_s1 + $0x28] sm:$0xf0] }
 0x386   :  { %v1276_v27 = vsel %vm1273_vm3, %v1275_v21, %v1271_v22  ;;  %v1286_v35 = vsel %vm1285_vm6, %v3126_v11, %v1282_v31  ;;  %v2736_v11 = vld [vmem:[%s4497_s1 + $0x60] sm:$0xf]  ;;  %v2745_v22 = vor.u32 %v3044_v18, %v2744_v16  ;;  %v3041_v31 = vld [vmem:[%s4497_s1 + $0x58] sm:$0xf0]  ;;  %v2709_v32 = vor.u32 %v3035_v51, %v2708_v54  ;;  %v2869_v54 = vld [vmem:[%s4497_s1 + $0x98] sm:$0xf] }
 0x387   :  { %v1295_v28 = vmul.f32 %v1294_v26, %v1276_v27  ;;  %v1291_v40 = vsel %vm1288_vm7, %v1290_v37, %v1286_v35  ;;  %v2737_v13 = vor.u32 %v3043_v12, %v2736_v11  ;;  %v3039_v26 = vld [vmem:[%s4497_s1 + $0x4c] sm:$0xf]  ;;  %v2726_v27 = vld [vmem:[%s4497_s1 + $0x54] sm:$0xf0]  ;;  %v3036_v37 = vld [vmem:[%s4497_s1 + $0x34] sm:$0xf] }
 0x388   :  { %1751 = vmatpush.bf16.msrb.mxu0 %v2745_v22  ;;  %v3074_v51 = vld [vmem:[%s4497_s1 + $0xa0] sm:$0xf0] }
 0x389   :  { %v1296_v30 = vadd.f32 %v1295_v28, %v1293_v24  ;;  %v2725_v24 = vor.u32 %v3040_v20, %v2724_v19  ;;  %v2732_v28 = vld [vmem:[%s4497_s1 + $0x50] sm:$0xf] }
 0x38b   :  { %3127 = vtanh.f32 %v1296_v30  ;;  %v2729_v30 = vor.u32 %v3039_v26, %v2726_v27 }
 0x38d   :  { %1739 = vmatpush.bf16.msra.mxu3 %v2729_v30 }
 0x391   :  { %v3128_v36 = vpop.eup %3127 }
 0x392   :  { %v1298_v38 = vsub.f32 %v3984_v39, %v3128_v36  ;;  %v3052_v39 = vld [vmem:[%s4497_s1 + $0xb0] sm:$0xf0] }
 0x393   :  { %v2773_v46 = vor.u32 %v3052_v39, %v2772_v44  ;;  %v3038_v44 = vld [vmem:[%s4497_s1 + $0x40] sm:$0xf0]  ;;  %v2713_v39 = vor.u32 %v3037_v34, %v2712_v33 }
 0x394   :  { %v1299_v41 = vmul.f32 %v1298_v38, %v1291_v40  ;;  %v2714_v38 = vld [vmem:[%s4497_s1 + $0x3c] sm:$0xf0] }
 0x395   :  { %1722 = vmatpush.bf16.msra.mxu2 %v2773_v46  ;;  %v2717_v45 = vor.u32 %v3036_v37, %v2714_v38  ;;  %v2700_v46 = vld [vmem:[%s4497_s1 + $0x18] sm:$0xf]  ;;  %v2873_v37 = vld [vmem:[%s4497_s1 + $0xa8] sm:$0xf]  ;;  %v3075_v38 = vld [vmem:[%s4497_s1 + $0xac] sm:$0xf] }
 0x396   :  { %v4149_v42 = vadd.f32 %v3128_v36, %v1299_v41  ;;  %v2733_v36 = vor.u32 %v3041_v31, %v2732_v28  ;;  %v2701_v53 = vor.u32 %v3034_v47, %v2700_v46  ;;  %v2861_v46 = vld [vmem:[%s4497_s1 + $0x90] sm:$0xf]  ;;  %v3073_v47 = vld [vmem:[%s4497_s1 + $0x98] sm:$0xf0] }
 0x397   :  { %1740 = vmatpush.bf16.msra.mxu3 %v2717_v45 }
 0x398   :  { %2582 = vst [vmem:[%s4501_s4 + $0x20] sm:$0xff] %v4149_v42  ;;  %v1306_v43 = vpack.c.bf16 %v4149_v42, %v4149_v42  ;;  %1752 = vmatpush.bf16.msrb.mxu0 %v2733_v36 }
 0x399   :  { %1723 = vmatpush.bf16.msra.mxu2 %v2761_v55  ;;  %v2705_v55 = vor.u32 %v3033_v49, %v2702_v50  ;;  %v2862_v49 = vor.u32 %v3073_v47, %v2861_v46  ;;  %v2863_v50 = vld [vmem:[%s4497_s1 + $0x9c] sm:$0xf0] }
 0x39a   :  { %1475 = vmatmul.bf16.vlgmr.msrb.gmra.mxu3 %v1306_v43  ;;  %1488 = vmatmul.bf16.vlgmr.msra.gmra.mxu0 %v1306_v43 }
 0x39b   :  { %1501 = vmatmul.bf16.vlgmr.msra.gmra.mxu1 %v1306_v43  ;;  %v2720_v43 = vld [vmem:[%s4497_s1 + $0x38] sm:$0xf]  ;;  %1741 = vmatpush.bf16.msra.mxu3 %v2705_v55 }
 0x39c   :  { %v2721_v48 = vor.u32 %v3038_v44, %v2720_v43  ;;  %v2881_v43 = vld [vmem:[%s4497_s1 + $0xb0] sm:$0xf]  ;;  %v3077_v44 = vld [vmem:[%s4497_s1 + $0xb8] sm:$0xf0]  ;;  %v2849_v55 = vld [vmem:[%s4497_s1 + $0x78] sm:$0xf] }
 0x39d   :  { %1724 = vmatpush.bf16.msra.mxu2 %v2749_v0  ;;  %v2689_v0 = vor.u32 %v3031_v59, %v2688_v56  ;;  %v2882_v45 = vor.u32 %v3077_v44, %v2881_v43  ;;  %v3070_v56 = vld [vmem:[%s4497_s1 + $0x80] sm:$0xf0]  ;;  %v3069_v59 = vld [vmem:[%s4497_s1 + $0x7c] sm:$0xf]  ;;  %v2803_v44 = vld [vmem:[%s4497_s1 + $0x24] sm:$0xf0] }
 0x39e   :  { %1753 = vmatpush.bf16.msrb.mxu0 %v2721_v48  ;;  %v3072_v48 = vld [vmem:[%s4497_s1 + $0x94] sm:$0xf]  ;;  %v3057_v43 = vld [vmem:[%s4497_s1 + $0x1c] sm:$0xf] }
 0x3a1   :  { %1725 = vmatpush.bf16.msra.mxu2 %v2737_v13  ;;  %v2584_v13 = vld [vmem:[%s4500_s0 + $0x44] sm:$0xf] }
 0x3a2   :  { %1754 = vmatpush.bf16.msrb.mxu0 %v2709_v32  ;;  %v1548_v19 = vunpack.c.l.bf16 %v2584_v13  ;;  %v2850_v32 = vor.u32 %v3070_v56, %v2849_v55  ;;  %v3064_v13 = vld [vmem:[%s4497_s1 + $0x50] sm:$0xf0] }
 0x3a3   :  { %v3056_v55 = vld [vmem:[%s4497_s1 + $0x10] sm:$0xf0] }
 0x3a5   :  { %1726 = vmatpush.bf16.msra.mxu2 %v2725_v24 }
 0x3a6   :  { %1755 = vmatpush.bf16.msrb.mxu0 %v2697_v4  ;;  %v3067_v4 = vld [vmem:[%s4497_s1 + $0x68] sm:$0xf0] }
 0x3a9   :  { %1727 = vmatpush.bf16.msra.mxu2 %v2713_v39 }
 0x3ad   :  { %1728 = vmatpush.bf16.msra.mxu2 %v2701_v53  ;;  %v2684_v53 = vld [vmem:[%s4500_s0 + $0x48] sm:$0xff] }
 0x3b1   :  { %1729 = vmatpush.bf16.msra.mxu2 %v2689_v0  ;;  %v1762_v0 = vunpack.c.h.bf16 %v2684_v53 }
 0x417   :  { %v1489_v63 = vpop.f32.mrf.mxu0 }
 0x418   :  { %v1509_v5 = vadd.f32 %v1507_v57, %v1489_v63  ;;  %v4214_v6 = vpop.f32.mrf.mxu1  ;;  %v3030_v57 = vld [vmem:[%s4497_s1 + $0x4] sm:$0xf] }
 0x419   :  { %v2693_v2 = vor.u32 %v3030_v57, %v2690_v58  ;;  %v1549_v17 = vadd.f32 %v4145_v25, %v4214_v6  ;;  %v2851_v57 = vld [vmem:[%s4497_s1 + $0x84] sm:$0xf0]  ;;  %v2857_v58 = vld [vmem:[%s4497_s1 + $0x80] sm:$0xf] }
 0x41a   :  { %v2682_v9 = vmul.f32 -1.442695, %v1509_v5  ;;  %v2854_v1 = vor.u32 %v3069_v59, %v2851_v57 }
 0x41b   :  { %1742 = vmatpush.bf16.msra.mxu3 %v2693_v2  ;;  %v2837_v2 = vld [vmem:[%s4497_s1 + $0x60] sm:$0xf] }
 0x41c   :  { %3129 = vpow2.f32 %v2682_v9 }
 0x41d   :  { %v1476_v21 = vpop.f32.mrf.mxu3 }
 0x41e   :  { %v1508_v29 = vadd.f32 %v1506_v10, %v1476_v21 }
 0x41f   :  { %v1491_v35 = vpop.f32.mrf.mxu0  ;;  %2003 = vmatpush.bf16.msrb.mxu3 %v2882_v45  ;;  %v3059_v45 = vld [vmem:[%s4497_s1 + $0x28] sm:$0xf0] }
 0x420   :  { %v2681_v40 = vmul.f32 -1.442695, %v1508_v29  ;;  %v1504_v41 = vpop.f32.mrf.mxu1 }
 0x421   :  { %v2875_v41 = vld [vmem:[%s4497_s1 + $0xb4] sm:$0xf0] }
 0x422   :  { %3131 = vpow2.f32 %v2681_v40  ;;  %v3130_v23 = vpop.eup %3129  ;;  %v2878_v39 = vor.u32 %v3075_v38, %v2875_v41  ;;  %v3058_v41 = vld [vmem:[%s4497_s1 + $0x20] sm:$0xf0] }
 0x423   :  { %v1517_v61 = vadd.f32 1.0, %v3130_v23  ;;  %v2866_v23 = vor.u32 %v3072_v48, %v2863_v50 }
 0x424   :  { %1990 = vmatpush.bf16.msrb.mxu2 %v2878_v39  ;;  %v2809_v39 = vld [vmem:[%s4497_s1 + $0x20] sm:$0xf] }
 0x425   :  { %v1478_v52 = vpop.f32.mrf.mxu3  ;;  %v1544_v27 = vand.u32 2147483648, %v1517_v61  ;;  %vm1538_vm13 = vweird.f32 %v1517_v61  ;;  %v1542_v28 = vand.u32 2147483647, %v1517_v61  ;;  %v2810_v50 = vor.u32 %v3059_v45, %v2809_v39 }
 0x426   :  { %v2870_v52 = vor.u32 %v3074_v51, %v2869_v54  ;;  %v2789_v54 = vld [vmem:[%s4497_s1] sm:$0xf]  ;;  %v3055_v51 = vld [vmem:[%s4497_s1 + $0x8] sm:$0xf0] }
 0x427   :  { %v1545_v31 = vor.u32 1.1754944e-38, %v1544_v27  ;;  %vm1543_vm15 = vcmp.eq.f32.partialorder %v1542_v28, 8.507059e+37  ;;  %v3061_v27 = vld [vmem:[%s4497_s1 + $0x38] sm:$0xf0]  ;;  %v3060_v28 = vld [vmem:[%s4497_s1 + $0x34] sm:$0xf]  ;;  %v2790_v57 = vor.u32 %v3055_v51, %v2789_v54 }
 0x428   :  { %v3132_v60 = vpop.eup %3131  ;;  %1991 = vmatpush.bf16.msrb.mxu2 %v2866_v23  ;;  %2004 = vmatpush.bf16.msrb.mxu3 %v2870_v52  ;;  %v3054_v23 = vld [vmem:[%s4497_s1 + $0x4] sm:$0xf]  ;;  %v2791_v52 = vld [vmem:[%s4497_s1 + $0xc] sm:$0xf0]  ;;  %v2786_v51 = vld [vmem:[%s4500_s0 + $0x5c] sm:$0xf] }
 0x429   :  { %v1516_v63 = vadd.f32 1.0, %v3132_v60  ;;  %v3071_v60 = vld [vmem:[%s4497_s1 + $0x88] sm:$0xf0] }
 0x42a   :  { %v2858_v62 = vor.u32 %v3071_v60, %v2857_v58  ;;  %v2794_v60 = vor.u32 %v3054_v23, %v2791_v52 }
 0x42b   :  { %3133 = vrcp.f32 %v1516_v63  ;;  %v1529_v10 = vand.u32 2147483648, %v1516_v63  ;;  %v1527_v12 = vand.u32 2147483647, %v1516_v63  ;;  %vm1523_vm9 = vweird.f32 %v1516_v63 }
 0x42c   :  { %3135 = vrcp.f32 %v1517_v61  ;;  %1992 = vmatpush.bf16.msrb.mxu2 %v2854_v1  ;;  %2005 = vmatpush.bf16.msrb.mxu3 %v2858_v62 }
 0x42d   :  { %v1530_v16 = vor.u32 1.1754944e-38, %v1529_v10  ;;  %vm1528_vm11 = vcmp.eq.f32.partialorder %v1527_v12, 8.507059e+37  ;;  %v2825_v12 = vld [vmem:[%s4497_s1 + $0x48] sm:$0xf] }
 0x431   :  { %v3134_v3 = vpop.eup %3133 }
 0x432   :  { %v3136_v5 = vpop.eup %3135  ;;  %v1519_v7 = vmul.f32 %v3134_v3, %v1516_v63  ;;  %vm1524_vm8 = vweird.f32 %v3134_v3  ;;  %v1761_v63 = vunpack.c.l.bf16 %v2684_v53  ;;  %v2797_v53 = vld [vmem:[%s4497_s1 + $0x8] sm:$0xf] }
 0x433   :  { %v1534_v9 = vmul.f32 %v3136_v5, %v1517_v61  ;;  %vm1525_vm10 = vmor %vm1523_vm9, %vm1524_vm8  ;;  %vm1539_vm12 = vweird.f32 %v3136_v5  ;;  %v2798_v1 = vor.u32 %v3056_v55, %v2797_v53 }
 0x434   :  { %v1520_v8 = vsub.f32 1.0, %v1519_v7  ;;  %vm1540_vm14 = vmor %vm1538_vm13, %vm1539_vm12  ;;  %v2839_v7 = vld [vmem:[%s4497_s1 + $0x6c] sm:$0xf0] }
 0x435   :  { %v1535_v15 = vsub.f32 1.0, %v1534_v9  ;;  %v3068_v9 = vld [vmem:[%s4497_s1 + $0x70] sm:$0xf0] }
 0x436   :  { %v1521_v11 = vmul.f32 %v3134_v3, %v1520_v8  ;;  %v2845_v8 = vld [vmem:[%s4497_s1 + $0x68] sm:$0xf] }
 0x437   :  { %v1536_v22 = vmul.f32 %v3136_v5, %v1535_v15 }
 0x438   :  { %v1522_v14 = vadd.f32 %v3134_v3, %v1521_v11  ;;  %v2846_v11 = vor.u32 %v3068_v9, %v2845_v8  ;;  %v2685_v8 = vld [vmem:[%s4500_s0 + $0x50] sm:$0xf] }
 0x439   :  { %v1537_v26 = vadd.f32 %v3136_v5, %v1536_v22 }
 0x43a   :  { %v1526_v18 = vsel %vm1525_vm10, %v3134_v3, %v1522_v14  ;;  %v3066_v3 = vld [vmem:[%s4497_s1 + $0x64] sm:$0xf]  ;;  %v3063_v14 = vld [vmem:[%s4497_s1 + $0x4c] sm:$0xf]  ;;  %2006 = vmatpush.bf16.msrb.mxu3 %v2846_v11 }
 0x43b   :  { %v1531_v20 = vsel %vm1528_vm11, %v1530_v16, %v1526_v18  ;;  %v1541_v29 = vsel %vm1540_vm14, %v3136_v5, %v1537_v26  ;;  %v2838_v5 = vor.u32 %v3067_v4, %v2837_v2  ;;  %v2842_v10 = vor.u32 %v3066_v3, %v2839_v7  ;;  %v2827_v18 = vld [vmem:[%s4497_s1 + $0x54] sm:$0xf0]  ;;  %v2813_v26 = vld [vmem:[%s4497_s1 + $0x30] sm:$0xf] }
 0x43c   :  { %v1550_v21 = vmul.f32 %v1549_v17, %v1531_v20  ;;  %v1546_v33 = vsel %vm1543_vm15, %v1545_v31, %v1541_v29  ;;  %v2826_v17 = vor.u32 %v3064_v13, %v2825_v12  ;;  %v3065_v20 = vld [vmem:[%s4497_s1 + $0x58] sm:$0xf0]  ;;  %v2821_v31 = vld [vmem:[%s4497_s1 + $0x38] sm:$0xf] }
 0x43d   :  { %1993 = vmatpush.bf16.msrb.mxu2 %v2842_v10 }
 0x43e   :  { %v1551_v24 = vadd.f32 %v1550_v21, %v1548_v19  ;;  %v2833_v19 = vld [vmem:[%s4497_s1 + $0x50] sm:$0xf] }
 0x43f   :  { %v2834_v29 = vor.u32 %v3065_v20, %v2833_v19 }
 0x440   :  { %3137 = vtanh.f32 %v1551_v24  ;;  %v2830_v24 = vor.u32 %v3063_v14, %v2827_v18  ;;  %v1803_v14 = vunpack.c.l.bf16 %v2685_v8 }
 0x441   :  { %2007 = vmatpush.bf16.msrb.mxu3 %v2834_v29 }
 0x442   :  { %1994 = vmatpush.bf16.msrb.mxu2 %v2830_v24 }
 0x446   :  { %v3138_v30 = vpop.eup %3137 }
 0x447   :  { %v1553_v6 = vsub.f32 %v4149_v42, %v3138_v30  ;;  %v3076_v42 = vld [vmem:[%s4497_s1 + $0xb0] sm:$0xf0] }
 0x448   :  { %v2874_v40 = vor.u32 %v3076_v42, %v2873_v37  ;;  %v2814_v37 = vor.u32 %v3061_v27, %v2813_v26 }
 0x449   :  { %v1554_v34 = vmul.f32 %v1553_v6, %v1546_v33  ;;  %v3062_v6 = vld [vmem:[%s4497_s1 + $0x40] sm:$0xf0] }
 0x44a   :  { %1977 = vmatpush.bf16.msrb.mxu1 %v2874_v40  ;;  %v2822_v38 = vor.u32 %v3062_v6, %v2821_v31  ;;  %v2801_v40 = vld [vmem:[%s4497_s1 + $0x18] sm:$0xf] }
 0x44b   :  { %v4312_v35 = vadd.f32 %v3138_v30, %v1554_v34  ;;  %v2815_v30 = vld [vmem:[%s4497_s1 + $0x3c] sm:$0xf0]  ;;  %v2802_v48 = vor.u32 %v3058_v41, %v2801_v40  ;;  %v2785_v31 = vld [vmem:[%s4500_s0 + $0x54] sm:$0xff] }
 0x44c   :  { %v2818_v42 = vor.u32 %v3060_v28, %v2815_v30  ;;  %2008 = vmatpush.bf16.msrb.mxu3 %v2822_v38 }
 0x44d   :  { %2683 = vst [vmem:[%s4501_s4 + $0x28] sm:$0xff] %v4312_v35  ;;  %v1561_v36 = vpack.c.bf16 %v4312_v35, %v4312_v35 }
 0x44e   :  { %1978 = vmatpush.bf16.msrb.mxu1 %v2862_v49  ;;  %1995 = vmatpush.bf16.msrb.mxu2 %v2818_v42  ;;  %v2806_v49 = vor.u32 %v3057_v43, %v2803_v44 }
 0x44f   :  { %1730 = vmatmul.bf16.vlgmr.msra.gmra.mxu2 %v1561_v36  ;;  %1743 = vmatmul.bf16.vlgmr.msra.gmra.mxu3 %v1561_v36 }
 0x450   :  { %1756 = vmatmul.bf16.vlgmr.msrb.gmra.mxu0 %v1561_v36  ;;  %2009 = vmatpush.bf16.msrb.mxu3 %v2810_v50 }
 0x452   :  { %1979 = vmatpush.bf16.msrb.mxu1 %v2850_v32  ;;  %1996 = vmatpush.bf16.msrb.mxu2 %v2806_v49 }
 0x454   :  { %2010 = vmatpush.bf16.msrb.mxu3 %v2798_v1 }
 0x456   :  { %1980 = vmatpush.bf16.msrb.mxu1 %v2838_v5  ;;  %1997 = vmatpush.bf16.msrb.mxu2 %v2794_v60 }
 0x45a   :  { %1981 = vmatpush.bf16.msrb.mxu1 %v2826_v17 }
 0x45e   :  { %1982 = vmatpush.bf16.msrb.mxu1 %v2814_v37 }
 0x462   :  { %1983 = vmatpush.bf16.msrb.mxu1 %v2802_v48 }
 0x466   :  { %1984 = vmatpush.bf16.msrb.mxu1 %v2790_v57 }
 0x4cd   :  { %v4377_v61 = vpop.f32.mrf.mxu0 }
 0x4ce   :  { %v1804_v12 = vadd.f32 %v4145_v25, %v4377_v61 }
 0x4d2   :  { %v1731_v15 = vpop.f32.mrf.mxu2  ;;  %v1744_v16 = vpop.f32.mrf.mxu3 }
 0x4d3   :  { %v1763_v21 = vadd.f32 %v1761_v63, %v1731_v15  ;;  %v1764_v22 = vadd.f32 %v1762_v0, %v1744_v16 }
 0x4d5   :  { %v2782_v33 = vmul.f32 -1.442695, %v1763_v21  ;;  %v2783_v34 = vmul.f32 -1.442695, %v1764_v22  ;;  %v1759_v36 = vpop.f32.mrf.mxu0 }
 0x4d6   :  { %v2017_v36 = vunpack.c.h.bf16 %v2785_v31 }
 0x4d7   :  { %3139 = vpow2.f32 %v2782_v33 }
 0x4d8   :  { %3141 = vpow2.f32 %v2783_v34 }
 0x4da   :  { %v1733_v46 = vpop.f32.mrf.mxu2  ;;  %v1746_v47 = vpop.f32.mrf.mxu3 }
 0x4dd   :  { %v3140_v56 = vpop.eup %3139 }
 0x4de   :  { %v3142_v59 = vpop.eup %3141  ;;  %v1771_v32 = vadd.f32 1.0, %v3140_v56 }
 0x4df   :  { %v1772_v58 = vadd.f32 1.0, %v3142_v59 }
 0x4e0   :  { %3143 = vrcp.f32 %v1771_v32  ;;  %v1784_v4 = vand.u32 2147483648, %v1771_v32  ;;  %v1782_v7 = vand.u32 2147483647, %v1771_v32  ;;  %vm1778_vm1 = vweird.f32 %v1771_v32 }
 0x4e1   :  { %3145 = vrcp.f32 %v1772_v58  ;;  %v1799_v20 = vand.u32 2147483648, %v1772_v58  ;;  %vm1793_vm5 = vweird.f32 %v1772_v58  ;;  %v1797_v21 = vand.u32 2147483647, %v1772_v58 }
 0x4e2   :  { %v1785_v10 = vor.u32 1.1754944e-38, %v1784_v4  ;;  %vm1783_vm3 = vcmp.eq.f32.partialorder %v1782_v7, 8.507059e+37 }
 0x4e3   :  { %v1800_v26 = vor.u32 1.1754944e-38, %v1799_v20  ;;  %vm1798_vm7 = vcmp.eq.f32.partialorder %v1797_v21, 8.507059e+37 }
 0x4e6   :  { %v3144_v62 = vpop.eup %3143 }
 0x4e7   :  { %v3146_v63 = vpop.eup %3145  ;;  %v1774_v0 = vmul.f32 %v3144_v62, %v1771_v32  ;;  %vm1779_vm0 = vweird.f32 %v3144_v62  ;;  %v2058_v32 = vunpack.c.l.bf16 %v2786_v51 }
 0x4e8   :  { %v1789_v3 = vmul.f32 %v3146_v63, %v1772_v58  ;;  %vm1780_vm2 = vmor %vm1778_vm1, %vm1779_vm0  ;;  %vm1794_vm4 = vweird.f32 %v3146_v63 }
 0x4e9   :  { %v1775_v2 = vsub.f32 1.0, %v1774_v0  ;;  %vm1795_vm6 = vmor %vm1793_vm5, %vm1794_vm4 }
 0x4ea   :  { %v1790_v11 = vsub.f32 1.0, %v1789_v3 }
 0x4eb   :  { %v1776_v5 = vmul.f32 %v3144_v62, %v1775_v2 }
 0x4ec   :  { %v1791_v17 = vmul.f32 %v3146_v63, %v1790_v11 }
 0x4ed   :  { %v1777_v9 = vadd.f32 %v3144_v62, %v1776_v5 }
 0x4ee   :  { %v1792_v19 = vadd.f32 %v3146_v63, %v1791_v17 }
 0x4ef   :  { %v1781_v13 = vsel %vm1780_vm2, %v3144_v62, %v1777_v9 }
 0x4f0   :  { %v1786_v15 = vsel %vm1783_vm3, %v1785_v10, %v1781_v13  ;;  %v1796_v22 = vsel %vm1795_vm6, %v3146_v63, %v1792_v19 }
 0x4f1   :  { %v1805_v16 = vmul.f32 %v1804_v12, %v1786_v15  ;;  %v1801_v27 = vsel %vm1798_vm7, %v1800_v26, %v1796_v22 }
 0x4f3   :  { %v1806_v18 = vadd.f32 %v1805_v16, %v1803_v14 }
 0x4f5   :  { %3147 = vtanh.f32 %v1806_v18 }
 0x4fb   :  { %v3148_v24 = vpop.eup %3147 }
 0x4fc   :  { %v1808_v61 = vsub.f32 %v4312_v35, %v3148_v24  ;;  %v2016_v35 = vunpack.c.l.bf16 %v2785_v31 }
 0x4fe   :  { %v1809_v28 = vmul.f32 %v1808_v61, %v1801_v27 }
 0x500   :  { %v4475_v29 = vadd.f32 %v3148_v24, %v1809_v28 }
 0x502   :  { %2784 = vst [vmem:[%s4501_s4 + $0x30] sm:$0xff] %v4475_v29  ;;  %v1816_v30 = vpack.c.bf16 %v4475_v29, %v4475_v29 }
 0x504   :  { %1985 = vmatmul.bf16.vlgmr.msrb.gmra.mxu1 %v1816_v30  ;;  %1998 = vmatmul.bf16.vlgmr.msrb.gmra.mxu2 %v1816_v30 }
 0x505   :  { %2011 = vmatmul.bf16.vlgmr.msrb.gmra.mxu3 %v1816_v30 }
 0x581   :  { %v1986_v6 = vpop.f32.mrf.mxu1 }
 0x582   :  { %v2018_v33 = vadd.f32 %v2016_v35, %v1986_v6 }
 0x584   :  { %v2883_v34 = vmul.f32 -1.442695, %v2018_v33 }
 0x586   :  { %3149 = vpow2.f32 %v2883_v34 }
 0x587   :  { %v1999_v37 = vpop.f32.mrf.mxu2 }
 0x588   :  { %v2019_v42 = vadd.f32 %v2017_v36, %v1999_v37  ;;  %v2012_v38 = vpop.f32.mrf.mxu3 }
 0x589   :  { %v1988_v40 = vpop.f32.mrf.mxu1  ;;  %v2059_v60 = vadd.f32 %v4145_v25, %v2012_v38 }
 0x58a   :  { %v2884_v41 = vmul.f32 -1.442695, %v2019_v42 }
 0x58c   :  { %v3150_v43 = vpop.eup %3149  ;;  %3151 = vpow2.f32 %v2884_v41 }
 0x58d   :  { %v2026_v44 = vadd.f32 1.0, %v3150_v43 }
 0x58f   :  { %3153 = vrcp.f32 %v2026_v44  ;;  %v2001_v39 = vpop.f32.mrf.mxu2  ;;  %v2039_v54 = vand.u32 2147483648, %v2026_v44  ;;  %v2037_v52 = vand.u32 2147483647, %v2026_v44  ;;  %vm2033_vm9 = vweird.f32 %v2026_v44 }
 0x590   :  { %v2014_v45 = vpop.f32.mrf.mxu3 }
 0x591   :  { %v2040_v59 = vor.u32 1.1754944e-38, %v2039_v54  ;;  %vm2038_vm11 = vcmp.eq.f32.partialorder %v2037_v52, 8.507059e+37 }
 0x592   :  { %v3152_v46 = vpop.eup %3151 }
 0x593   :  { %v2027_v47 = vadd.f32 1.0, %v3152_v46 }
 0x595   :  { %v3154_v48 = vpop.eup %3153  ;;  %3155 = vrcp.f32 %v2027_v47  ;;  %v2054_v4 = vand.u32 2147483648, %v2027_v47  ;;  %vm2048_vm13 = vweird.f32 %v2027_v47  ;;  %v2052_v3 = vand.u32 2147483647, %v2027_v47 }
 0x596   :  { %v2029_v49 = vmul.f32 %v3154_v48, %v2026_v44  ;;  %vm2034_vm8 = vweird.f32 %v3154_v48 }
 0x597   :  { %vm2035_vm10 = vmor %vm2033_vm9, %vm2034_vm8  ;;  %v2055_v8 = vor.u32 1.1754944e-38, %v2054_v4  ;;  %vm2053_vm15 = vcmp.eq.f32.partialorder %v2052_v3, 8.507059e+37 }
 0x598   :  { %v2030_v50 = vsub.f32 1.0, %v2029_v49 }
 0x59a   :  { %v2031_v23 = vmul.f32 %v3154_v48, %v2030_v50 }
 0x59b   :  { %v3156_v53 = vpop.eup %3155 }
 0x59c   :  { %v2044_v55 = vmul.f32 %v3156_v53, %v2027_v47  ;;  %v2032_v56 = vadd.f32 %v3154_v48, %v2031_v23  ;;  %vm2049_vm12 = vweird.f32 %v3156_v53 }
 0x59d   :  { %vm2050_vm14 = vmor %vm2048_vm13, %vm2049_vm12 }
 0x59e   :  { %v2045_v57 = vsub.f32 1.0, %v2044_v55  ;;  %v2036_v58 = vsel %vm2035_vm10, %v3154_v48, %v2032_v56 }
 0x59f   :  { %v2041_v1 = vsel %vm2038_vm11, %v2040_v59, %v2036_v58 }
 0x5a0   :  { %v2060_v62 = vmul.f32 %v2059_v60, %v2041_v1  ;;  %v2046_v63 = vmul.f32 %v3156_v53, %v2045_v57 }
 0x5a2   :  { %v2061_v0 = vadd.f32 %v2060_v62, %v2058_v32  ;;  %v2047_v2 = vadd.f32 %v3156_v53, %v2046_v63 }
 0x5a4   :  { %3157 = vtanh.f32 %v2061_v0  ;;  %v2051_v5 = vsel %vm2050_vm14, %v3156_v53, %v2047_v2 }
 0x5a5   :  { %v2056_v10 = vsel %vm2053_vm15, %v2055_v8, %v2051_v5 }
 0x5aa   :  { %v3158_v7 = vpop.eup %3157 }
 0x5ab   :  { %v2063_v9 = vsub.f32 %v4475_v29, %v3158_v7 }
 0x5ad   :  { %v2064_v11 = vmul.f32 %v2063_v9, %v2056_v10 }
 0x5af   :  { %v2065_v25 = vadd.f32 %v3158_v7, %v2064_v11 }
 0x5b1   :  { %2885 = vst [vmem:[%s4501_s4 + $0x38] sm:$0xff] %v2065_v25 }
 0x5b2   :  { %2072 = vst [vmem:[%s4502_s5] sm:$0xff] %v2065_v25 }

// kernel: encoder_forward.2
= control target key start
LH: loop header
LB: loop body
LE: loop exit
PB: predicated region body
PF: predicated region fallthrough
CT: control target
= control target key end

     0   :  { %s4491_s1 = inlined_call_operand.vmem [shape: bf16[128,384], index: 1, kind: input, shape index: {}]   ;;  %s4492_s3 = inlined_call_operand.vmem [shape: f32[8,128], index: 3, kind: input, shape index: {}]   ;;  %s4493_s2 = inlined_call_operand.vmem [shape: f32[1,128], index: 2, kind: input, shape index: {}]   ;;  %s4494_s0 = inlined_call_operand.vmem [shape: bf16[8,8,384], index: 0, kind: input, shape index: {}]   ;;  %s4495_s4 = inlined_call_operand.vmem [shape: bf16[8,8,128], index: 4, kind: output, shape index: {0}]   ;;  %s4496_s5 = inlined_call_operand.vmem [shape: f32[8,128], index: 5, kind: output, shape index: {1}]  }
   0x1   :  { %v2168_v0 = vld [vmem:[%s4491_s1 + $0xa8] sm:$0xf]  ;;  %v2909_v1 = vld [vmem:[%s4491_s1 + $0xb0] sm:$0xf0]  ;;  %v2908_v2 = vld [vmem:[%s4491_s1 + $0xac] sm:$0xf] }
   0x2   :  { %v2169_v3 = vor.u32 %v2909_v1, %v2168_v0  ;;  %v2170_v4 = vld [vmem:[%s4491_s1 + $0xb4] sm:$0xf0]  ;;  %v2156_v5 = vld [vmem:[%s4491_s1 + $0x90] sm:$0xf]  ;;  %v2906_v6 = vld [vmem:[%s4491_s1 + $0x98] sm:$0xf0] }
   0x3   :  { %v2173_v7 = vor.u32 %v2908_v2, %v2170_v4  ;;  %v2905_v8 = vld [vmem:[%s4491_s1 + $0x94] sm:$0xf]  ;;  %v2158_v9 = vld [vmem:[%s4491_s1 + $0x9c] sm:$0xf0]  ;;  %v2157_v10 = vor.u32 %v2906_v6, %v2156_v5  ;;  %v2144_v12 = vld [vmem:[%s4491_s1 + $0x78] sm:$0xf] }
   0x4   :  { %193 = vmatpush.bf16.msra.mxu0 %v2169_v3  ;;  %v2161_v11 = vor.u32 %v2905_v8, %v2158_v9  ;;  %v2903_v13 = vld [vmem:[%s4491_s1 + $0x80] sm:$0xf0]  ;;  %v2902_v14 = vld [vmem:[%s4491_s1 + $0x7c] sm:$0xf]  ;;  %v2146_v15 = vld [vmem:[%s4491_s1 + $0x84] sm:$0xf0] }
   0x5   :  { %206 = vmatpush.bf16.msra.mxu1 %v2173_v7  ;;  %v2176_v16 = vld [vmem:[%s4491_s1 + $0xb0] sm:$0xf]  ;;  %v2910_v17 = vld [vmem:[%s4491_s1 + $0xb8] sm:$0xf0]  ;;  %v2145_v19 = vor.u32 %v2903_v13, %v2144_v12  ;;  %v2164_v20 = vld [vmem:[%s4491_s1 + $0x98] sm:$0xf]  ;;  %v2149_v22 = vor.u32 %v2902_v14, %v2146_v15 }
   0x6   :  { %v2177_v18 = vor.u32 %v2910_v17, %v2176_v16  ;;  %v2907_v21 = vld [vmem:[%s4491_s1 + $0xa0] sm:$0xf0]  ;;  %v2132_v23 = vld [vmem:[%s4491_s1 + $0x60] sm:$0xf]  ;;  %v2900_v24 = vld [vmem:[%s4491_s1 + $0x68] sm:$0xf0] }
   0x7   :  { %v2899_v25 = vld [vmem:[%s4491_s1 + $0x64] sm:$0xf]  ;;  %v2165_v26 = vor.u32 %v2907_v21, %v2164_v20  ;;  %v2134_v27 = vld [vmem:[%s4491_s1 + $0x6c] sm:$0xf0]  ;;  %v2152_v28 = vld [vmem:[%s4491_s1 + $0x80] sm:$0xf]  ;;  %v2133_v30 = vor.u32 %v2900_v24, %v2132_v23 }
   0x8   :  { %194 = vmatpush.bf16.msra.mxu0 %v2157_v10  ;;  %219 = vmatpush.bf16.msra.mxu2 %v2177_v18  ;;  %v2904_v29 = vld [vmem:[%s4491_s1 + $0x88] sm:$0xf0]  ;;  %v2137_v31 = vor.u32 %v2899_v25, %v2134_v27  ;;  %v2120_v32 = vld [vmem:[%s4491_s1 + $0x48] sm:$0xf]  ;;  %v2897_v33 = vld [vmem:[%s4491_s1 + $0x50] sm:$0xf0] }
   0x9   :  { %207 = vmatpush.bf16.msra.mxu1 %v2161_v11  ;;  %v2896_v34 = vld [vmem:[%s4491_s1 + $0x4c] sm:$0xf]  ;;  %v2153_v35 = vor.u32 %v2904_v29, %v2152_v28  ;;  %v2122_v36 = vld [vmem:[%s4491_s1 + $0x54] sm:$0xf0]  ;;  %v2140_v37 = vld [vmem:[%s4491_s1 + $0x68] sm:$0xf]  ;;  %v2121_v39 = vor.u32 %v2897_v33, %v2120_v32 }
   0xa   :  { %v2901_v38 = vld [vmem:[%s4491_s1 + $0x70] sm:$0xf0]  ;;  %v2125_v40 = vor.u32 %v2896_v34, %v2122_v36  ;;  %v2108_v41 = vld [vmem:[%s4491_s1 + $0x30] sm:$0xf]  ;;  %v2894_v42 = vld [vmem:[%s4491_s1 + $0x38] sm:$0xf0] }
   0xb   :  { %v2893_v43 = vld [vmem:[%s4491_s1 + $0x34] sm:$0xf]  ;;  %v2141_v44 = vor.u32 %v2901_v38, %v2140_v37  ;;  %v2110_v45 = vld [vmem:[%s4491_s1 + $0x3c] sm:$0xf0]  ;;  %v2128_v46 = vld [vmem:[%s4491_s1 + $0x50] sm:$0xf]  ;;  %v2109_v48 = vor.u32 %v2894_v42, %v2108_v41 }
   0xc   :  { %195 = vmatpush.bf16.msra.mxu0 %v2145_v19  ;;  %220 = vmatpush.bf16.msra.mxu2 %v2165_v26  ;;  %v2898_v47 = vld [vmem:[%s4491_s1 + $0x58] sm:$0xf0]  ;;  %v2113_v49 = vor.u32 %v2893_v43, %v2110_v45  ;;  %v2096_v50 = vld [vmem:[%s4491_s1 + $0x18] sm:$0xf]  ;;  %v2891_v51 = vld [vmem:[%s4491_s1 + $0x20] sm:$0xf0] }
   0xd   :  { %208 = vmatpush.bf16.msra.mxu1 %v2149_v22  ;;  %v2890_v52 = vld [vmem:[%s4491_s1 + $0x1c] sm:$0xf]  ;;  %v2129_v53 = vor.u32 %v2898_v47, %v2128_v46  ;;  %v2098_v54 = vld [vmem:[%s4491_s1 + $0x24] sm:$0xf0]  ;;  %v2116_v55 = vld [vmem:[%s4491_s1 + $0x38] sm:$0xf]  ;;  %v2097_v57 = vor.u32 %v2891_v51, %v2096_v50 }
   0xe   :  { %v2895_v56 = vld [vmem:[%s4491_s1 + $0x40] sm:$0xf0]  ;;  %v2101_v58 = vor.u32 %v2890_v52, %v2098_v54  ;;  %v2084_v59 = vld [vmem:[%s4491_s1] sm:$0xf]  ;;  %v2888_v60 = vld [vmem:[%s4491_s1 + $0x8] sm:$0xf0] }
   0xf   :  { %v2887_v61 = vld [vmem:[%s4491_s1 + $0x4] sm:$0xf]  ;;  %v2117_v62 = vor.u32 %v2895_v56, %v2116_v55  ;;  %v2086_v63 = vld [vmem:[%s4491_s1 + $0xc] sm:$0xf0]  ;;  %v2104_v0 = vld [vmem:[%s4491_s1 + $0x20] sm:$0xf]  ;;  %v2085_v2 = vor.u32 %v2888_v60, %v2084_v59 }
  0x10   :  { %196 = vmatpush.bf16.msra.mxu0 %v2133_v30  ;;  %221 = vmatpush.bf16.msra.mxu2 %v2153_v35  ;;  %v2892_v1 = vld [vmem:[%s4491_s1 + $0x28] sm:$0xf0]  ;;  %v3332_v3 = vld [vmem:[%s4492_s3] sm:$0xff]  ;;  %v2089_v4 = vor.u32 %v2887_v61, %v2086_v63  ;;  %v2092_v6 = vld [vmem:[%s4491_s1 + $0x8] sm:$0xf] }
  0x11   :  { %209 = vmatpush.bf16.msra.mxu1 %v2137_v31  ;;  %v2105_v5 = vor.u32 %v2892_v1, %v2104_v0  ;;  %v2889_v7 = vld [vmem:[%s4491_s1 + $0x10] sm:$0xf0]  ;;  %v32_v8 = vpack.c.bf16 %v3332_v3, %v3332_v3  ;;  %v2268_v10 = vld [vmem:[%s4491_s1 + $0xa8] sm:$0xf]  ;;  %v2932_v12 = vld [vmem:[%s4491_s1 + $0xac] sm:$0xf] }
  0x12   :  { %v2093_v9 = vor.u32 %v2889_v7, %v2092_v6  ;;  %v2933_v11 = vld [vmem:[%s4491_s1 + $0xb0] sm:$0xf0]  ;;  %v2270_v14 = vld [vmem:[%s4491_s1 + $0xb4] sm:$0xf0]  ;;  %v2276_v15 = vld [vmem:[%s4491_s1 + $0xb0] sm:$0xf] }
  0x13   :  { %v2269_v13 = vor.u32 %v2933_v11, %v2268_v10  ;;  %v2934_v16 = vld [vmem:[%s4491_s1 + $0xb8] sm:$0xf0]  ;;  %v2273_v17 = vor.u32 %v2932_v12, %v2270_v14  ;;  %v2256_v19 = vld [vmem:[%s4491_s1 + $0x90] sm:$0xf]  ;;  %v2929_v21 = vld [vmem:[%s4491_s1 + $0x94] sm:$0xf] }
  0x14   :  { %197 = vmatpush.bf16.msra.mxu0 %v2121_v39  ;;  %222 = vmatpush.bf16.msra.mxu2 %v2141_v44  ;;  %v2277_v18 = vor.u32 %v2934_v16, %v2276_v15  ;;  %v2930_v20 = vld [vmem:[%s4491_s1 + $0x98] sm:$0xf0]  ;;  %v2258_v23 = vld [vmem:[%s4491_s1 + $0x9c] sm:$0xf0]  ;;  %v2264_v24 = vld [vmem:[%s4491_s1 + $0x98] sm:$0xf] }
  0x15   :  { %210 = vmatpush.bf16.msra.mxu1 %v2125_v40  ;;  %447 = vmatpush.bf16.msra.mxu3 %v2269_v13  ;;  %v2257_v22 = vor.u32 %v2930_v20, %v2256_v19  ;;  %v2931_v25 = vld [vmem:[%s4491_s1 + $0xa0] sm:$0xf0]  ;;  %v2261_v26 = vor.u32 %v2929_v21, %v2258_v23  ;;  %v2244_v28 = vld [vmem:[%s4491_s1 + $0x78] sm:$0xf]  ;;  %v2926_v30 = vld [vmem:[%s4491_s1 + $0x7c] sm:$0xf] }
  0x16   :  { %v2265_v27 = vor.u32 %v2931_v25, %v2264_v24  ;;  %v2927_v29 = vld [vmem:[%s4491_s1 + $0x80] sm:$0xf0]  ;;  %v2246_v33 = vld [vmem:[%s4491_s1 + $0x84] sm:$0xf0]  ;;  %v2252_v35 = vld [vmem:[%s4491_s1 + $0x80] sm:$0xf] }
  0x17   :  { %v30_v31 = vld [vmem:[%s4494_s0] sm:$0xff]  ;;  %v2245_v32 = vor.u32 %v2927_v29, %v2244_v28  ;;  %v2249_v34 = vor.u32 %v2926_v30, %v2246_v33  ;;  %v2928_v36 = vld [vmem:[%s4491_s1 + $0x88] sm:$0xf0]  ;;  %v2234_v44 = vld [vmem:[%s4491_s1 + $0x6c] sm:$0xf0] }
  0x18   :  { %198 = vmatpush.bf16.msra.mxu0 %v2109_v48  ;;  %223 = vmatpush.bf16.msra.mxu2 %v2129_v53  ;;  %v2253_v37 = vor.u32 %v2928_v36, %v2252_v35  ;;  %v232_v38 = vunpack.c.l.bf16 %v30_v31  ;;  %v2232_v39 = vld [vmem:[%s4491_s1 + $0x60] sm:$0xf]  ;;  %v2924_v40 = vld [vmem:[%s4491_s1 + $0x68] sm:$0xf0]  ;;  %v2923_v41 = vld [vmem:[%s4491_s1 + $0x64] sm:$0xf]  ;;  %v233_v42 = vunpack.c.h.bf16 %v30_v31 }
  0x19   :  { %211 = vmatpush.bf16.msra.mxu1 %v2113_v49  ;;  %448 = vmatpush.bf16.msra.mxu3 %v2257_v22  ;;  %v2233_v43 = vor.u32 %v2924_v40, %v2232_v39  ;;  %v2240_v45 = vld [vmem:[%s4491_s1 + $0x68] sm:$0xf]  ;;  %v2925_v46 = vld [vmem:[%s4491_s1 + $0x70] sm:$0xf0]  ;;  %v2237_v47 = vor.u32 %v2923_v41, %v2234_v44  ;;  %v2920_v54 = vld [vmem:[%s4491_s1 + $0x4c] sm:$0xf] }
  0x1a   :  { %v2241_v48 = vor.u32 %v2925_v46, %v2240_v45  ;;  %v2220_v52 = vld [vmem:[%s4491_s1 + $0x48] sm:$0xf]  ;;  %v2921_v53 = vld [vmem:[%s4491_s1 + $0x50] sm:$0xf0]  ;;  %v2922_v59 = vld [vmem:[%s4491_s1 + $0x58] sm:$0xf0] }
  0x1b   :  { %v2221_v56 = vor.u32 %v2921_v53, %v2220_v52  ;;  %v2208_v0 = vld [vmem:[%s4491_s1 + $0x30] sm:$0xf]  ;;  %v2918_v1 = vld [vmem:[%s4491_s1 + $0x38] sm:$0xf0]  ;;  %v2216_v6 = vld [vmem:[%s4491_s1 + $0x38] sm:$0xf] }
  0x1c   :  { %199 = vmatpush.bf16.msra.mxu0 %v2097_v57  ;;  %224 = vmatpush.bf16.msra.mxu2 %v2117_v62  ;;  %v2222_v57 = vld [vmem:[%s4491_s1 + $0x54] sm:$0xf0]  ;;  %v2919_v7 = vld [vmem:[%s4491_s1 + $0x40] sm:$0xf0]  ;;  %v2914_v14 = vld [vmem:[%s4491_s1 + $0x1c] sm:$0xf] }
  0x1d   :  { %212 = vmatpush.bf16.msra.mxu1 %v2101_v58  ;;  %449 = vmatpush.bf16.msra.mxu3 %v2245_v32  ;;  %v2228_v58 = vld [vmem:[%s4491_s1 + $0x50] sm:$0xf]  ;;  %v2225_v61 = vor.u32 %v2920_v54, %v2222_v57  ;;  %v2196_v12 = vld [vmem:[%s4491_s1 + $0x18] sm:$0xf]  ;;  %v2915_v13 = vld [vmem:[%s4491_s1 + $0x20] sm:$0xf0] }
  0x1e   :  { %v2229_v62 = vor.u32 %v2922_v59, %v2228_v58  ;;  %v2197_v15 = vor.u32 %v2915_v13, %v2196_v12  ;;  %v2198_v16 = vld [vmem:[%s4491_s1 + $0x24] sm:$0xf0]  ;;  %v2184_v23 = vld [vmem:[%s4491_s1] sm:$0xf]  ;;  %v2912_v24 = vld [vmem:[%s4491_s1 + $0x8] sm:$0xf0] }
  0x1f   :  { %v2201_v21 = vor.u32 %v2914_v14, %v2198_v16  ;;  %v2911_v25 = vld [vmem:[%s4491_s1 + $0x4] sm:$0xf]  ;;  %v2185_v28 = vor.u32 %v2912_v24, %v2184_v23  ;;  %v2186_v29 = vld [vmem:[%s4491_s1 + $0xc] sm:$0xf0]  ;;  %v2192_v30 = vld [vmem:[%s4491_s1 + $0x8] sm:$0xf] }
  0x20   :  { %200 = vmatpush.bf16.msra.mxu0 %v2085_v2  ;;  %225 = vmatpush.bf16.msra.mxu2 %v2105_v5  ;;  %v2917_v2 = vld [vmem:[%s4491_s1 + $0x34] sm:$0xf]  ;;  %v2210_v5 = vld [vmem:[%s4491_s1 + $0x3c] sm:$0xf0]  ;;  %v2189_v32 = vor.u32 %v2911_v25, %v2186_v29  ;;  %v31_v45 = vld [vmem:[%s4494_s0 + $0x8] sm:$0xf] }
  0x21   :  { %213 = vmatpush.bf16.msra.mxu1 %v2089_v4  ;;  %450 = vmatpush.bf16.msra.mxu3 %v2233_v43  ;;  %v2209_v4 = vor.u32 %v2918_v1, %v2208_v0  ;;  %v2913_v33 = vld [vmem:[%s4491_s1 + $0x10] sm:$0xf0]  ;;  %v3492_v39 = vld [vmem:[%s4493_s2] ss:$0 sm:$0xff]  ;;  %v2180_v12 = vld [vmem:[%s4494_s0 + $0xc] sm:$0xff] }
  0x22   :  { %v2357_v13 = vld [vmem:[%s4491_s1 + $0x90] sm:$0xf]  ;;  %v2954_v14 = vld [vmem:[%s4491_s1 + $0x98] sm:$0xf0]  ;;  %v2345_v23 = vld [vmem:[%s4491_s1 + $0x78] sm:$0xf] }
  0x23   :  { %201 = vmatmul.bf16.vlgmr.msra.gmra.mxu0 %v32_v8  ;;  %v2358_v16 = vor.u32 %v2954_v14, %v2357_v13  ;;  %v2951_v24 = vld [vmem:[%s4491_s1 + $0x80] sm:$0xf0]  ;;  %v2950_v25 = vld [vmem:[%s4491_s1 + $0x7c] sm:$0xf]  ;;  %v2353_v29 = vld [vmem:[%s4491_s1 + $0x80] sm:$0xf] }
  0x24   :  { %214 = vmatmul.bf16.vlgmr.msra.gmra.mxu1 %v32_v8  ;;  %226 = vmatpush.bf16.msra.mxu2 %v2093_v9  ;;  %v2217_v9 = vor.u32 %v2919_v7, %v2216_v6  ;;  %v2371_v7 = vld [vmem:[%s4491_s1 + $0xb4] sm:$0xf0] }
  0x25   :  { %460 = vmatpush.bf16.msrb.mxu0 %v2273_v17  ;;  %473 = vmatpush.bf16.msrb.mxu1 %v2277_v18  ;;  %v2204_v17 = vld [vmem:[%s4491_s1 + $0x20] sm:$0xf]  ;;  %v2916_v18 = vld [vmem:[%s4491_s1 + $0x28] sm:$0xf0] }
  0x26   :  { %451 = vmatpush.bf16.msra.mxu3 %v2221_v56  ;;  %v2205_v22 = vor.u32 %v2916_v18, %v2204_v17  ;;  %v2359_v17 = vld [vmem:[%s4491_s1 + $0x9c] sm:$0xf0]  ;;  %v2365_v18 = vld [vmem:[%s4491_s1 + $0x98] sm:$0xf] }
  0x27   :  { %227 = vmatmul.bf16.vlgmr.msra.gmra.mxu2 %v32_v8  ;;  %v2213_v8 = vor.u32 %v2917_v2, %v2210_v5  ;;  %v2956_v5 = vld [vmem:[%s4491_s1 + $0xac] sm:$0xf] }
  0x29   :  { %461 = vmatpush.bf16.msrb.mxu0 %v2261_v26  ;;  %474 = vmatpush.bf16.msrb.mxu1 %v2265_v27 }
  0x2a   :  { %452 = vmatpush.bf16.msra.mxu3 %v2209_v4  ;;  %v2369_v4 = vld [vmem:[%s4491_s1 + $0xa8] sm:$0xf] }
  0x2d   :  { %462 = vmatpush.bf16.msrb.mxu0 %v2249_v34  ;;  %475 = vmatpush.bf16.msrb.mxu1 %v2253_v37  ;;  %v2193_v34 = vor.u32 %v2913_v33, %v2192_v30  ;;  %v2952_v30 = vld [vmem:[%s4491_s1 + $0x88] sm:$0xf0] }
  0x2e   :  { %453 = vmatpush.bf16.msra.mxu3 %v2197_v15  ;;  %v2953_v15 = vld [vmem:[%s4491_s1 + $0x94] sm:$0xf] }
  0x31   :  { %463 = vmatpush.bf16.msrb.mxu0 %v2237_v47  ;;  %476 = vmatpush.bf16.msrb.mxu1 %v2241_v48 }
  0x32   :  { %454 = vmatpush.bf16.msra.mxu3 %v2185_v28  ;;  %v2347_v28 = vld [vmem:[%s4491_s1 + $0x84] sm:$0xf0] }
  0x33   :  { %v2350_v33 = vor.u32 %v2950_v25, %v2347_v28  ;;  %v2937_v25 = vld [vmem:[%s4491_s1 + $0x10] sm:$0xf0] }
  0x35   :  { %464 = vmatpush.bf16.msrb.mxu0 %v2225_v61  ;;  %477 = vmatpush.bf16.msrb.mxu1 %v2229_v62 }
  0x39   :  { %465 = vmatpush.bf16.msrb.mxu0 %v2213_v8  ;;  %478 = vmatpush.bf16.msrb.mxu1 %v2217_v9  ;;  %v2377_v8 = vld [vmem:[%s4491_s1 + $0xb0] sm:$0xf]  ;;  %v2958_v9 = vld [vmem:[%s4491_s1 + $0xb8] sm:$0xf0] }
  0x3d   :  { %466 = vmatpush.bf16.msrb.mxu0 %v2201_v21  ;;  %479 = vmatpush.bf16.msrb.mxu1 %v2205_v22  ;;  %v2362_v21 = vor.u32 %v2953_v15, %v2359_v17  ;;  %v2285_v17 = vld [vmem:[%s4491_s1] sm:$0xf] }
  0x41   :  { %467 = vmatpush.bf16.msrb.mxu0 %v2189_v32  ;;  %480 = vmatpush.bf16.msrb.mxu1 %v2193_v34  ;;  %v2354_v34 = vor.u32 %v2952_v30, %v2353_v29 }
  0xa0   :  { %v202_v49 = vpop.f32.mrf.mxu0 }
  0xa1   :  { %v234_v50 = vadd.f32 %v232_v38, %v202_v49  ;;  %v215_v51 = vpop.f32.mrf.mxu1 }
  0xa2   :  { %v235_v55 = vadd.f32 %v233_v42, %v215_v51  ;;  %v274_v51 = vunpack.c.l.bf16 %v31_v45  ;;  %v2949_v45 = vld [vmem:[%s4491_s1 + $0x70] sm:$0xf0] }
  0xa3   :  { %v2178_v60 = vmul.f32 -1.442695, %v234_v50 }
  0xa4   :  { %v2179_v63 = vmul.f32 -1.442695, %v235_v55 }
  0xa5   :  { %3080 = vpow2.f32 %v2178_v60 }
  0xa6   :  { %3082 = vpow2.f32 %v2179_v63 }
  0xa8   :  { %v204_v10 = vpop.f32.mrf.mxu0 }
  0xa9   :  { %v217_v11 = vpop.f32.mrf.mxu1  ;;  %v2374_v10 = vor.u32 %v2956_v5, %v2371_v7  ;;  %v2939_v7 = vld [vmem:[%s4491_s1 + $0x20] sm:$0xf0] }
  0xaa   :  { %v228_v20 = vpop.f32.mrf.mxu2  ;;  %v2378_v11 = vor.u32 %v2958_v9, %v2377_v8  ;;  %v2938_v9 = vld [vmem:[%s4491_s1 + $0x1c] sm:$0xf] }
  0xab   :  { %v3081_v19 = vpop.eup %3080  ;;  %v275_v47 = vadd.f32 %v3492_v39, %v228_v20  ;;  %715 = vmatpush.bf16.msrb.mxu3 %v2374_v10  ;;  %v487_v20 = vunpack.c.h.bf16 %v2180_v12  ;;  %v2299_v10 = vld [vmem:[%s4491_s1 + $0x24] sm:$0xf0] }
  0xac   :  { %v3083_v26 = vpop.eup %3082  ;;  %v242_v27 = vadd.f32 1.0, %v3081_v19  ;;  %728 = vmatpush.bf16.msra.mxu0 %v2378_v11  ;;  %v2955_v19 = vld [vmem:[%s4491_s1 + $0xa0] sm:$0xf0]  ;;  %v2305_v11 = vld [vmem:[%s4491_s1 + $0x20] sm:$0xf] }
  0xad   :  { %v243_v31 = vadd.f32 1.0, %v3083_v26  ;;  %v2366_v22 = vor.u32 %v2955_v19, %v2365_v18  ;;  %v2936_v18 = vld [vmem:[%s4491_s1 + $0x8] sm:$0xf0] }
  0xae   :  { %3084 = vrcp.f32 %v242_v27  ;;  %v255_v42 = vand.u32 2147483648, %v242_v27  ;;  %v253_v44 = vand.u32 2147483647, %v242_v27  ;;  %vm249_vm1 = vweird.f32 %v242_v27 }
  0xaf   :  { %3086 = vrcp.f32 %v243_v31  ;;  %vm264_vm4 = vweird.f32 %v243_v31  ;;  %v270_v56 = vand.u32 2147483648, %v243_v31  ;;  %v268_v58 = vand.u32 2147483647, %v243_v31  ;;  %716 = vmatpush.bf16.msrb.mxu3 %v2362_v21  ;;  %v2287_v21 = vld [vmem:[%s4491_s1 + $0xc] sm:$0xf0] }
  0xb0   :  { %v256_v49 = vor.u32 1.1754944e-38, %v255_v42  ;;  %vm254_vm3 = vcmp.eq.f32.partialorder %v253_v44, 8.507059e+37  ;;  %729 = vmatpush.bf16.msra.mxu0 %v2366_v22  ;;  %v2335_v42 = vld [vmem:[%s4491_s1 + $0x6c] sm:$0xf0] }
  0xb1   :  { %v271_v59 = vor.u32 1.1754944e-38, %v270_v56  ;;  %vm269_vm7 = vcmp.eq.f32.partialorder %v268_v58, 8.507059e+37  ;;  %v2946_v56 = vld [vmem:[%s4491_s1 + $0x58] sm:$0xf0] }
  0xb2   :  { %v230_v35 = vpop.f32.mrf.mxu2  ;;  %v2942_v58 = vld [vmem:[%s4491_s1 + $0x38] sm:$0xf0] }
  0xb3   :  { %717 = vmatpush.bf16.msrb.mxu3 %v2350_v33 }
  0xb4   :  { %v3085_v36 = vpop.eup %3084  ;;  %730 = vmatpush.bf16.msra.mxu0 %v2354_v34 }
  0xb5   :  { %v3087_v37 = vpop.eup %3086  ;;  %v245_v38 = vmul.f32 %v3085_v36, %v242_v27  ;;  %vm250_vm0 = vweird.f32 %v3085_v36  ;;  %v2346_v27 = vor.u32 %v2951_v24, %v2345_v23  ;;  %v2293_v24 = vld [vmem:[%s4491_s1 + $0x8] sm:$0xf] }
  0xb6   :  { %v260_v41 = vmul.f32 %v3087_v37, %v243_v31  ;;  %vm251_vm2 = vmor %vm249_vm1, %vm250_vm0  ;;  %vm265_vm5 = vweird.f32 %v3087_v37  ;;  %v2294_v29 = vor.u32 %v2937_v25, %v2293_v24 }
  0xb7   :  { %v246_v40 = vsub.f32 1.0, %v245_v38  ;;  %vm266_vm6 = vmor %vm264_vm4, %vm265_vm5  ;;  %v2948_v38 = vld [vmem:[%s4491_s1 + $0x68] sm:$0xf0] }
  0xb8   :  { %v261_v48 = vsub.f32 1.0, %v260_v41  ;;  %v2947_v41 = vld [vmem:[%s4491_s1 + $0x64] sm:$0xf] }
  0xb9   :  { %v247_v43 = vmul.f32 %v3085_v36, %v246_v40  ;;  %v2338_v44 = vor.u32 %v2947_v41, %v2335_v42 }
  0xba   :  { %v262_v54 = vmul.f32 %v3087_v37, %v261_v48 }
  0xbb   :  { %v248_v46 = vadd.f32 %v3085_v36, %v247_v43  ;;  %v2341_v43 = vld [vmem:[%s4491_s1 + $0x68] sm:$0xf]  ;;  %718 = vmatpush.bf16.msrb.mxu3 %v2338_v44 }
  0xbc   :  { %v263_v57 = vadd.f32 %v3087_v37, %v262_v54 }
  0xbd   :  { %v252_v50 = vsel %vm251_vm2, %v3085_v36, %v248_v46  ;;  %v486_v36 = vunpack.c.l.bf16 %v2180_v12  ;;  %v2321_v46 = vld [vmem:[%s4491_s1 + $0x48] sm:$0xf]  ;;  %v2940_v12 = vld [vmem:[%s4491_s1 + $0x28] sm:$0xf0] }
  0xbe   :  { %v257_v52 = vsel %vm254_vm3, %v256_v49, %v252_v50  ;;  %v267_v60 = vsel %vm266_vm6, %v3087_v37, %v263_v57  ;;  %v2333_v37 = vld [vmem:[%s4491_s1 + $0x60] sm:$0xf]  ;;  %v2342_v49 = vor.u32 %v2949_v45, %v2341_v43  ;;  %v2309_v57 = vld [vmem:[%s4491_s1 + $0x30] sm:$0xf]  ;;  %v2306_v19 = vor.u32 %v2940_v12, %v2305_v11  ;;  %v2466_v11 = vld [vmem:[%s4491_s1 + $0x98] sm:$0xf] }
  0xbf   :  { %v276_v53 = vmul.f32 %v275_v47, %v257_v52  ;;  %v272_v63 = vsel %vm269_vm7, %v271_v59, %v267_v60  ;;  %v2334_v40 = vor.u32 %v2948_v38, %v2333_v37  ;;  %v2945_v47 = vld [vmem:[%s4491_s1 + $0x50] sm:$0xf0]  ;;  %v2323_v52 = vld [vmem:[%s4491_s1 + $0x54] sm:$0xf0]  ;;  %v2979_v12 = vld [vmem:[%s4491_s1 + $0xa0] sm:$0xf0] }
  0xc0   :  { %v2322_v50 = vor.u32 %v2945_v47, %v2321_v46  ;;  %731 = vmatpush.bf16.msra.mxu0 %v2342_v49 }
  0xc1   :  { %v277_v55 = vadd.f32 %v276_v53, %v274_v51  ;;  %v2944_v51 = vld [vmem:[%s4491_s1 + $0x4c] sm:$0xf]  ;;  %v2329_v53 = vld [vmem:[%s4491_s1 + $0x50] sm:$0xf] }
  0xc2   :  { %v2330_v60 = vor.u32 %v2946_v56, %v2329_v53 }
  0xc3   :  { %3088 = vtanh.f32 %v277_v55  ;;  %v2326_v55 = vor.u32 %v2944_v51, %v2323_v52 }
  0xc4   :  { %732 = vmatpush.bf16.msra.mxu0 %v2330_v60 }
  0xc5   :  { %719 = vmatpush.bf16.msrb.mxu3 %v2326_v55 }
  0xc9   :  { %v3089_v61 = vpop.eup %3088 }
  0xca   :  { %v279_v62 = vsub.f32 %v3332_v3, %v3089_v61  ;;  %v2957_v3 = vld [vmem:[%s4491_s1 + $0xb0] sm:$0xf0] }
  0xcb   :  { %v2370_v6 = vor.u32 %v2957_v3, %v2369_v4  ;;  %v2943_v4 = vld [vmem:[%s4491_s1 + $0x40] sm:$0xf0]  ;;  %v2310_v3 = vor.u32 %v2942_v58, %v2309_v57 }
  0xcc   :  { %v280_v0 = vmul.f32 %v279_v62, %v272_v63  ;;  %v2311_v62 = vld [vmem:[%s4491_s1 + $0x3c] sm:$0xf0] }
  0xcd   :  { %702 = vmatpush.bf16.msrb.mxu2 %v2370_v6  ;;  %v2297_v6 = vld [vmem:[%s4491_s1 + $0x18] sm:$0xf] }
  0xce   :  { %v3499_v1 = vadd.f32 %v3089_v61, %v280_v0  ;;  %v2941_v61 = vld [vmem:[%s4491_s1 + $0x34] sm:$0xf]  ;;  %v2298_v15 = vor.u32 %v2939_v7, %v2297_v6  ;;  %v2458_v6 = vld [vmem:[%s4491_s1 + $0x90] sm:$0xf]  ;;  %v2978_v7 = vld [vmem:[%s4491_s1 + $0x98] sm:$0xf0] }
  0xcf   :  { %v2314_v5 = vor.u32 %v2941_v61, %v2311_v62  ;;  %v2470_v61 = vld [vmem:[%s4491_s1 + $0xa8] sm:$0xf]  ;;  %v2980_v62 = vld [vmem:[%s4491_s1 + $0xac] sm:$0xf] }
  0xd0   :  { %v282_v2 = vpack.c.bf16 %v3499_v1, %v3499_v1 }
  0xd1   :  { %703 = vmatpush.bf16.msrb.mxu2 %v2358_v16  ;;  %720 = vmatpush.bf16.msrb.mxu3 %v2314_v5  ;;  %v2302_v16 = vor.u32 %v2938_v9, %v2299_v10  ;;  %v2459_v9 = vor.u32 %v2978_v7, %v2458_v6  ;;  %v2460_v10 = vld [vmem:[%s4491_s1 + $0x9c] sm:$0xf0] }
  0xd2   :  { %283 = vst [vmem:[%s4495_s4] sm:$0xf] %v282_v2  ;;  %455 = vmatmul.bf16.vlgmr.msra.gmra.mxu3 %v282_v2  ;;  %468 = vmatmul.bf16.vlgmr.msrb.gmra.mxu0 %v282_v2 }
  0xd3   :  { %481 = vmatmul.bf16.vlgmr.msrb.gmra.mxu1 %v282_v2  ;;  %v2317_v2 = vld [vmem:[%s4491_s1 + $0x38] sm:$0xf] }
  0xd4   :  { %v2318_v8 = vor.u32 %v2943_v4, %v2317_v2  ;;  %v2478_v2 = vld [vmem:[%s4491_s1 + $0xb0] sm:$0xf]  ;;  %v2982_v4 = vld [vmem:[%s4491_s1 + $0xb8] sm:$0xf0] }
  0xd5   :  { %704 = vmatpush.bf16.msrb.mxu2 %v2346_v27  ;;  %v2286_v27 = vor.u32 %v2936_v18, %v2285_v17  ;;  %721 = vmatpush.bf16.msrb.mxu3 %v2302_v16  ;;  %v2479_v5 = vor.u32 %v2982_v4, %v2478_v2  ;;  %v2446_v16 = vld [vmem:[%s4491_s1 + $0x78] sm:$0xf]  ;;  %v2975_v17 = vld [vmem:[%s4491_s1 + $0x80] sm:$0xf0]  ;;  %v2974_v18 = vld [vmem:[%s4491_s1 + $0x7c] sm:$0xf] }
  0xd6   :  { %733 = vmatpush.bf16.msra.mxu0 %v2318_v8  ;;  %v2977_v8 = vld [vmem:[%s4491_s1 + $0x94] sm:$0xf]  ;;  %v2962_v2 = vld [vmem:[%s4491_s1 + $0x1c] sm:$0xf]  ;;  %v2400_v4 = vld [vmem:[%s4491_s1 + $0x24] sm:$0xf0] }
  0xd9   :  { %705 = vmatpush.bf16.msrb.mxu2 %v2334_v40  ;;  %v2181_v40 = vld [vmem:[%s4494_s0 + $0x14] sm:$0xf] }
  0xda   :  { %734 = vmatpush.bf16.msra.mxu0 %v2306_v19  ;;  %v528_v46 = vunpack.c.l.bf16 %v2181_v40  ;;  %v2447_v19 = vor.u32 %v2975_v17, %v2446_v16  ;;  %v2969_v40 = vld [vmem:[%s4491_s1 + $0x50] sm:$0xf0] }
  0xdb   :  { %v2961_v16 = vld [vmem:[%s4491_s1 + $0x10] sm:$0xf0] }
  0xdd   :  { %706 = vmatpush.bf16.msrb.mxu2 %v2322_v50 }
  0xde   :  { %735 = vmatpush.bf16.msra.mxu0 %v2294_v29  ;;  %v2972_v29 = vld [vmem:[%s4491_s1 + $0x68] sm:$0xf0] }
  0xe1   :  { %707 = vmatpush.bf16.msrb.mxu2 %v2310_v3 }
  0xe5   :  { %708 = vmatpush.bf16.msrb.mxu2 %v2298_v15  ;;  %v2281_v15 = vld [vmem:[%s4494_s0 + $0x18] sm:$0xff] }
  0xe9   :  { %709 = vmatpush.bf16.msrb.mxu2 %v2286_v27  ;;  %v742_v27 = vunpack.c.h.bf16 %v2281_v15 }
 0x14f   :  { %v469_v26 = vpop.f32.mrf.mxu0 }
 0x150   :  { %v489_v31 = vadd.f32 %v487_v20, %v469_v26  ;;  %v3563_v32 = vpop.f32.mrf.mxu1  ;;  %v2935_v20 = vld [vmem:[%s4491_s1 + $0x4] sm:$0xf] }
 0x151   :  { %v2290_v28 = vor.u32 %v2935_v20, %v2287_v21  ;;  %v529_v44 = vadd.f32 %v3492_v39, %v3563_v32  ;;  %v2448_v20 = vld [vmem:[%s4491_s1 + $0x84] sm:$0xf0]  ;;  %v2454_v21 = vld [vmem:[%s4491_s1 + $0x80] sm:$0xf] }
 0x152   :  { %v2279_v35 = vmul.f32 -1.442695, %v489_v31  ;;  %v2451_v24 = vor.u32 %v2974_v18, %v2448_v20 }
 0x153   :  { %722 = vmatpush.bf16.msrb.mxu3 %v2290_v28  ;;  %v2434_v28 = vld [vmem:[%s4491_s1 + $0x60] sm:$0xf] }
 0x154   :  { %3090 = vpow2.f32 %v2279_v35 }
 0x155   :  { %v456_v48 = vpop.f32.mrf.mxu3 }
 0x156   :  { %v488_v54 = vadd.f32 %v486_v36, %v456_v48 }
 0x157   :  { %v471_v59 = vpop.f32.mrf.mxu0  ;;  %983 = vmatpush.bf16.msra.mxu3 %v2479_v5  ;;  %v2964_v5 = vld [vmem:[%s4491_s1 + $0x28] sm:$0xf0] }
 0x158   :  { %v2278_v63 = vmul.f32 -1.442695, %v488_v54  ;;  %v484_v0 = vpop.f32.mrf.mxu1 }
 0x159   :  { %v2472_v0 = vld [vmem:[%s4491_s1 + $0xb4] sm:$0xf0] }
 0x15a   :  { %3092 = vpow2.f32 %v2278_v63  ;;  %v3091_v13 = vpop.eup %3090  ;;  %v2475_v3 = vor.u32 %v2980_v62, %v2472_v0  ;;  %v2963_v0 = vld [vmem:[%s4491_s1 + $0x20] sm:$0xf0] }
 0x15b   :  { %v497_v23 = vadd.f32 1.0, %v3091_v13  ;;  %v2463_v13 = vor.u32 %v2977_v8, %v2460_v10 }
 0x15c   :  { %970 = vmatpush.bf16.msra.mxu2 %v2475_v3  ;;  %v2406_v3 = vld [vmem:[%s4491_s1 + $0x20] sm:$0xf] }
 0x15d   :  { %v458_v14 = vpop.f32.mrf.mxu3  ;;  %v524_v52 = vand.u32 2147483648, %v497_v23  ;;  %vm518_vm13 = vweird.f32 %v497_v23  ;;  %v522_v53 = vand.u32 2147483647, %v497_v23  ;;  %v2407_v10 = vor.u32 %v2964_v5, %v2406_v3  ;;  %v2561_v3 = vld [vmem:[%s4491_s1 + $0x9c] sm:$0xf0] }
 0x15e   :  { %v2467_v14 = vor.u32 %v2979_v12, %v2466_v11  ;;  %v2386_v11 = vld [vmem:[%s4491_s1] sm:$0xf]  ;;  %v2960_v12 = vld [vmem:[%s4491_s1 + $0x8] sm:$0xf0]  ;;  %v2567_v5 = vld [vmem:[%s4491_s1 + $0x98] sm:$0xf] }
 0x15f   :  { %v525_v56 = vor.u32 1.1754944e-38, %v524_v52  ;;  %vm523_vm15 = vcmp.eq.f32.partialorder %v522_v53, 8.507059e+37  ;;  %v2966_v52 = vld [vmem:[%s4491_s1 + $0x38] sm:$0xf0]  ;;  %v2965_v53 = vld [vmem:[%s4491_s1 + $0x34] sm:$0xf]  ;;  %v2387_v20 = vor.u32 %v2960_v12, %v2386_v11 }
 0x160   :  { %v3093_v22 = vpop.eup %3092  ;;  %971 = vmatpush.bf16.msra.mxu2 %v2463_v13  ;;  %984 = vmatpush.bf16.msra.mxu3 %v2467_v14  ;;  %v2959_v13 = vld [vmem:[%s4491_s1 + $0x4] sm:$0xf]  ;;  %v2388_v14 = vld [vmem:[%s4491_s1 + $0xc] sm:$0xf0]  ;;  %v2998_v12 = vld [vmem:[%s4491_s1 + $0x7c] sm:$0xf] }
 0x161   :  { %v496_v26 = vadd.f32 1.0, %v3093_v22  ;;  %v2976_v22 = vld [vmem:[%s4491_s1 + $0x88] sm:$0xf0]  ;;  %v2999_v11 = vld [vmem:[%s4491_s1 + $0x80] sm:$0xf0] }
 0x162   :  { %v2455_v25 = vor.u32 %v2976_v22, %v2454_v21  ;;  %v2391_v22 = vor.u32 %v2959_v13, %v2388_v14  ;;  %v2549_v14 = vld [vmem:[%s4491_s1 + $0x84] sm:$0xf0] }
 0x163   :  { %3094 = vrcp.f32 %v496_v26  ;;  %v509_v36 = vand.u32 2147483648, %v496_v26  ;;  %v507_v38 = vand.u32 2147483647, %v496_v26  ;;  %vm503_vm9 = vweird.f32 %v496_v26 }
 0x164   :  { %3096 = vrcp.f32 %v497_v23  ;;  %972 = vmatpush.bf16.msra.mxu2 %v2451_v24  ;;  %985 = vmatpush.bf16.msra.mxu3 %v2455_v25 }
 0x165   :  { %v510_v43 = vor.u32 1.1754944e-38, %v509_v36  ;;  %vm508_vm11 = vcmp.eq.f32.partialorder %v507_v38, 8.507059e+37  ;;  %v2422_v38 = vld [vmem:[%s4491_s1 + $0x48] sm:$0xf] }
 0x169   :  { %v3095_v30 = vpop.eup %3094 }
 0x16a   :  { %v3097_v31 = vpop.eup %3096  ;;  %v499_v33 = vmul.f32 %v3095_v30, %v496_v26  ;;  %vm504_vm8 = vweird.f32 %v3095_v30  ;;  %v741_v26 = vunpack.c.l.bf16 %v2281_v15  ;;  %v2394_v15 = vld [vmem:[%s4491_s1 + $0x8] sm:$0xf] }
 0x16b   :  { %v514_v35 = vmul.f32 %v3097_v31, %v497_v23  ;;  %vm505_vm10 = vmor %vm503_vm9, %vm504_vm8  ;;  %vm519_vm12 = vweird.f32 %v3097_v31  ;;  %v2395_v24 = vor.u32 %v2961_v16, %v2394_v15  ;;  %v2555_v15 = vld [vmem:[%s4491_s1 + $0x80] sm:$0xf]  ;;  %v3000_v16 = vld [vmem:[%s4491_s1 + $0x88] sm:$0xf0] }
 0x16c   :  { %v500_v34 = vsub.f32 1.0, %v499_v33  ;;  %vm520_vm14 = vmor %vm518_vm13, %vm519_vm12  ;;  %v2436_v33 = vld [vmem:[%s4491_s1 + $0x6c] sm:$0xf0] }
 0x16d   :  { %v515_v42 = vsub.f32 1.0, %v514_v35  ;;  %v2973_v35 = vld [vmem:[%s4491_s1 + $0x70] sm:$0xf0] }
 0x16e   :  { %v501_v37 = vmul.f32 %v3095_v30, %v500_v34  ;;  %v2442_v34 = vld [vmem:[%s4491_s1 + $0x68] sm:$0xf] }
 0x16f   :  { %v516_v49 = vmul.f32 %v3097_v31, %v515_v42 }
 0x170   :  { %v502_v41 = vadd.f32 %v3095_v30, %v501_v37  ;;  %v2443_v37 = vor.u32 %v2973_v35, %v2442_v34  ;;  %v2282_v34 = vld [vmem:[%s4494_s0 + $0x20] sm:$0xf] }
 0x171   :  { %v517_v51 = vadd.f32 %v3097_v31, %v516_v49 }
 0x172   :  { %v506_v45 = vsel %vm505_vm10, %v3095_v30, %v502_v41  ;;  %v2971_v30 = vld [vmem:[%s4491_s1 + $0x64] sm:$0xf]  ;;  %v2968_v41 = vld [vmem:[%s4491_s1 + $0x4c] sm:$0xf]  ;;  %986 = vmatpush.bf16.msra.mxu3 %v2443_v37 }
 0x173   :  { %v511_v47 = vsel %vm508_vm11, %v510_v43, %v506_v45  ;;  %v521_v54 = vsel %vm520_vm14, %v3097_v31, %v517_v51  ;;  %v2435_v31 = vor.u32 %v2972_v29, %v2434_v28  ;;  %v2439_v36 = vor.u32 %v2971_v30, %v2436_v33  ;;  %v2424_v45 = vld [vmem:[%s4491_s1 + $0x54] sm:$0xf0]  ;;  %v2410_v51 = vld [vmem:[%s4491_s1 + $0x30] sm:$0xf] }
 0x174   :  { %v530_v48 = vmul.f32 %v529_v44, %v511_v47  ;;  %v526_v57 = vsel %vm523_vm15, %v525_v56, %v521_v54  ;;  %v2423_v44 = vor.u32 %v2969_v40, %v2422_v38  ;;  %v2970_v47 = vld [vmem:[%s4491_s1 + $0x58] sm:$0xf0]  ;;  %v2418_v56 = vld [vmem:[%s4491_s1 + $0x38] sm:$0xf] }
 0x175   :  { %973 = vmatpush.bf16.msra.mxu2 %v2439_v36 }
 0x176   :  { %v531_v50 = vadd.f32 %v530_v48, %v528_v46  ;;  %v2430_v46 = vld [vmem:[%s4491_s1 + $0x50] sm:$0xf] }
 0x177   :  { %v2431_v54 = vor.u32 %v2970_v47, %v2430_v46 }
 0x178   :  { %3098 = vtanh.f32 %v531_v50  ;;  %v2427_v50 = vor.u32 %v2968_v41, %v2424_v45  ;;  %v783_v41 = vunpack.c.l.bf16 %v2282_v34  ;;  %v2993_v34 = vld [vmem:[%s4491_s1 + $0x50] sm:$0xf0] }
 0x179   :  { %987 = vmatpush.bf16.msra.mxu3 %v2431_v54 }
 0x17a   :  { %974 = vmatpush.bf16.msra.mxu2 %v2427_v50 }
 0x17e   :  { %v3099_v55 = vpop.eup %3098 }
 0x17f   :  { %v533_v32 = vsub.f32 %v3499_v1, %v3099_v55  ;;  %v2981_v1 = vld [vmem:[%s4491_s1 + $0xb0] sm:$0xf0] }
 0x180   :  { %v2471_v63 = vor.u32 %v2981_v1, %v2470_v61  ;;  %v2411_v61 = vor.u32 %v2966_v52, %v2410_v51 }
 0x181   :  { %v534_v58 = vmul.f32 %v533_v32, %v526_v57  ;;  %v2967_v32 = vld [vmem:[%s4491_s1 + $0x40] sm:$0xf0] }
 0x182   :  { %957 = vmatpush.bf16.msra.mxu1 %v2471_v63  ;;  %v2419_v62 = vor.u32 %v2967_v32, %v2418_v56  ;;  %v2398_v63 = vld [vmem:[%s4491_s1 + $0x18] sm:$0xf]  ;;  %v2571_v56 = vld [vmem:[%s4491_s1 + $0xa8] sm:$0xf]  ;;  %v3004_v32 = vld [vmem:[%s4491_s1 + $0xac] sm:$0xf] }
 0x183   :  { %v3661_v59 = vadd.f32 %v3099_v55, %v534_v58  ;;  %v2412_v55 = vld [vmem:[%s4491_s1 + $0x3c] sm:$0xf0]  ;;  %v2399_v8 = vor.u32 %v2963_v0, %v2398_v63  ;;  %v2559_v63 = vld [vmem:[%s4491_s1 + $0x90] sm:$0xf]  ;;  %v3002_v0 = vld [vmem:[%s4491_s1 + $0x98] sm:$0xf0] }
 0x184   :  { %v2415_v1 = vor.u32 %v2965_v53, %v2412_v55  ;;  %988 = vmatpush.bf16.msra.mxu3 %v2419_v62 }
 0x185   :  { %v536_v60 = vpack.c.bf16 %v3661_v59, %v3661_v59 }
 0x186   :  { %958 = vmatpush.bf16.msra.mxu1 %v2459_v9  ;;  %975 = vmatpush.bf16.msra.mxu2 %v2415_v1  ;;  %v2403_v9 = vor.u32 %v2962_v2, %v2400_v4  ;;  %v3001_v2 = vld [vmem:[%s4491_s1 + $0x94] sm:$0xf]  ;;  %v2560_v4 = vor.u32 %v3002_v0, %v2559_v63 }
 0x187   :  { %2280 = vst [vmem:[%s4495_s4 + $0x4] sm:$0xf] %v536_v60  ;;  %710 = vmatmul.bf16.vlgmr.msrb.gmra.mxu2 %v536_v60  ;;  %723 = vmatmul.bf16.vlgmr.msrb.gmra.mxu3 %v536_v60 }
 0x188   :  { %736 = vmatmul.bf16.vlgmr.msra.gmra.mxu0 %v536_v60  ;;  %989 = vmatpush.bf16.msra.mxu3 %v2407_v10  ;;  %v2547_v10 = vld [vmem:[%s4491_s1 + $0x78] sm:$0xf] }
 0x189   :  { %v2548_v13 = vor.u32 %v2999_v11, %v2547_v10  ;;  %v2495_v11 = vld [vmem:[%s4491_s1 + $0x8] sm:$0xf] }
 0x18a   :  { %959 = vmatpush.bf16.msra.mxu1 %v2447_v19  ;;  %976 = vmatpush.bf16.msra.mxu2 %v2403_v9  ;;  %v2382_v9 = vld [vmem:[%s4494_s0 + $0x24] sm:$0xff] }
 0x18c   :  { %990 = vmatpush.bf16.msra.mxu3 %v2395_v24 }
 0x18e   :  { %960 = vmatpush.bf16.msra.mxu1 %v2435_v31  ;;  %977 = vmatpush.bf16.msra.mxu2 %v2391_v22  ;;  %v2995_v22 = vld [vmem:[%s4491_s1 + $0x64] sm:$0xf] }
 0x192   :  { %961 = vmatpush.bf16.msra.mxu1 %v2423_v44 }
 0x196   :  { %962 = vmatpush.bf16.msra.mxu1 %v2411_v61  ;;  %v3006_v61 = vld [vmem:[%s4491_s1 + $0xb8] sm:$0xf0] }
 0x19a   :  { %963 = vmatpush.bf16.msra.mxu1 %v2399_v8 }
 0x19e   :  { %964 = vmatpush.bf16.msra.mxu1 %v2387_v20  ;;  %v2535_v20 = vld [vmem:[%s4491_s1 + $0x60] sm:$0xf] }
 0x205   :  { %v3725_v23 = vpop.f32.mrf.mxu0 }
 0x206   :  { %v784_v38 = vadd.f32 %v3492_v39, %v3725_v23 }
 0x20a   :  { %v711_v42 = vpop.f32.mrf.mxu2  ;;  %v724_v43 = vpop.f32.mrf.mxu3 }
 0x20b   :  { %v743_v48 = vadd.f32 %v741_v26, %v711_v42  ;;  %v744_v49 = vadd.f32 %v742_v27, %v724_v43 }
 0x20d   :  { %v2379_v57 = vmul.f32 -1.442695, %v743_v48  ;;  %v2380_v58 = vmul.f32 -1.442695, %v744_v49  ;;  %v739_v60 = vpop.f32.mrf.mxu0 }
 0x20e   :  { %v2579_v60 = vld [vmem:[%s4491_s1 + $0xb0] sm:$0xf] }
 0x20f   :  { %3100 = vpow2.f32 %v2379_v57  ;;  %v2580_v62 = vor.u32 %v3006_v61, %v2579_v60  ;;  %v2986_v61 = vld [vmem:[%s4491_s1 + $0x1c] sm:$0xf] }
 0x210   :  { %3102 = vpow2.f32 %v2380_v58  ;;  %v2573_v58 = vld [vmem:[%s4491_s1 + $0xb4] sm:$0xf0] }
 0x211   :  { %v2576_v1 = vor.u32 %v3004_v32, %v2573_v58  ;;  %1238 = vmatpush.bf16.msrb.mxu2 %v2580_v62  ;;  %v2987_v58 = vld [vmem:[%s4491_s1 + $0x20] sm:$0xf0]  ;;  %v2507_v62 = vld [vmem:[%s4491_s1 + $0x20] sm:$0xf] }
 0x212   :  { %v713_v6 = vpop.f32.mrf.mxu2  ;;  %v726_v7 = vpop.f32.mrf.mxu3 }
 0x213   :  { %1225 = vmatpush.bf16.msrb.mxu1 %v2576_v1  ;;  %v3003_v6 = vld [vmem:[%s4491_s1 + $0xa0] sm:$0xf0]  ;;  %v2564_v7 = vor.u32 %v3001_v2, %v2561_v3  ;;  %v2501_v1 = vld [vmem:[%s4491_s1 + $0x24] sm:$0xf0]  ;;  %v2988_v2 = vld [vmem:[%s4491_s1 + $0x28] sm:$0xf0] }
 0x214   :  { %v2568_v8 = vor.u32 %v3003_v6, %v2567_v5  ;;  %v2504_v0 = vor.u32 %v2986_v61, %v2501_v1  ;;  %v2984_v3 = vld [vmem:[%s4491_s1 + $0x8] sm:$0xf0]  ;;  %v2508_v6 = vor.u32 %v2988_v2, %v2507_v62  ;;  %v2662_v61 = vld [vmem:[%s4491_s1 + $0x9c] sm:$0xf0]  ;;  %v2668_v1 = vld [vmem:[%s4491_s1 + $0x98] sm:$0xf] }
 0x215   :  { %v3101_v17 = vpop.eup %3100  ;;  %v3027_v62 = vld [vmem:[%s4491_s1 + $0xa0] sm:$0xf0]  ;;  %v2648_v2 = vld [vmem:[%s4491_s1 + $0x78] sm:$0xf] }
 0x216   :  { %v3103_v18 = vpop.eup %3102  ;;  %v751_v19 = vadd.f32 1.0, %v3101_v17  ;;  %1239 = vmatpush.bf16.msrb.mxu2 %v2568_v8  ;;  %v2552_v17 = vor.u32 %v2998_v12, %v2549_v14  ;;  %v2983_v8 = vld [vmem:[%s4491_s1 + $0x4] sm:$0xf]  ;;  %v2985_v12 = vld [vmem:[%s4491_s1 + $0x10] sm:$0xf0] }
 0x217   :  { %v752_v21 = vadd.f32 1.0, %v3103_v18  ;;  %1226 = vmatpush.bf16.msrb.mxu1 %v2564_v7  ;;  %v2556_v18 = vor.u32 %v3000_v16, %v2555_v15  ;;  %v2496_v15 = vor.u32 %v2985_v12, %v2495_v11 }
 0x218   :  { %3104 = vrcp.f32 %v751_v19  ;;  %v764_v29 = vand.u32 2147483648, %v751_v19  ;;  %v762_v33 = vand.u32 2147483647, %v751_v19  ;;  %vm758_vm1 = vweird.f32 %v751_v19 }
 0x219   :  { %3106 = vrcp.f32 %v752_v21  ;;  %v779_v47 = vand.u32 2147483648, %v752_v21  ;;  %vm773_vm5 = vweird.f32 %v752_v21  ;;  %v777_v48 = vand.u32 2147483647, %v752_v21 }
 0x21a   :  { %v765_v36 = vor.u32 1.1754944e-38, %v764_v29  ;;  %vm763_vm3 = vcmp.eq.f32.partialorder %v762_v33, 8.507059e+37  ;;  %1240 = vmatpush.bf16.msrb.mxu2 %v2556_v18  ;;  %v2523_v33 = vld [vmem:[%s4491_s1 + $0x48] sm:$0xf] }
 0x21b   :  { %v780_v51 = vor.u32 1.1754944e-38, %v779_v47  ;;  %vm778_vm7 = vcmp.eq.f32.partialorder %v777_v48, 8.507059e+37  ;;  %1227 = vmatpush.bf16.msrb.mxu1 %v2552_v17  ;;  %v2989_v47 = vld [vmem:[%s4491_s1 + $0x34] sm:$0xf] }
 0x21e   :  { %v3105_v25 = vpop.eup %3104 }
 0x21f   :  { %v3107_v26 = vpop.eup %3106  ;;  %v754_v27 = vmul.f32 %v3105_v25, %v751_v19  ;;  %vm759_vm0 = vweird.f32 %v3105_v25  ;;  %v996_v19 = vunpack.c.l.bf16 %v2382_v9 }
 0x220   :  { %v769_v30 = vmul.f32 %v3107_v26, %v752_v21  ;;  %vm760_vm2 = vmor %vm758_vm1, %vm759_vm0  ;;  %vm774_vm4 = vweird.f32 %v3107_v26  ;;  %v2996_v21 = vld [vmem:[%s4491_s1 + $0x68] sm:$0xf0] }
 0x221   :  { %v755_v28 = vsub.f32 1.0, %v754_v27  ;;  %vm775_vm6 = vmor %vm773_vm5, %vm774_vm4  ;;  %v2536_v24 = vor.u32 %v2996_v21, %v2535_v20  ;;  %v2997_v27 = vld [vmem:[%s4491_s1 + $0x70] sm:$0xf0] }
 0x222   :  { %v770_v37 = vsub.f32 1.0, %v769_v30 }
 0x223   :  { %v756_v31 = vmul.f32 %v3105_v25, %v755_v28 }
 0x224   :  { %v771_v44 = vmul.f32 %v3107_v26, %v770_v37  ;;  %v2525_v37 = vld [vmem:[%s4491_s1 + $0x54] sm:$0xf0] }
 0x225   :  { %v757_v35 = vadd.f32 %v3105_v25, %v756_v31 }
 0x226   :  { %v772_v46 = vadd.f32 %v3107_v26, %v771_v44 }
 0x227   :  { %v761_v40 = vsel %vm760_vm2, %v3105_v25, %v757_v35  ;;  %v2537_v25 = vld [vmem:[%s4491_s1 + $0x6c] sm:$0xf0]  ;;  %v2992_v35 = vld [vmem:[%s4491_s1 + $0x4c] sm:$0xf] }
 0x228   :  { %v766_v42 = vsel %vm763_vm3, %v765_v36, %v761_v40  ;;  %v776_v49 = vsel %vm775_vm6, %v3107_v26, %v772_v46  ;;  %v2543_v26 = vld [vmem:[%s4491_s1 + $0x68] sm:$0xf]  ;;  %v2540_v28 = vor.u32 %v2995_v22, %v2537_v25  ;;  %v2524_v36 = vor.u32 %v2993_v34, %v2523_v33  ;;  %v2994_v40 = vld [vmem:[%s4491_s1 + $0x58] sm:$0xf0]  ;;  %v2383_v22 = vld [vmem:[%s4494_s0 + $0x2c] sm:$0xf] }
 0x229   :  { %v785_v43 = vmul.f32 %v784_v38, %v766_v42  ;;  %v781_v52 = vsel %vm778_vm7, %v780_v51, %v776_v49  ;;  %v2544_v29 = vor.u32 %v2997_v27, %v2543_v26  ;;  %v2531_v38 = vld [vmem:[%s4491_s1 + $0x50] sm:$0xf]  ;;  %v997_v42 = vunpack.c.h.bf16 %v2382_v9  ;;  %v2990_v46 = vld [vmem:[%s4491_s1 + $0x38] sm:$0xf0]  ;;  %v2519_v51 = vld [vmem:[%s4491_s1 + $0x38] sm:$0xf] }
 0x22a   :  { %1228 = vmatpush.bf16.msrb.mxu1 %v2540_v28  ;;  %v2532_v44 = vor.u32 %v2994_v40, %v2531_v38  ;;  %v2489_v9 = vld [vmem:[%s4491_s1 + $0xc] sm:$0xf0] }
 0x22b   :  { %v786_v45 = vadd.f32 %v785_v43, %v783_v41  ;;  %1241 = vmatpush.bf16.msrb.mxu2 %v2544_v29  ;;  %v2528_v43 = vor.u32 %v2992_v35, %v2525_v37  ;;  %v2492_v10 = vor.u32 %v2983_v8, %v2489_v9  ;;  %v2656_v8 = vld [vmem:[%s4491_s1 + $0x80] sm:$0xf] }
 0x22d   :  { %3108 = vtanh.f32 %v786_v45  ;;  %v2511_v45 = vld [vmem:[%s4491_s1 + $0x30] sm:$0xf] }
 0x22e   :  { %1229 = vmatpush.bf16.msrb.mxu1 %v2528_v43  ;;  %v2512_v49 = vor.u32 %v2990_v46, %v2511_v45 }
 0x22f   :  { %1242 = vmatpush.bf16.msrb.mxu2 %v2532_v44 }
 0x233   :  { %v3109_v50 = vpop.eup %3108 }
 0x234   :  { %v788_v23 = vsub.f32 %v3661_v59, %v3109_v50  ;;  %v3005_v59 = vld [vmem:[%s4491_s1 + $0xb0] sm:$0xf0] }
 0x235   :  { %v2572_v57 = vor.u32 %v3005_v59, %v2571_v56 }
 0x236   :  { %v789_v53 = vmul.f32 %v788_v23, %v781_v52  ;;  %v2991_v23 = vld [vmem:[%s4491_s1 + $0x40] sm:$0xf0] }
 0x237   :  { %1212 = vmatpush.bf16.msrb.mxu0 %v2572_v57  ;;  %v2520_v56 = vor.u32 %v2991_v23, %v2519_v51  ;;  %v2499_v57 = vld [vmem:[%s4491_s1 + $0x18] sm:$0xf]  ;;  %v3028_v51 = vld [vmem:[%s4491_s1 + $0xac] sm:$0xf] }
 0x238   :  { %v3823_v54 = vadd.f32 %v3109_v50, %v789_v53  ;;  %v2513_v50 = vld [vmem:[%s4491_s1 + $0x3c] sm:$0xf0]  ;;  %v2500_v60 = vor.u32 %v2987_v58, %v2499_v57  ;;  %v3026_v57 = vld [vmem:[%s4491_s1 + $0x98] sm:$0xf0]  ;;  %v3025_v58 = vld [vmem:[%s4491_s1 + $0x94] sm:$0xf] }
 0x239   :  { %1243 = vmatpush.bf16.msrb.mxu2 %v2520_v56 }
 0x23a   :  { %v791_v55 = vpack.c.bf16 %v3823_v54, %v3823_v54 }
 0x23b   :  { %1213 = vmatpush.bf16.msrb.mxu0 %v2560_v4  ;;  %v2487_v4 = vld [vmem:[%s4491_s1] sm:$0xf] }
 0x23c   :  { %2381 = vst [vmem:[%s4495_s4 + $0x8] sm:$0xf] %v791_v55  ;;  %965 = vmatmul.bf16.vlgmr.msra.gmra.mxu1 %v791_v55  ;;  %978 = vmatmul.bf16.vlgmr.msra.gmra.mxu2 %v791_v55  ;;  %v2488_v7 = vor.u32 %v2984_v3, %v2487_v4  ;;  %v3023_v4 = vld [vmem:[%s4491_s1 + $0x80] sm:$0xf0]  ;;  %v3022_v3 = vld [vmem:[%s4491_s1 + $0x7c] sm:$0xf] }
 0x23d   :  { %991 = vmatmul.bf16.vlgmr.msra.gmra.mxu3 %v791_v55  ;;  %v2516_v55 = vor.u32 %v2989_v47, %v2513_v50  ;;  %1244 = vmatpush.bf16.msrb.mxu2 %v2508_v6  ;;  %v2672_v50 = vld [vmem:[%s4491_s1 + $0xa8] sm:$0xf]  ;;  %v2649_v6 = vor.u32 %v3023_v4, %v2648_v2  ;;  %v2590_v4 = vld [vmem:[%s4491_s1 + $0xc] sm:$0xf0] }
 0x23f   :  { %1214 = vmatpush.bf16.msrb.mxu0 %v2548_v13  ;;  %1230 = vmatpush.bf16.msrb.mxu1 %v2516_v55  ;;  %v3030_v55 = vld [vmem:[%s4491_s1 + $0xb8] sm:$0xf0] }
 0x241   :  { %1245 = vmatpush.bf16.msrb.mxu2 %v2496_v15  ;;  %v3020_v15 = vld [vmem:[%s4491_s1 + $0x68] sm:$0xf0] }
 0x243   :  { %1215 = vmatpush.bf16.msrb.mxu0 %v2536_v24  ;;  %1231 = vmatpush.bf16.msrb.mxu1 %v2504_v0  ;;  %v2669_v0 = vor.u32 %v3027_v62, %v2668_v1  ;;  %v3008_v1 = vld [vmem:[%s4491_s1 + $0x8] sm:$0xf0]  ;;  %v3007_v62 = vld [vmem:[%s4491_s1 + $0x4] sm:$0xf] }
 0x247   :  { %1216 = vmatpush.bf16.msrb.mxu0 %v2524_v36  ;;  %1232 = vmatpush.bf16.msrb.mxu1 %v2492_v10  ;;  %v3024_v10 = vld [vmem:[%s4491_s1 + $0x88] sm:$0xf0] }
 0x248   :  { %v2657_v11 = vor.u32 %v3024_v10, %v2656_v8 }
 0x24b   :  { %1217 = vmatpush.bf16.msrb.mxu0 %v2512_v49 }
 0x24f   :  { %1218 = vmatpush.bf16.msrb.mxu0 %v2500_v60 }
 0x253   :  { %1219 = vmatpush.bf16.msrb.mxu0 %v2488_v7  ;;  %v2650_v7 = vld [vmem:[%s4491_s1 + $0x84] sm:$0xf0] }
 0x254   :  { %v2653_v9 = vor.u32 %v3022_v3, %v2650_v7  ;;  %v2596_v3 = vld [vmem:[%s4491_s1 + $0x8] sm:$0xf]  ;;  %v3009_v7 = vld [vmem:[%s4491_s1 + $0x10] sm:$0xf0] }
 0x2b9   :  { %v966_v30 = vpop.f32.mrf.mxu1 }
 0x2ba   :  { %v998_v31 = vadd.f32 %v996_v19, %v966_v30  ;;  %v1038_v30 = vunpack.c.l.bf16 %v2383_v22 }
 0x2bc   :  { %v2480_v41 = vmul.f32 -1.442695, %v998_v31 }
 0x2be   :  { %3110 = vpow2.f32 %v2480_v41 }
 0x2bf   :  { %v979_v48 = vpop.f32.mrf.mxu2 }
 0x2c0   :  { %v999_v52 = vadd.f32 %v997_v42, %v979_v48  ;;  %v992_v53 = vpop.f32.mrf.mxu3 }
 0x2c1   :  { %v968_v59 = vpop.f32.mrf.mxu1  ;;  %v1039_v34 = vadd.f32 %v3492_v39, %v992_v53  ;;  %v2680_v53 = vld [vmem:[%s4491_s1 + $0xb0] sm:$0xf] }
 0x2c2   :  { %v2481_v32 = vmul.f32 -1.442695, %v999_v52  ;;  %v2674_v52 = vld [vmem:[%s4491_s1 + $0xb4] sm:$0xf0]  ;;  %v2681_v59 = vor.u32 %v3030_v55, %v2680_v53  ;;  %v3010_v53 = vld [vmem:[%s4491_s1 + $0x1c] sm:$0xf] }
 0x2c3   :  { %v2677_v56 = vor.u32 %v3028_v51, %v2674_v52  ;;  %v3011_v52 = vld [vmem:[%s4491_s1 + $0x20] sm:$0xf0] }
 0x2c4   :  { %v3111_v63 = vpop.eup %3110  ;;  %3112 = vpow2.f32 %v2481_v32  ;;  %1493 = vmatpush.bf16.msra.mxu1 %v2681_v59  ;;  %v2660_v32 = vld [vmem:[%s4491_s1 + $0x90] sm:$0xf]  ;;  %v2608_v59 = vld [vmem:[%s4491_s1 + $0x20] sm:$0xf] }
 0x2c5   :  { %v1006_v5 = vadd.f32 1.0, %v3111_v63  ;;  %1480 = vmatpush.bf16.msra.mxu0 %v2677_v56  ;;  %v2661_v60 = vor.u32 %v3026_v57, %v2660_v32  ;;  %v2665_v63 = vor.u32 %v3025_v58, %v2662_v61  ;;  %v2602_v56 = vld [vmem:[%s4491_s1 + $0x24] sm:$0xf0]  ;;  %v3012_v32 = vld [vmem:[%s4491_s1 + $0x28] sm:$0xf0] }
 0x2c6   :  { %v2605_v58 = vor.u32 %v3010_v53, %v2602_v56  ;;  %v2588_v61 = vld [vmem:[%s4491_s1] sm:$0xf]  ;;  %v3049_v53 = vld [vmem:[%s4491_s1 + $0x94] sm:$0xf] }
 0x2c7   :  { %3114 = vrcp.f32 %v1006_v5  ;;  %v981_v13 = vpop.f32.mrf.mxu2  ;;  %v1019_v21 = vand.u32 2147483648, %v1006_v5  ;;  %v1017_v25 = vand.u32 2147483647, %v1006_v5  ;;  %vm1013_vm9 = vweird.f32 %v1006_v5 }
 0x2c8   :  { %v994_v14 = vpop.f32.mrf.mxu3  ;;  %1494 = vmatpush.bf16.msra.mxu1 %v2669_v0  ;;  %v2589_v2 = vor.u32 %v3008_v1, %v2588_v61  ;;  %v2749_v1 = vld [vmem:[%s4491_s1 + $0x78] sm:$0xf] }
 0x2c9   :  { %v1020_v29 = vor.u32 1.1754944e-38, %v1019_v21  ;;  %vm1018_vm11 = vcmp.eq.f32.partialorder %v1017_v25, 8.507059e+37  ;;  %1481 = vmatpush.bf16.msra.mxu0 %v2665_v63  ;;  %v2636_v14 = vld [vmem:[%s4491_s1 + $0x60] sm:$0xf] }
 0x2ca   :  { %v3113_v16 = vpop.eup %3112 }
 0x2cb   :  { %v1007_v17 = vadd.f32 1.0, %v3113_v16  ;;  %v3019_v16 = vld [vmem:[%s4491_s1 + $0x64] sm:$0xf] }
 0x2cc   :  { %1495 = vmatpush.bf16.msra.mxu1 %v2657_v11 }
 0x2cd   :  { %v3115_v18 = vpop.eup %3114  ;;  %3116 = vrcp.f32 %v1007_v17  ;;  %v1034_v41 = vand.u32 2147483648, %v1007_v17  ;;  %vm1028_vm13 = vweird.f32 %v1007_v17  ;;  %v1032_v42 = vand.u32 2147483647, %v1007_v17  ;;  %1482 = vmatpush.bf16.msra.mxu0 %v2653_v9 }
 0x2ce   :  { %v1009_v19 = vmul.f32 %v3115_v18, %v1006_v5  ;;  %vm1014_vm8 = vweird.f32 %v3115_v18  ;;  %v2483_v5 = vld [vmem:[%s4494_s0 + $0x30] sm:$0xff]  ;;  %v2597_v9 = vor.u32 %v3009_v7, %v2596_v3  ;;  %v2751_v3 = vld [vmem:[%s4491_s1 + $0x84] sm:$0xf0] }
 0x2cf   :  { %vm1015_vm10 = vmor %vm1013_vm9, %vm1014_vm8  ;;  %v1035_v45 = vor.u32 1.1754944e-38, %v1034_v41  ;;  %vm1033_vm15 = vcmp.eq.f32.partialorder %v1032_v42, 8.507059e+37  ;;  %v1251_v12 = vunpack.c.l.bf16 %v2483_v5  ;;  %v1252_v13 = vunpack.c.h.bf16 %v2483_v5  ;;  %v2612_v41 = vld [vmem:[%s4491_s1 + $0x30] sm:$0xf]  ;;  %v3014_v42 = vld [vmem:[%s4491_s1 + $0x38] sm:$0xf0] }
 0x2d0   :  { %v1010_v20 = vsub.f32 1.0, %v1009_v19  ;;  %v2644_v19 = vld [vmem:[%s4491_s1 + $0x68] sm:$0xf] }
 0x2d2   :  { %v1011_v24 = vmul.f32 %v3115_v18, %v1010_v20  ;;  %v3021_v20 = vld [vmem:[%s4491_s1 + $0x70] sm:$0xf0] }
 0x2d3   :  { %v3117_v26 = vpop.eup %3116  ;;  %v2645_v22 = vor.u32 %v3021_v20, %v2644_v19 }
 0x2d4   :  { %v1024_v27 = vmul.f32 %v3117_v26, %v1007_v17  ;;  %v1012_v28 = vadd.f32 %v3115_v18, %v1011_v24  ;;  %vm1029_vm12 = vweird.f32 %v3117_v26  ;;  %v2637_v17 = vor.u32 %v3020_v15, %v2636_v14 }
 0x2d5   :  { %vm1030_vm14 = vmor %vm1028_vm13, %vm1029_vm12  ;;  %1496 = vmatpush.bf16.msra.mxu1 %v2645_v22 }
 0x2d6   :  { %v1025_v31 = vsub.f32 1.0, %v1024_v27  ;;  %v1016_v33 = vsel %vm1015_vm10, %v3115_v18, %v1012_v28  ;;  %v2638_v18 = vld [vmem:[%s4491_s1 + $0x6c] sm:$0xf0]  ;;  %v2624_v28 = vld [vmem:[%s4491_s1 + $0x48] sm:$0xf] }
 0x2d7   :  { %v1021_v35 = vsel %vm1018_vm11, %v1020_v29, %v1016_v33  ;;  %v2641_v21 = vor.u32 %v3019_v16, %v2638_v18  ;;  %v3017_v29 = vld [vmem:[%s4491_s1 + $0x50] sm:$0xf0]  ;;  %v2626_v33 = vld [vmem:[%s4491_s1 + $0x54] sm:$0xf0] }
 0x2d8   :  { %v1040_v36 = vmul.f32 %v1039_v34, %v1021_v35  ;;  %v1026_v37 = vmul.f32 %v3117_v26, %v1025_v31  ;;  %v2625_v31 = vor.u32 %v3017_v29, %v2624_v28  ;;  %v2632_v34 = vld [vmem:[%s4491_s1 + $0x50] sm:$0xf]  ;;  %v3018_v35 = vld [vmem:[%s4491_s1 + $0x58] sm:$0xf0]  ;;  %v2484_v18 = vld [vmem:[%s4494_s0 + $0x38] sm:$0xf] }
 0x2d9   :  { %1483 = vmatpush.bf16.msra.mxu0 %v2641_v21 }
 0x2da   :  { %v1041_v38 = vadd.f32 %v1040_v36, %v1038_v30  ;;  %v1027_v40 = vadd.f32 %v3117_v26, %v1026_v37  ;;  %v3016_v30 = vld [vmem:[%s4491_s1 + $0x4c] sm:$0xf] }
 0x2dc   :  { %3118 = vtanh.f32 %v1041_v38  ;;  %v1031_v43 = vsel %vm1030_vm14, %v3117_v26, %v1027_v40  ;;  %v2629_v38 = vor.u32 %v3016_v30, %v2626_v33  ;;  %v2633_v40 = vor.u32 %v3018_v35, %v2632_v34 }
 0x2dd   :  { %v1036_v47 = vsel %vm1033_vm15, %v1035_v45, %v1031_v43  ;;  %v3013_v43 = vld [vmem:[%s4491_s1 + $0x34] sm:$0xf]  ;;  %v2614_v45 = vld [vmem:[%s4491_s1 + $0x3c] sm:$0xf0] }
 0x2de   :  { %1484 = vmatpush.bf16.msra.mxu0 %v2629_v38  ;;  %1497 = vmatpush.bf16.msra.mxu1 %v2633_v40 }
 0x2e2   :  { %v3119_v44 = vpop.eup %3118 }
 0x2e3   :  { %v1043_v46 = vsub.f32 %v3823_v54, %v3119_v44  ;;  %v3029_v54 = vld [vmem:[%s4491_s1 + $0xb0] sm:$0xf0] }
 0x2e4   :  { %v2673_v23 = vor.u32 %v3029_v54, %v2672_v50 }
 0x2e5   :  { %v1044_v48 = vmul.f32 %v1043_v46, %v1036_v47  ;;  %v2620_v46 = vld [vmem:[%s4491_s1 + $0x38] sm:$0xf]  ;;  %v3015_v47 = vld [vmem:[%s4491_s1 + $0x40] sm:$0xf0] }
 0x2e6   :  { %1467 = vmatpush.bf16.msrb.mxu3 %v2673_v23  ;;  %v2621_v50 = vor.u32 %v3015_v47, %v2620_v46  ;;  %v2600_v23 = vld [vmem:[%s4491_s1 + $0x18] sm:$0xf] }
 0x2e7   :  { %v3982_v39 = vadd.f32 %v3119_v44, %v1044_v48  ;;  %v2613_v44 = vor.u32 %v3014_v42, %v2612_v41  ;;  %v2601_v55 = vor.u32 %v3011_v52, %v2600_v23  ;;  %v2775_v47 = vld [vmem:[%s4491_s1 + $0xb4] sm:$0xf0]  ;;  %v2761_v23 = vld [vmem:[%s4491_s1 + $0x90] sm:$0xf]  ;;  %v3050_v52 = vld [vmem:[%s4491_s1 + $0x98] sm:$0xf0] }
 0x2e8   :  { %1498 = vmatpush.bf16.msra.mxu1 %v2621_v50  ;;  %v2584_v50 = vld [vmem:[%s4494_s0 + $0x3c] sm:$0xff]  ;;  %v2762_v56 = vor.u32 %v3050_v52, %v2761_v23  ;;  %v3036_v23 = vld [vmem:[%s4491_s1 + $0x28] sm:$0xf0] }
 0x2e9   :  { %v1046_v49 = vpack.c.bf16 %v3982_v39, %v3982_v39 }
 0x2ea   :  { %1468 = vmatpush.bf16.msrb.mxu3 %v2661_v60  ;;  %v2609_v60 = vor.u32 %v3012_v32, %v2608_v59  ;;  %v2763_v59 = vld [vmem:[%s4491_s1 + $0x9c] sm:$0xf0]  ;;  %v2769_v32 = vld [vmem:[%s4491_s1 + $0x98] sm:$0xf] }
 0x2eb   :  { %2482 = vst [vmem:[%s4495_s4 + $0xc] sm:$0xf] %v1046_v49  ;;  %1220 = vmatmul.bf16.vlgmr.msrb.gmra.mxu0 %v1046_v49  ;;  %1233 = vmatmul.bf16.vlgmr.msrb.gmra.mxu1 %v1046_v49 }
 0x2ec   :  { %1246 = vmatmul.bf16.vlgmr.msrb.gmra.mxu2 %v1046_v49  ;;  %v2617_v49 = vor.u32 %v3013_v43, %v2614_v45  ;;  %1499 = vmatpush.bf16.msra.mxu1 %v2609_v60  ;;  %v3052_v45 = vld [vmem:[%s4491_s1 + $0xac] sm:$0xf] }
 0x2ee   :  { %1469 = vmatpush.bf16.msrb.mxu3 %v2649_v6  ;;  %1485 = vmatpush.bf16.msra.mxu0 %v2617_v49  ;;  %v2593_v6 = vor.u32 %v3007_v62, %v2590_v4  ;;  %v3054_v49 = vld [vmem:[%s4491_s1 + $0xb8] sm:$0xf0]  ;;  %v3047_v62 = vld [vmem:[%s4491_s1 + $0x80] sm:$0xf0] }
 0x2ef   :  { %v2750_v4 = vor.u32 %v3047_v62, %v2749_v1  ;;  %v2697_v1 = vld [vmem:[%s4491_s1 + $0x8] sm:$0xf]  ;;  %v3033_v62 = vld [vmem:[%s4491_s1 + $0x10] sm:$0xf0] }
 0x2f0   :  { %1500 = vmatpush.bf16.msra.mxu1 %v2597_v9 }
 0x2f2   :  { %1470 = vmatpush.bf16.msrb.mxu3 %v2637_v17  ;;  %1486 = vmatpush.bf16.msra.mxu0 %v2605_v58  ;;  %v2766_v58 = vor.u32 %v3049_v53, %v2763_v59 }
 0x2f6   :  { %1471 = vmatpush.bf16.msrb.mxu3 %v2625_v31  ;;  %1487 = vmatpush.bf16.msra.mxu0 %v2593_v6  ;;  %v3048_v6 = vld [vmem:[%s4491_s1 + $0x88] sm:$0xf0] }
 0x2fa   :  { %1472 = vmatpush.bf16.msrb.mxu3 %v2613_v44  ;;  %v2773_v44 = vld [vmem:[%s4491_s1 + $0xa8] sm:$0xf] }
 0x2fe   :  { %1473 = vmatpush.bf16.msrb.mxu3 %v2601_v55  ;;  %v1507_v55 = vunpack.c.h.bf16 %v2584_v50 }
 0x302   :  { %1474 = vmatpush.bf16.msrb.mxu3 %v2589_v2 }
 0x368   :  { %v1221_v24 = vpop.f32.mrf.mxu0  ;;  %v1234_v25 = vpop.f32.mrf.mxu1 }
 0x369   :  { %v1253_v26 = vadd.f32 %v1251_v12, %v1221_v24  ;;  %v1254_v27 = vadd.f32 %v1252_v13, %v1234_v25  ;;  %v1293_v24 = vunpack.c.l.bf16 %v2484_v18  ;;  %v4142_v25 = vld [vmem:[%s4493_s2] ss:$0 sm:$0xff] }
 0x36b   :  { %v2581_v36 = vmul.f32 -1.442695, %v1253_v26  ;;  %v2582_v37 = vmul.f32 -1.442695, %v1254_v27 }
 0x36d   :  { %3120 = vpow2.f32 %v2581_v36 }
 0x36e   :  { %3122 = vpow2.f32 %v2582_v37 }
 0x36f   :  { %v1247_v48 = vpop.f32.mrf.mxu2 }
 0x370   :  { %v1223_v54 = vpop.f32.mrf.mxu0  ;;  %v1236_v51 = vpop.f32.mrf.mxu1  ;;  %v1294_v26 = vadd.f32 %v4142_v25, %v1247_v48  ;;  %v2781_v48 = vld [vmem:[%s4491_s1 + $0xb0] sm:$0xf] }
 0x371   :  { %v2778_v54 = vor.u32 %v3052_v45, %v2775_v47  ;;  %v2782_v51 = vor.u32 %v3054_v49, %v2781_v48  ;;  %v2701_v48 = vld [vmem:[%s4491_s1 + $0x18] sm:$0xf]  ;;  %v3035_v49 = vld [vmem:[%s4491_s1 + $0x20] sm:$0xf0] }
 0x373   :  { %v3121_v57 = vpop.eup %3120  ;;  %1735 = vmatpush.bf16.msra.mxu3 %v2778_v54  ;;  %1748 = vmatpush.bf16.msrb.mxu0 %v2782_v51  ;;  %v2703_v54 = vld [vmem:[%s4491_s1 + $0x24] sm:$0xf0]  ;;  %v2709_v51 = vld [vmem:[%s4491_s1 + $0x20] sm:$0xf] }
 0x374   :  { %v3123_v63 = vpop.eup %3122  ;;  %v1261_v0 = vadd.f32 1.0, %v3121_v57  ;;  %v3051_v57 = vld [vmem:[%s4491_s1 + $0xa0] sm:$0xf0]  ;;  %v2710_v59 = vor.u32 %v3036_v23, %v2709_v51 }
 0x375   :  { %v1262_v5 = vadd.f32 1.0, %v3123_v63  ;;  %v2770_v60 = vor.u32 %v3051_v57, %v2769_v32  ;;  %v3046_v63 = vld [vmem:[%s4491_s1 + $0x7c] sm:$0xf]  ;;  %v2689_v32 = vld [vmem:[%s4491_s1] sm:$0xf] }
 0x376   :  { %3124 = vrcp.f32 %v1261_v0  ;;  %v1274_v15 = vand.u32 2147483648, %v1261_v0  ;;  %v1272_v17 = vand.u32 2147483647, %v1261_v0  ;;  %vm1268_vm1 = vweird.f32 %v1261_v0  ;;  %v3032_v57 = vld [vmem:[%s4491_s1 + $0x8] sm:$0xf0] }
 0x377   :  { %3126 = vrcp.f32 %v1262_v5  ;;  %v1249_v8 = vpop.f32.mrf.mxu2  ;;  %v1289_v33 = vand.u32 2147483648, %v1262_v5  ;;  %vm1283_vm5 = vweird.f32 %v1262_v5  ;;  %v1287_v34 = vand.u32 2147483647, %v1262_v5  ;;  %1736 = vmatpush.bf16.msra.mxu3 %v2766_v58  ;;  %1749 = vmatpush.bf16.msrb.mxu0 %v2770_v60  ;;  %v3031_v58 = vld [vmem:[%s4491_s1 + $0x4] sm:$0xf] }
 0x378   :  { %v1275_v21 = vor.u32 1.1754944e-38, %v1274_v15  ;;  %vm1273_vm3 = vcmp.eq.f32.partialorder %v1272_v17, 8.507059e+37  ;;  %v2754_v7 = vor.u32 %v3046_v63, %v2751_v3  ;;  %v2739_v15 = vld [vmem:[%s4491_s1 + $0x6c] sm:$0xf0]  ;;  %v3045_v17 = vld [vmem:[%s4491_s1 + $0x70] sm:$0xf0]  ;;  %v2698_v3 = vor.u32 %v3033_v62, %v2697_v1 }
 0x379   :  { %v1290_v37 = vor.u32 1.1754944e-38, %v1289_v33  ;;  %vm1288_vm7 = vcmp.eq.f32.partialorder %v1287_v34, 8.507059e+37  ;;  %v3075_v51 = vld [vmem:[%s4491_s1 + $0xa0] sm:$0xf0] }
 0x37b   :  { %1737 = vmatpush.bf16.msra.mxu3 %v2754_v7 }
 0x37c   :  { %v3125_v10 = vpop.eup %3124 }
 0x37d   :  { %v3127_v11 = vpop.eup %3126  ;;  %v1264_v12 = vmul.f32 %v3125_v10, %v1261_v0  ;;  %vm1269_vm0 = vweird.f32 %v3125_v10 }
 0x37e   :  { %v1279_v14 = vmul.f32 %v3127_v11, %v1262_v5  ;;  %vm1270_vm2 = vmor %vm1268_vm1, %vm1269_vm0  ;;  %vm1284_vm4 = vweird.f32 %v3127_v11  ;;  %v2757_v5 = vld [vmem:[%s4491_s1 + $0x80] sm:$0xf] }
 0x37f   :  { %v1265_v13 = vsub.f32 1.0, %v1264_v12  ;;  %vm1285_vm6 = vmor %vm1283_vm5, %vm1284_vm4  ;;  %v2758_v8 = vor.u32 %v3048_v6, %v2757_v5  ;;  %v3044_v12 = vld [vmem:[%s4491_s1 + $0x68] sm:$0xf0] }
 0x380   :  { %v1280_v20 = vsub.f32 1.0, %v1279_v14 }
 0x381   :  { %v1266_v16 = vmul.f32 %v3125_v10, %v1265_v13  ;;  %1750 = vmatpush.bf16.msrb.mxu0 %v2758_v8  ;;  %v3043_v13 = vld [vmem:[%s4491_s1 + $0x64] sm:$0xf] }
 0x382   :  { %v1281_v29 = vmul.f32 %v3127_v11, %v1280_v20 }
 0x383   :  { %v1267_v19 = vadd.f32 %v3125_v10, %v1266_v16  ;;  %v2745_v16 = vld [vmem:[%s4491_s1 + $0x68] sm:$0xf] }
 0x384   :  { %v1282_v31 = vadd.f32 %v3127_v11, %v1281_v29  ;;  %v2746_v20 = vor.u32 %v3045_v17, %v2745_v16  ;;  %v2733_v29 = vld [vmem:[%s4491_s1 + $0x50] sm:$0xf] }
 0x385   :  { %v1271_v22 = vsel %vm1270_vm2, %v3125_v10, %v1267_v19  ;;  %v1506_v10 = vunpack.c.l.bf16 %v2584_v50  ;;  %v2742_v19 = vor.u32 %v3043_v13, %v2739_v15  ;;  %v3034_v50 = vld [vmem:[%s4491_s1 + $0x1c] sm:$0xf]  ;;  %v2585_v13 = vld [vmem:[%s4494_s0 + $0x44] sm:$0xf] }
 0x386   :  { %v1276_v27 = vsel %vm1273_vm3, %v1275_v21, %v1271_v22  ;;  %v1286_v35 = vsel %vm1285_vm6, %v3127_v11, %v1282_v31  ;;  %v2737_v11 = vld [vmem:[%s4491_s1 + $0x60] sm:$0xf]  ;;  %v2725_v21 = vld [vmem:[%s4491_s1 + $0x48] sm:$0xf]  ;;  %v3041_v22 = vld [vmem:[%s4491_s1 + $0x50] sm:$0xf0]  ;;  %1751 = vmatpush.bf16.msrb.mxu0 %v2746_v20 }
 0x387   :  { %v1295_v28 = vmul.f32 %v1294_v26, %v1276_v27  ;;  %v1291_v40 = vsel %vm1288_vm7, %v1290_v37, %v1286_v35  ;;  %v2738_v14 = vor.u32 %v3044_v12, %v2737_v11  ;;  %v2726_v27 = vor.u32 %v3041_v22, %v2725_v21  ;;  %1738 = vmatpush.bf16.msra.mxu3 %v2742_v19  ;;  %v2713_v35 = vld [vmem:[%s4491_s1 + $0x30] sm:$0xf]  ;;  %v3037_v37 = vld [vmem:[%s4491_s1 + $0x34] sm:$0xf] }
 0x388   :  { %v1548_v19 = vunpack.c.l.bf16 %v2585_v13 }
 0x389   :  { %v1296_v30 = vadd.f32 %v1295_v28, %v1293_v24  ;;  %v3040_v24 = vld [vmem:[%s4491_s1 + $0x4c] sm:$0xf]  ;;  %v2727_v28 = vld [vmem:[%s4491_s1 + $0x54] sm:$0xf0] }
 0x38a   :  { %v2730_v33 = vor.u32 %v3040_v24, %v2727_v28 }
 0x38b   :  { %3128 = vtanh.f32 %v1296_v30  ;;  %v3042_v30 = vld [vmem:[%s4491_s1 + $0x58] sm:$0xf0] }
 0x38c   :  { %v2734_v34 = vor.u32 %v3042_v30, %v2733_v29  ;;  %1739 = vmatpush.bf16.msra.mxu3 %v2730_v33 }
 0x38e   :  { %1752 = vmatpush.bf16.msrb.mxu0 %v2734_v34 }
 0x391   :  { %v3129_v36 = vpop.eup %3128 }
 0x392   :  { %v1298_v38 = vsub.f32 %v3982_v39, %v3129_v36  ;;  %v3053_v39 = vld [vmem:[%s4491_s1 + $0xb0] sm:$0xf0] }
 0x393   :  { %v2774_v46 = vor.u32 %v3053_v39, %v2773_v44  ;;  %v3039_v44 = vld [vmem:[%s4491_s1 + $0x40] sm:$0xf0] }
 0x394   :  { %v1299_v41 = vmul.f32 %v1298_v38, %v1291_v40 }
 0x395   :  { %1722 = vmatpush.bf16.msra.mxu2 %v2774_v46 }
 0x396   :  { %v4146_v42 = vadd.f32 %v3129_v36, %v1299_v41  ;;  %v3038_v36 = vld [vmem:[%s4491_s1 + $0x38] sm:$0xf0]  ;;  %v2715_v41 = vld [vmem:[%s4491_s1 + $0x3c] sm:$0xf0] }
 0x397   :  { %v2714_v39 = vor.u32 %v3038_v36, %v2713_v35  ;;  %v2718_v46 = vor.u32 %v3037_v37, %v2715_v41  ;;  %v2874_v37 = vld [vmem:[%s4491_s1 + $0xa8] sm:$0xf]  ;;  %v2876_v41 = vld [vmem:[%s4491_s1 + $0xb4] sm:$0xf0] }
 0x398   :  { %v1301_v43 = vpack.c.bf16 %v4146_v42, %v4146_v42 }
 0x399   :  { %1723 = vmatpush.bf16.msra.mxu2 %v2762_v56  ;;  %1740 = vmatpush.bf16.msra.mxu3 %v2718_v46  ;;  %v2706_v56 = vor.u32 %v3034_v50, %v2703_v54  ;;  %v2862_v46 = vld [vmem:[%s4491_s1 + $0x90] sm:$0xf]  ;;  %v2864_v50 = vld [vmem:[%s4491_s1 + $0x9c] sm:$0xf0]  ;;  %v2870_v54 = vld [vmem:[%s4491_s1 + $0x98] sm:$0xf] }
 0x39a   :  { %2583 = vst [vmem:[%s4495_s4 + $0x10] sm:$0xf] %v1301_v43  ;;  %1475 = vmatmul.bf16.vlgmr.msrb.gmra.mxu3 %v1301_v43  ;;  %1488 = vmatmul.bf16.vlgmr.msra.gmra.mxu0 %v1301_v43 }
 0x39b   :  { %1501 = vmatmul.bf16.vlgmr.msra.gmra.mxu1 %v1301_v43  ;;  %v2721_v43 = vld [vmem:[%s4491_s1 + $0x38] sm:$0xf] }
 0x39c   :  { %v2722_v47 = vor.u32 %v3039_v44, %v2721_v43  ;;  %v2882_v43 = vld [vmem:[%s4491_s1 + $0xb0] sm:$0xf]  ;;  %v3078_v44 = vld [vmem:[%s4491_s1 + $0xb8] sm:$0xf0] }
 0x39d   :  { %1724 = vmatpush.bf16.msra.mxu2 %v2750_v4  ;;  %1741 = vmatpush.bf16.msra.mxu3 %v2706_v56  ;;  %v3071_v56 = vld [vmem:[%s4491_s1 + $0x80] sm:$0xf0] }
 0x39e   :  { %1753 = vmatpush.bf16.msrb.mxu0 %v2722_v47  ;;  %v3074_v47 = vld [vmem:[%s4491_s1 + $0x98] sm:$0xf0] }
 0x3a1   :  { %1725 = vmatpush.bf16.msra.mxu2 %v2738_v14 }
 0x3a2   :  { %1754 = vmatpush.bf16.msrb.mxu0 %v2710_v59  ;;  %v3070_v59 = vld [vmem:[%s4491_s1 + $0x7c] sm:$0xf] }
 0x3a5   :  { %1726 = vmatpush.bf16.msra.mxu2 %v2726_v27 }
 0x3a6   :  { %1755 = vmatpush.bf16.msrb.mxu0 %v2698_v3  ;;  %v3068_v3 = vld [vmem:[%s4491_s1 + $0x68] sm:$0xf0] }
 0x3a9   :  { %1727 = vmatpush.bf16.msra.mxu2 %v2714_v39 }
 0x417   :  { %v1489_v61 = vpop.f32.mrf.mxu0 }
 0x418   :  { %v1509_v0 = vadd.f32 %v1507_v55, %v1489_v61  ;;  %v4201_v2 = vpop.f32.mrf.mxu1  ;;  %v2702_v55 = vor.u32 %v3035_v49, %v2701_v48  ;;  %v2691_v61 = vld [vmem:[%s4491_s1 + $0xc] sm:$0xf0]  ;;  %v3073_v48 = vld [vmem:[%s4491_s1 + $0x94] sm:$0xf]  ;;  %v2863_v49 = vor.u32 %v3074_v47, %v2862_v46 }
 0x419   :  { %v2694_v4 = vor.u32 %v3031_v58, %v2691_v61  ;;  %v1549_v17 = vadd.f32 %v4142_v25, %v4201_v2  ;;  %v2867_v23 = vor.u32 %v3073_v48, %v2864_v50  ;;  %v2852_v58 = vld [vmem:[%s4491_s1 + $0x84] sm:$0xf0]  ;;  %v3072_v61 = vld [vmem:[%s4491_s1 + $0x88] sm:$0xf0] }
 0x41a   :  { %v2683_v9 = vmul.f32 -1.442695, %v1509_v0  ;;  %1728 = vmatpush.bf16.msra.mxu2 %v2702_v55  ;;  %v2690_v0 = vor.u32 %v3032_v57, %v2689_v32  ;;  %v2850_v55 = vld [vmem:[%s4491_s1 + $0x78] sm:$0xf]  ;;  %v2855_v1 = vor.u32 %v3070_v59, %v2852_v58 }
 0x41b   :  { %1742 = vmatpush.bf16.msra.mxu3 %v2694_v4  ;;  %v2851_v57 = vor.u32 %v3071_v56, %v2850_v55  ;;  %v2838_v4 = vld [vmem:[%s4491_s1 + $0x60] sm:$0xf]  ;;  %v2798_v55 = vld [vmem:[%s4491_s1 + $0x8] sm:$0xf]  ;;  %v3057_v56 = vld [vmem:[%s4491_s1 + $0x10] sm:$0xf0] }
 0x41c   :  { %3130 = vpow2.f32 %v2683_v9 }
 0x41d   :  { %v1476_v18 = vpop.f32.mrf.mxu3 }
 0x41e   :  { %v1508_v26 = vadd.f32 %v1506_v10, %v1476_v18  ;;  %1729 = vmatpush.bf16.msra.mxu2 %v2690_v0 }
 0x41f   :  { %v1491_v31 = vpop.f32.mrf.mxu0 }
 0x420   :  { %v2682_v38 = vmul.f32 -1.442695, %v1508_v26  ;;  %v1504_v40 = vpop.f32.mrf.mxu1 }
 0x422   :  { %3132 = vpow2.f32 %v2682_v38  ;;  %v3131_v45 = vpop.eup %3130  ;;  %v3076_v38 = vld [vmem:[%s4491_s1 + $0xac] sm:$0xf] }
 0x423   :  { %v1517_v53 = vadd.f32 1.0, %v3131_v45  ;;  %v2879_v39 = vor.u32 %v3076_v38, %v2876_v41  ;;  %v2883_v45 = vor.u32 %v3078_v44, %v2882_v43  ;;  %v3059_v41 = vld [vmem:[%s4491_s1 + $0x20] sm:$0xf0]  ;;  %v3058_v43 = vld [vmem:[%s4491_s1 + $0x1c] sm:$0xf] }
 0x424   :  { %v2804_v44 = vld [vmem:[%s4491_s1 + $0x24] sm:$0xf0] }
 0x425   :  { %v1478_v52 = vpop.f32.mrf.mxu3  ;;  %v1544_v27 = vand.u32 2147483648, %v1517_v53  ;;  %vm1538_vm13 = vweird.f32 %v1517_v53  ;;  %v1542_v28 = vand.u32 2147483647, %v1517_v53  ;;  %1990 = vmatpush.bf16.msrb.mxu2 %v2879_v39  ;;  %2003 = vmatpush.bf16.msrb.mxu3 %v2883_v45  ;;  %v2810_v39 = vld [vmem:[%s4491_s1 + $0x20] sm:$0xf] }
 0x426   :  { %v2871_v52 = vor.u32 %v3075_v51, %v2870_v54  ;;  %v3060_v45 = vld [vmem:[%s4491_s1 + $0x28] sm:$0xf0]  ;;  %v2790_v54 = vld [vmem:[%s4491_s1] sm:$0xf] }
 0x427   :  { %v1545_v31 = vor.u32 1.1754944e-38, %v1544_v27  ;;  %vm1543_vm15 = vcmp.eq.f32.partialorder %v1542_v28, 8.507059e+37  ;;  %v2814_v27 = vld [vmem:[%s4491_s1 + $0x30] sm:$0xf]  ;;  %v3062_v28 = vld [vmem:[%s4491_s1 + $0x38] sm:$0xf0]  ;;  %v2811_v50 = vor.u32 %v3060_v45, %v2810_v39 }
 0x428   :  { %v3133_v60 = vpop.eup %3132  ;;  %v3056_v51 = vld [vmem:[%s4491_s1 + $0x8] sm:$0xf0] }
 0x429   :  { %v1516_v63 = vadd.f32 1.0, %v3133_v60  ;;  %1991 = vmatpush.bf16.msrb.mxu2 %v2867_v23  ;;  %2004 = vmatpush.bf16.msrb.mxu3 %v2871_v52  ;;  %v2858_v60 = vld [vmem:[%s4491_s1 + $0x80] sm:$0xf]  ;;  %v3055_v23 = vld [vmem:[%s4491_s1 + $0x4] sm:$0xf] }
 0x42a   :  { %v2859_v62 = vor.u32 %v3072_v61, %v2858_v60  ;;  %v2791_v60 = vor.u32 %v3056_v51, %v2790_v54  ;;  %v2787_v51 = vld [vmem:[%s4494_s0 + $0x5c] sm:$0xf] }
 0x42b   :  { %3134 = vrcp.f32 %v1516_v63  ;;  %v1529_v10 = vand.u32 2147483648, %v1516_v63  ;;  %v1527_v12 = vand.u32 2147483647, %v1516_v63  ;;  %vm1523_vm9 = vweird.f32 %v1516_v63 }
 0x42c   :  { %3136 = vrcp.f32 %v1517_v53 }
 0x42d   :  { %v1530_v16 = vor.u32 1.1754944e-38, %v1529_v10  ;;  %vm1528_vm11 = vcmp.eq.f32.partialorder %v1527_v12, 8.507059e+37  ;;  %1992 = vmatpush.bf16.msrb.mxu2 %v2855_v1  ;;  %2005 = vmatpush.bf16.msrb.mxu3 %v2859_v62  ;;  %v2799_v1 = vor.u32 %v3057_v56, %v2798_v55 }
 0x431   :  { %v3135_v5 = vpop.eup %3134 }
 0x432   :  { %v3137_v6 = vpop.eup %3136  ;;  %v1519_v7 = vmul.f32 %v3135_v5, %v1516_v63  ;;  %vm1524_vm8 = vweird.f32 %v3135_v5 }
 0x433   :  { %v1534_v9 = vmul.f32 %v3137_v6, %v1517_v53  ;;  %vm1525_vm10 = vmor %vm1523_vm9, %vm1524_vm8  ;;  %vm1539_vm12 = vweird.f32 %v3137_v6  ;;  %v2685_v53 = vld [vmem:[%s4494_s0 + $0x48] sm:$0xff] }
 0x434   :  { %v1520_v8 = vsub.f32 1.0, %v1519_v7  ;;  %vm1540_vm14 = vmor %vm1538_vm13, %vm1539_vm12  ;;  %v1761_v63 = vunpack.c.l.bf16 %v2685_v53  ;;  %v1762_v0 = vunpack.c.h.bf16 %v2685_v53  ;;  %v2840_v7 = vld [vmem:[%s4491_s1 + $0x6c] sm:$0xf0] }
 0x435   :  { %v1535_v15 = vsub.f32 1.0, %v1534_v9  ;;  %v3069_v9 = vld [vmem:[%s4491_s1 + $0x70] sm:$0xf0]  ;;  %v2792_v53 = vld [vmem:[%s4491_s1 + $0xc] sm:$0xf0] }
 0x436   :  { %v1521_v11 = vmul.f32 %v3135_v5, %v1520_v8  ;;  %v2846_v8 = vld [vmem:[%s4491_s1 + $0x68] sm:$0xf]  ;;  %v2795_v61 = vor.u32 %v3055_v23, %v2792_v53 }
 0x437   :  { %v1536_v22 = vmul.f32 %v3137_v6, %v1535_v15  ;;  %v2847_v13 = vor.u32 %v3069_v9, %v2846_v8  ;;  %v3065_v15 = vld [vmem:[%s4491_s1 + $0x50] sm:$0xf0]  ;;  %v2686_v8 = vld [vmem:[%s4494_s0 + $0x50] sm:$0xf] }
 0x438   :  { %v1522_v14 = vadd.f32 %v3135_v5, %v1521_v11 }
 0x439   :  { %v1537_v26 = vadd.f32 %v3137_v6, %v1536_v22  ;;  %v3066_v22 = vld [vmem:[%s4491_s1 + $0x58] sm:$0xf0]  ;;  %2006 = vmatpush.bf16.msrb.mxu3 %v2847_v13 }
 0x43a   :  { %v1526_v18 = vsel %vm1525_vm10, %v3135_v5, %v1522_v14  ;;  %v3067_v5 = vld [vmem:[%s4491_s1 + $0x64] sm:$0xf]  ;;  %v2826_v14 = vld [vmem:[%s4491_s1 + $0x48] sm:$0xf] }
 0x43b   :  { %v1531_v20 = vsel %vm1528_vm11, %v1530_v16, %v1526_v18  ;;  %v1541_v29 = vsel %vm1540_vm14, %v3137_v6, %v1537_v26  ;;  %v2839_v6 = vor.u32 %v3068_v3, %v2838_v4  ;;  %v2843_v12 = vor.u32 %v3067_v5, %v2840_v7  ;;  %v3064_v16 = vld [vmem:[%s4491_s1 + $0x4c] sm:$0xf] }
 0x43c   :  { %v1550_v21 = vmul.f32 %v1549_v17, %v1531_v20  ;;  %v1546_v33 = vsel %vm1543_vm15, %v1545_v31, %v1541_v29  ;;  %v2828_v20 = vld [vmem:[%s4491_s1 + $0x54] sm:$0xf0]  ;;  %v3061_v29 = vld [vmem:[%s4491_s1 + $0x34] sm:$0xf] }
 0x43d   :  { %1993 = vmatpush.bf16.msrb.mxu2 %v2843_v12 }
 0x43e   :  { %v1551_v24 = vadd.f32 %v1550_v21, %v1548_v19  ;;  %v2827_v19 = vor.u32 %v3065_v15, %v2826_v14  ;;  %v2834_v21 = vld [vmem:[%s4491_s1 + $0x50] sm:$0xf]  ;;  %v1803_v14 = vunpack.c.l.bf16 %v2686_v8 }
 0x43f   :  { %v2835_v26 = vor.u32 %v3066_v22, %v2834_v21 }
 0x440   :  { %3138 = vtanh.f32 %v1551_v24  ;;  %v2831_v24 = vor.u32 %v3064_v16, %v2828_v20 }
 0x441   :  { %2007 = vmatpush.bf16.msrb.mxu3 %v2835_v26 }
 0x442   :  { %1994 = vmatpush.bf16.msrb.mxu2 %v2831_v24 }
 0x446   :  { %v3139_v30 = vpop.eup %3138 }
 0x447   :  { %v1553_v2 = vsub.f32 %v4146_v42, %v3139_v30  ;;  %v3077_v42 = vld [vmem:[%s4491_s1 + $0xb0] sm:$0xf0] }
 0x448   :  { %v2875_v40 = vor.u32 %v3077_v42, %v2874_v37  ;;  %v2815_v37 = vor.u32 %v3062_v28, %v2814_v27 }
 0x449   :  { %v1554_v34 = vmul.f32 %v1553_v2, %v1546_v33  ;;  %v2816_v33 = vld [vmem:[%s4491_s1 + $0x3c] sm:$0xf0] }
 0x44a   :  { %1977 = vmatpush.bf16.msrb.mxu1 %v2875_v40  ;;  %v2819_v42 = vor.u32 %v3061_v29, %v2816_v33  ;;  %v2802_v40 = vld [vmem:[%s4491_s1 + $0x18] sm:$0xf] }
 0x44b   :  { %v4308_v35 = vadd.f32 %v3139_v30, %v1554_v34  ;;  %v2822_v34 = vld [vmem:[%s4491_s1 + $0x38] sm:$0xf]  ;;  %v2803_v48 = vor.u32 %v3059_v41, %v2802_v40 }
 0x44c   :  { %1995 = vmatpush.bf16.msrb.mxu2 %v2819_v42 }
 0x44d   :  { %v1556_v36 = vpack.c.bf16 %v4308_v35, %v4308_v35 }
 0x44e   :  { %1978 = vmatpush.bf16.msrb.mxu1 %v2863_v49  ;;  %v2807_v49 = vor.u32 %v3058_v43, %v2804_v44 }
 0x44f   :  { %2684 = vst [vmem:[%s4495_s4 + $0x14] sm:$0xf] %v1556_v36  ;;  %1730 = vmatmul.bf16.vlgmr.msra.gmra.mxu2 %v1556_v36  ;;  %1743 = vmatmul.bf16.vlgmr.msra.gmra.mxu3 %v1556_v36 }
 0x450   :  { %1756 = vmatmul.bf16.vlgmr.msrb.gmra.mxu0 %v1556_v36  ;;  %v3063_v36 = vld [vmem:[%s4491_s1 + $0x40] sm:$0xf0]  ;;  %1996 = vmatpush.bf16.msrb.mxu2 %v2807_v49 }
 0x451   :  { %v2823_v38 = vor.u32 %v3063_v36, %v2822_v34 }
 0x452   :  { %1979 = vmatpush.bf16.msrb.mxu1 %v2851_v57 }
 0x453   :  { %2008 = vmatpush.bf16.msrb.mxu3 %v2823_v38 }
 0x454   :  { %1997 = vmatpush.bf16.msrb.mxu2 %v2795_v61 }
 0x456   :  { %1980 = vmatpush.bf16.msrb.mxu1 %v2839_v6 }
 0x457   :  { %2009 = vmatpush.bf16.msrb.mxu3 %v2811_v50 }
 0x45a   :  { %1981 = vmatpush.bf16.msrb.mxu1 %v2827_v19 }
 0x45b   :  { %2010 = vmatpush.bf16.msrb.mxu3 %v2799_v1 }
 0x45e   :  { %1982 = vmatpush.bf16.msrb.mxu1 %v2815_v37 }
 0x462   :  { %1983 = vmatpush.bf16.msrb.mxu1 %v2803_v48 }
 0x466   :  { %1984 = vmatpush.bf16.msrb.mxu1 %v2791_v60 }
 0x4cd   :  { %v4363_v32 = vpop.f32.mrf.mxu0 }
 0x4ce   :  { %v1804_v12 = vadd.f32 %v4142_v25, %v4363_v32 }
 0x4d2   :  { %v1731_v10 = vpop.f32.mrf.mxu2  ;;  %v1744_v11 = vpop.f32.mrf.mxu3 }
 0x4d3   :  { %v1763_v17 = vadd.f32 %v1761_v63, %v1731_v10  ;;  %v1764_v18 = vadd.f32 %v1762_v0, %v1744_v11 }
 0x4d5   :  { %v2783_v30 = vmul.f32 -1.442695, %v1763_v17  ;;  %v2784_v31 = vmul.f32 -1.442695, %v1764_v18  ;;  %v1759_v2 = vpop.f32.mrf.mxu0 }
 0x4d7   :  { %3140 = vpow2.f32 %v2783_v30 }
 0x4d8   :  { %3142 = vpow2.f32 %v2784_v31  ;;  %v2786_v31 = vld [vmem:[%s4494_s0 + $0x54] sm:$0xff] }
 0x4d9   :  { %v2016_v2 = vunpack.c.l.bf16 %v2786_v31  ;;  %v2017_v36 = vunpack.c.h.bf16 %v2786_v31 }
 0x4da   :  { %v1733_v46 = vpop.f32.mrf.mxu2  ;;  %v1746_v47 = vpop.f32.mrf.mxu3 }
 0x4dd   :  { %v3141_v52 = vpop.eup %3140 }
 0x4de   :  { %v3143_v59 = vpop.eup %3142  ;;  %v1771_v57 = vadd.f32 1.0, %v3141_v52 }
 0x4df   :  { %v1772_v58 = vadd.f32 1.0, %v3143_v59 }
 0x4e0   :  { %3144 = vrcp.f32 %v1771_v57  ;;  %v1784_v3 = vand.u32 2147483648, %v1771_v57  ;;  %v1782_v7 = vand.u32 2147483647, %v1771_v57  ;;  %vm1778_vm1 = vweird.f32 %v1771_v57 }
 0x4e1   :  { %3146 = vrcp.f32 %v1772_v58  ;;  %v1799_v20 = vand.u32 2147483648, %v1772_v58  ;;  %vm1793_vm5 = vweird.f32 %v1772_v58  ;;  %v1797_v21 = vand.u32 2147483647, %v1772_v58 }
 0x4e2   :  { %v1785_v10 = vor.u32 1.1754944e-38, %v1784_v3  ;;  %vm1783_vm3 = vcmp.eq.f32.partialorder %v1782_v7, 8.507059e+37 }
 0x4e3   :  { %v1800_v26 = vor.u32 1.1754944e-38, %v1799_v20  ;;  %vm1798_vm7 = vcmp.eq.f32.partialorder %v1797_v21, 8.507059e+37 }
 0x4e6   :  { %v3145_v62 = vpop.eup %3144 }
 0x4e7   :  { %v3147_v63 = vpop.eup %3146  ;;  %v1774_v0 = vmul.f32 %v3145_v62, %v1771_v57  ;;  %vm1779_vm0 = vweird.f32 %v3145_v62  ;;  %v2058_v57 = vunpack.c.l.bf16 %v2787_v51 }
 0x4e8   :  { %v1789_v5 = vmul.f32 %v3147_v63, %v1772_v58  ;;  %vm1780_vm2 = vmor %vm1778_vm1, %vm1779_vm0  ;;  %vm1794_vm4 = vweird.f32 %v3147_v63 }
 0x4e9   :  { %v1775_v4 = vsub.f32 1.0, %v1774_v0  ;;  %vm1795_vm6 = vmor %vm1793_vm5, %vm1794_vm4 }
 0x4ea   :  { %v1790_v11 = vsub.f32 1.0, %v1789_v5 }
 0x4eb   :  { %v1776_v6 = vmul.f32 %v3145_v62, %v1775_v4 }
 0x4ec   :  { %v1791_v17 = vmul.f32 %v3147_v63, %v1790_v11 }
 0x4ed   :  { %v1777_v9 = vadd.f32 %v3145_v62, %v1776_v6 }
 0x4ee   :  { %v1792_v19 = vadd.f32 %v3147_v63, %v1791_v17 }
 0x4ef   :  { %v1781_v13 = vsel %vm1780_vm2, %v3145_v62, %v1777_v9 }
 0x4f0   :  { %v1786_v15 = vsel %vm1783_vm3, %v1785_v10, %v1781_v13  ;;  %v1796_v22 = vsel %vm1795_vm6, %v3147_v63, %v1792_v19 }
 0x4f1   :  { %v1805_v16 = vmul.f32 %v1804_v12, %v1786_v15  ;;  %v1801_v27 = vsel %vm1798_vm7, %v1800_v26, %v1796_v22 }
 0x4f3   :  { %v1806_v18 = vadd.f32 %v1805_v16, %v1803_v14 }
 0x4f5   :  { %3148 = vtanh.f32 %v1806_v18 }
 0x4fb   :  { %v3149_v24 = vpop.eup %3148 }
 0x4fc   :  { %v1808_v32 = vsub.f32 %v4308_v35, %v3149_v24 }
 0x4fe   :  { %v1809_v28 = vmul.f32 %v1808_v32, %v1801_v27 }
 0x500   :  { %v4470_v29 = vadd.f32 %v3149_v24, %v1809_v28 }
 0x502   :  { %v1811_v30 = vpack.c.bf16 %v4470_v29, %v4470_v29 }
 0x504   :  { %2785 = vst [vmem:[%s4495_s4 + $0x18] sm:$0xf] %v1811_v30  ;;  %1985 = vmatmul.bf16.vlgmr.msrb.gmra.mxu1 %v1811_v30  ;;  %1998 = vmatmul.bf16.vlgmr.msrb.gmra.mxu2 %v1811_v30 }
 0x505   :  { %2011 = vmatmul.bf16.vlgmr.msrb.gmra.mxu3 %v1811_v30 }
 0x581   :  { %v1986_v35 = vpop.f32.mrf.mxu1 }
 0x582   :  { %v2018_v33 = vadd.f32 %v2016_v2, %v1986_v35 }
 0x584   :  { %v2884_v34 = vmul.f32 -1.442695, %v2018_v33 }
 0x586   :  { %3150 = vpow2.f32 %v2884_v34 }
 0x587   :  { %v1999_v37 = vpop.f32.mrf.mxu2 }
 0x588   :  { %v2019_v42 = vadd.f32 %v2017_v36, %v1999_v37  ;;  %v2012_v38 = vpop.f32.mrf.mxu3 }
 0x589   :  { %v1988_v40 = vpop.f32.mrf.mxu1  ;;  %v2059_v61 = vadd.f32 %v4142_v25, %v2012_v38 }
 0x58a   :  { %v2885_v41 = vmul.f32 -1.442695, %v2019_v42 }
 0x58c   :  { %v3151_v43 = vpop.eup %3150  ;;  %3152 = vpow2.f32 %v2885_v41 }
 0x58d   :  { %v2026_v44 = vadd.f32 1.0, %v3151_v43 }
 0x58f   :  { %3154 = vrcp.f32 %v2026_v44  ;;  %v2001_v39 = vpop.f32.mrf.mxu2  ;;  %v2039_v54 = vand.u32 2147483648, %v2026_v44  ;;  %v2037_v52 = vand.u32 2147483647, %v2026_v44  ;;  %vm2033_vm9 = vweird.f32 %v2026_v44 }
 0x590   :  { %v2014_v45 = vpop.f32.mrf.mxu3 }
 0x591   :  { %v2040_v59 = vor.u32 1.1754944e-38, %v2039_v54  ;;  %vm2038_vm11 = vcmp.eq.f32.partialorder %v2037_v52, 8.507059e+37 }
 0x592   :  { %v3153_v46 = vpop.eup %3152 }
 0x593   :  { %v2027_v47 = vadd.f32 1.0, %v3153_v46 }
 0x595   :  { %v3155_v48 = vpop.eup %3154  ;;  %3156 = vrcp.f32 %v2027_v47  ;;  %v2054_v3 = vand.u32 2147483648, %v2027_v47  ;;  %vm2048_vm13 = vweird.f32 %v2027_v47  ;;  %v2052_v5 = vand.u32 2147483647, %v2027_v47 }
 0x596   :  { %v2029_v49 = vmul.f32 %v3155_v48, %v2026_v44  ;;  %vm2034_vm8 = vweird.f32 %v3155_v48 }
 0x597   :  { %vm2035_vm10 = vmor %vm2033_vm9, %vm2034_vm8  ;;  %v2055_v8 = vor.u32 1.1754944e-38, %v2054_v3  ;;  %vm2053_vm15 = vcmp.eq.f32.partialorder %v2052_v5, 8.507059e+37 }
 0x598   :  { %v2030_v50 = vsub.f32 1.0, %v2029_v49 }
 0x59a   :  { %v2031_v23 = vmul.f32 %v3155_v48, %v2030_v50 }
 0x59b   :  { %v3157_v53 = vpop.eup %3156 }
 0x59c   :  { %v2044_v55 = vmul.f32 %v3157_v53, %v2027_v47  ;;  %v2032_v56 = vadd.f32 %v3155_v48, %v2031_v23  ;;  %vm2049_vm12 = vweird.f32 %v3157_v53 }
 0x59d   :  { %vm2050_vm14 = vmor %vm2048_vm13, %vm2049_vm12 }
 0x59e   :  { %v2045_v58 = vsub.f32 1.0, %v2044_v55  ;;  %v2036_v60 = vsel %vm2035_vm10, %v3155_v48, %v2032_v56 }
 0x59f   :  { %v2041_v1 = vsel %vm2038_vm11, %v2040_v59, %v2036_v60 }
 0x5a0   :  { %v2060_v62 = vmul.f32 %v2059_v61, %v2041_v1  ;;  %v2046_v63 = vmul.f32 %v3157_v53, %v2045_v58 }
 0x5a2   :  { %v2061_v0 = vadd.f32 %v2060_v62, %v2058_v57  ;;  %v2047_v4 = vadd.f32 %v3157_v53, %v2046_v63 }
 0x5a4   :  { %3158 = vtanh.f32 %v2061_v0  ;;  %v2051_v6 = vsel %vm2050_vm14, %v3157_v53, %v2047_v4 }
 0x5a5   :  { %v2056_v10 = vsel %vm2053_vm15, %v2055_v8, %v2051_v6 }
 0x5aa   :  { %v3159_v7 = vpop.eup %3158 }
 0x5ab   :  { %v2063_v9 = vsub.f32 %v4470_v29, %v3159_v7 }
 0x5ad   :  { %v2064_v11 = vmul.f32 %v2063_v9, %v2056_v10 }
 0x5af   :  { %v2065_v25 = vadd.f32 %v3159_v7, %v2064_v11 }
 0x5b1   :  { %v2066_v12 = vpack.c.bf16 %v2065_v25, %v2065_v25  ;;  %2073 = vst [vmem:[%s4496_s5] sm:$0xff] %v2065_v25 }
 0x5b3   :  { %2886 = vst [vmem:[%s4495_s4 + $0x1c] sm:$0xf] %v2066_v12 }

</bundles_post_ra>
